<compile_context>
chip_gen: v7x
topology: tpu7x:2x2x1
jax: 0.10.0
libtpu: 0.0.40
codegen_flags: <defaults>
</compile_context>

<pallas_src>
import math

import jax
import jax.numpy as jnp
from jax.experimental import pallas as pl
from jax.experimental.pallas import tpu as pltpu

# ---- small config consistent with the module (scaled down) ----
B = 2          # batch
L = 8          # sequence length
D = 32         # hidden_dim
H = 4          # attention heads
DH = D // H    # head dim
DFF = 64       # transformer intermediate size
NLAYERS = 2    # nlayers
VOCAB = 128    # ascii embedding vocab (== TPU lane width -> lane-dense one-hot)
LN_EPS = 1e-12 # BertConfig default layer_norm_eps
N = B * L

F32 = jnp.float32


# ---------------- in-kernel helpers (traced inside the Pallas body) ----------------
def _layernorm(x, gamma, beta):
    mu = jnp.mean(x, axis=-1, keepdims=True)
    var = jnp.mean((x - mu) ** 2, axis=-1, keepdims=True)
    return (x - mu) * jax.lax.rsqrt(var + LN_EPS) * gamma + beta


def _softmax_lastdim(x):
    m = jnp.max(x, axis=-1, keepdims=True)
    e = jnp.exp(x - m)
    return e * pl.reciprocal(jnp.sum(e, axis=-1, keepdims=True), approx=True)


def _gelu_exact(x):
    # HF Bert default hidden_act="gelu" (exact, erf-based)
    return 0.5 * x * (1.0 + jax.lax.erf(x / jnp.sqrt(jnp.asarray(2.0, x.dtype))))


# -------- single fused kernel: embedding + PE + all encoder layers + output head --------
def fused_forward_kernel(ids_ref, emb_ref, pe_ref, wqkv_ref, bqkv_ref, wo_ref,
                         w1_ref, b1_ref, w2_ref, dvec_ref, wattn_ref, wout_ref,
                         scal_ref, out_ref):
    # ids_ref : (N, 1) int32                 emb_ref : (VOCAB, D)
    # pe_ref  : (N, D) positional slab (pe[:L] tiled over batch)
    # wqkv    : (NL*3*H, D, DH)  flat index ((layer*3+proj)*H + h), proj: 0=Q 1=K 2=V
    #           (Q weights/biases pre-scaled by 1/sqrt(DH))
    # bqkv    : (NL*3*H, 1, DH)
    # wo      : (NL, D, D)   w1: (NL, D, DFF)   b1: (NL, 1, DFF)   w2: (NL, DFF, D)
    # dvec    : (NL, 6, D)   rows = [bo, ln1_g, ln1_b, b2, ln2_g, ln2_b]
    # scal_ref (SMEM, (2,)): [prelu_alpha, out_bias]

    # ---- ascii embedding (padding_idx=0 row is zero) + positional encoding ----
    ids = ids_ref[...]                                              # (N, 1) int32
    vocab_iota = jax.lax.broadcasted_iota(jnp.int32, (N, VOCAB), 1)
    onehot = (vocab_iota == ids).astype(F32)                        # (N, 128) lane-dense
    x = jnp.dot(onehot, emb_ref[...],
                preferred_element_type=F32) + pe_ref[...]           # (N, D)

    for layer in range(NLAYERS):                                    # static unroll, NL=2
        dv = dvec_ref[layer]                                        # (6, D)
        bo, g1, be1 = dv[0:1, :], dv[1:2, :], dv[2:3, :]
        b2, g2, be2 = dv[3:4, :], dv[4:5, :], dv[5:6, :]

        # multi-head self-attention; per-head weight slabs so no sub-lane-width
        # slicing of a fused QKV tensor is ever needed.  No key-padding mask,
        # matching the reference (BertEncoder called without attention_mask).
        ctx_heads = []
        for h in range(H):                                          # static unroll, H=4
            iq = (layer * 3 + 0) * H + h
            ik = (layer * 3 + 1) * H + h
            iv = (layer * 3 + 2) * H + h
            qh = (jnp.dot(x, wqkv_ref[iq], preferred_element_type=F32)
                  + bqkv_ref[iq]).reshape(B, L, DH)                 # scale pre-folded
            kh = (jnp.dot(x, wqkv_ref[ik], preferred_element_type=F32)
                  + bqkv_ref[ik]).reshape(B, L, DH)
            vh = (jnp.dot(x, wqkv_ref[iv], preferred_element_type=F32)
                  + bqkv_ref[iv]).reshape(B, L, DH)
            s = jnp.einsum('bqd,bkd->bqk', qh, kh,
                           preferred_element_type=F32)              # (B, L, L)
            p = _softmax_lastdim(s)
            ctx_heads.append(jnp.einsum('bqk,bkd->bqd', p, vh,
                                        preferred_element_type=F32).reshape(N, DH))
        ctx = jnp.concatenate(ctx_heads, axis=-1)                   # (N, D) lane-dense

        attn_out = jnp.dot(ctx, wo_ref[layer], preferred_element_type=F32) + bo
        x1 = _layernorm(x + attn_out, g1, be1)                      # BertSelfOutput LN

        hid = _gelu_exact(jnp.dot(x1, w1_ref[layer],
                                  preferred_element_type=F32) + b1_ref[layer])
        ffn = jnp.dot(hid, w2_ref[layer], preferred_element_type=F32) + b2
        x = _layernorm(x1 + ffn, g2, be2)                           # BertOutput LN

    # ---- output head: SeqAttentionSum + PReLU + Linear(D,1) + sigmoid ----
    # VPU path: scores in (B, L, 1) column layout, softmax / pooling via
    # sublane reductions — no per-batch (1,L)x(L,D) MXU matmuls, no B-loop.
    x3 = x.reshape(B, L, D)
    score = jnp.sum(x3 * wattn_ref[...], axis=-1, keepdims=True)    # (B, L, 1)
    m = jnp.max(score, axis=1, keepdims=True)                       # (B, 1, 1)
    e = jnp.exp(score - m)
    p_seq = e * pl.reciprocal(jnp.sum(e, axis=1, keepdims=True), approx=True)
    pooled = jnp.sum(p_seq * x3, axis=1)                            # (B, D)

    alpha = scal_ref[0]                                             # PReLU single param
    b_out = scal_ref[1]
    act = jnp.where(pooled >= 0.0, pooled, alpha * pooled)
    y = jnp.dot(act, wout_ref[...], preferred_element_type=F32) + b_out   # (B, 1)
    out_ref[...] = jax.nn.sigmoid(y)


def fused_forward(ids, params):
    operands = (ids, params["embedding"], params["pe_slab"], params["wqkv"],
                params["bqkv"], params["wo"], params["w1"], params["b1"],
                params["w2"], params["dvec"], params["w_attn"], params["w_out"],
                params["head_scalars"])
    n_vmem = len(operands) - 1   # everything except the SMEM scalar pack
    return pl.pallas_call(
        fused_forward_kernel,
        out_shape=jax.ShapeDtypeStruct((B, 1), F32),
        in_specs=[pl.BlockSpec(memory_space=pltpu.MemorySpace.VMEM)] * n_vmem
                 + [pl.BlockSpec(memory_space=pltpu.MemorySpace.SMEM)],
        out_specs=pl.BlockSpec(memory_space=pltpu.MemorySpace.VMEM),
        # Raise v5e's 16 MiB default scoped VMEM; safe on v6e/v7x.  At real
        # model scale, stream per-layer weights via a grid axis instead.
        compiler_params=pltpu.CompilerParams(vmem_limit_bytes=32 * 1024 * 1024),
    )(*operands)


def forward(aa_x, params):
    # Whole model is a single fused Pallas call; only this trivial reshape and
    # the final squeeze(1) live outside it.
    ids = aa_x.reshape(B * L, 1).astype(jnp.int32)
    out = fused_forward(ids, params)
    return out[:, 0]                                                # .squeeze(1)


# ---------------- deterministic synthetic parameters ----------------
def sinusoidal_pe(max_len, d):
    pos = jnp.arange(max_len, dtype=F32)[:, None]
    div = jnp.exp(jnp.arange(0, d, 2, dtype=F32) * (-math.log(10000.0) / d))
    pe = jnp.zeros((max_len, d), F32)
    pe = pe.at[:, 0::2].set(jnp.sin(pos * div))
    pe = pe.at[:, 1::2].set(jnp.cos(pos * div))
    return pe


def init_params(key):
    ks = iter(jax.random.split(key, 64))

    def nrm(shape, scale=0.02):
        return scale * jax.random.normal(next(ks), shape, dtype=F32)

    emb = nrm((VOCAB, D)).at[0].set(0.0)                            # padding_idx=0
    pe_slab = jnp.tile(sinusoidal_pe(200, D)[:L], (B, 1))           # (B*L, D)

    # Per-head Q/K/V projection weights, flat-stacked:
    # index ((layer*3 + proj)*H + h); attention scale folded into Q weight+bias.
    inv_sqrt_dh = 1.0 / math.sqrt(DH)
    wq = nrm((NLAYERS, 1, H, D, DH)) * inv_sqrt_dh
    bq = nrm((NLAYERS, 1, H, 1, DH)) * inv_sqrt_dh
    wk = nrm((NLAYERS, 1, H, D, DH))
    bk = nrm((NLAYERS, 1, H, 1, DH))
    wv = nrm((NLAYERS, 1, H, D, DH))
    bv = nrm((NLAYERS, 1, H, 1, DH))
    wqkv = jnp.concatenate([wq, wk, wv], axis=1).reshape(NLAYERS * 3 * H, D, DH)
    bqkv = jnp.concatenate([bq, bk, bv], axis=1).reshape(NLAYERS * 3 * H, 1, DH)

    wo = nrm((NLAYERS, D, D))
    w1 = nrm((NLAYERS, D, DFF))
    b1 = nrm((NLAYERS, 1, DFF))
    w2 = nrm((NLAYERS, DFF, D))
    bo = nrm((NLAYERS, D))
    b2 = nrm((NLAYERS, D))
    ln_g = jnp.ones((NLAYERS, D), F32)
    ln_b = jnp.zeros((NLAYERS, D), F32)
    # packed per-layer D-wide vectors: [bo, ln1_g, ln1_b, b2, ln2_g, ln2_b]
    dvec = jnp.stack([bo, ln_g, ln_b, b2, ln_g, ln_b], axis=1)      # (NL, 6, D)

    return dict(
        embedding=emb,
        pe_slab=pe_slab,
        wqkv=wqkv, bqkv=bqkv, wo=wo, w1=w1, b1=b1, w2=w2, dvec=dvec,
        w_attn=nrm((1, D)),                                         # SeqAttentionSum (no bias)
        w_out=nrm((D, 1)),                                          # Linear(D, 1)
        head_scalars=jnp.array([0.25, 0.0], dtype=F32),             # [PReLU alpha, out bias]
    )


if __name__ == "__main__":
    key = jax.random.PRNGKey(0)
    kp, kx = jax.random.split(key)
    params = init_params(kp)
    aa_x = jax.random.randint(kx, (B, L), 1, VOCAB, dtype=jnp.int32)

    out = jax.jit(forward)(aa_x, params)
    out = jax.block_until_ready(out)

    assert out.shape == (B,), out.shape
    assert bool(jnp.all(jnp.isfinite(out)))
    assert bool(jnp.all((out > 0.0) & (out < 1.0)))
    print("KERNEL_OK")
</pallas_src>

<mosaic_0001>
module attributes {stable_mosaic.version = 11 : i64} {
  func.func @fused_forward_kernel(%arg0: memref<16x1xi32, #tpu.memory_space<vmem>>, %arg1: memref<128x32xf32, #tpu.memory_space<vmem>>, %arg2: memref<16x32xf32, #tpu.memory_space<vmem>>, %arg3: memref<24x32x8xf32, #tpu.memory_space<vmem>>, %arg4: memref<24x1x8xf32, #tpu.memory_space<vmem>>, %arg5: memref<2x32x32xf32, #tpu.memory_space<vmem>>, %arg6: memref<2x32x64xf32, #tpu.memory_space<vmem>>, %arg7: memref<2x1x64xf32, #tpu.memory_space<vmem>>, %arg8: memref<2x64x32xf32, #tpu.memory_space<vmem>>, %arg9: memref<2x6x32xf32, #tpu.memory_space<vmem>>, %arg10: memref<1x32xf32, #tpu.memory_space<vmem>>, %arg11: memref<32x1xf32, #tpu.memory_space<vmem>>, %arg12: memref<2xf32, #tpu.memory_space<smem>>, %arg13: memref<2x1xf32, #tpu.memory_space<vmem>>) attributes {dimension_semantics = [], scalar_prefetch = 0 : i64, scratch_operands = 0 : i64, tpu.core_type = #tpu.core_type<tc>} {
    %c0 = arith.constant 0 : index
    %c0_0 = arith.constant 0 : index
    %0 = vector.load %arg0[%c0, %c0_0] : memref<16x1xi32, #tpu.memory_space<vmem>>, vector<16x1xi32>
    %1 = tpu.iota {dimensions = array<i32: 1>} : vector<16x128xi32>
    %2 = vector.broadcast %0 : vector<16x1xi32> to vector<16x128xi32>
    %3 = arith.cmpi eq, %1, %2 : vector<16x128xi32>
    %4 = arith.extui %3 : vector<16x128xi1> to vector<16x128xi32>
    %5 = arith.sitofp %4 : vector<16x128xi32> to vector<16x128xf32>
    %c0_1 = arith.constant 0 : index
    %c0_2 = arith.constant 0 : index
    %6 = vector.load %arg1[%c0_1, %c0_2] : memref<128x32xf32, #tpu.memory_space<vmem>>, vector<128x32xf32>
    %cst = arith.constant dense<0.000000e+00> : vector<16x32xf32>
    %7 = tpu.matmul %5, %6, %cst {dimension_numbers = #tpu.dot_dimension_numbers<[1], [0], [0], [1], [0, 0, 1, 1], [], []>} : vector<16x128xf32>, vector<128x32xf32>, vector<16x32xf32> -> vector<16x32xf32>
    %c0_3 = arith.constant 0 : index
    %c0_4 = arith.constant 0 : index
    %8 = vector.load %arg2[%c0_3, %c0_4] : memref<16x32xf32, #tpu.memory_space<vmem>>, vector<16x32xf32>
    %9 = arith.addf %7, %8 : vector<16x32xf32>
    %c0_5 = arith.constant 0 : index
    %c0_6 = arith.constant 0 : index
    %c0_7 = arith.constant 0 : index
    %10 = vector.load %arg9[%c0_5, %c0_6, %c0_7] : memref<2x6x32xf32, #tpu.memory_space<vmem>>, vector<1x6x32xf32>
    %11 = vector.shape_cast %10 : vector<1x6x32xf32> to vector<6x32xf32>
    %12 = vector.extract_strided_slice %11 {offsets = [0, 0], sizes = [1, 32], strides = [1, 1]} : vector<6x32xf32> to vector<1x32xf32>
    %13 = vector.extract_strided_slice %11 {offsets = [1, 0], sizes = [1, 32], strides = [1, 1]} : vector<6x32xf32> to vector<1x32xf32>
    %14 = vector.extract_strided_slice %11 {offsets = [2, 0], sizes = [1, 32], strides = [1, 1]} : vector<6x32xf32> to vector<1x32xf32>
    %15 = vector.extract_strided_slice %11 {offsets = [3, 0], sizes = [1, 32], strides = [1, 1]} : vector<6x32xf32> to vector<1x32xf32>
    %16 = vector.extract_strided_slice %11 {offsets = [4, 0], sizes = [1, 32], strides = [1, 1]} : vector<6x32xf32> to vector<1x32xf32>
    %17 = vector.extract_strided_slice %11 {offsets = [5, 0], sizes = [1, 32], strides = [1, 1]} : vector<6x32xf32> to vector<1x32xf32>
    %c0_8 = arith.constant 0 : index
    %c0_9 = arith.constant 0 : index
    %c0_10 = arith.constant 0 : index
    %18 = vector.load %arg3[%c0_8, %c0_9, %c0_10] : memref<24x32x8xf32, #tpu.memory_space<vmem>>, vector<1x32x8xf32>
    %19 = vector.shape_cast %18 : vector<1x32x8xf32> to vector<32x8xf32>
    %cst_11 = arith.constant dense<0.000000e+00> : vector<16x8xf32>
    %20 = tpu.matmul %9, %19, %cst_11 {dimension_numbers = #tpu.dot_dimension_numbers<[1], [0], [0], [1], [0, 0, 1, 1], [], []>} : vector<16x32xf32>, vector<32x8xf32>, vector<16x8xf32> -> vector<16x8xf32>
    %c0_12 = arith.constant 0 : index
    %c0_13 = arith.constant 0 : index
    %c0_14 = arith.constant 0 : index
    %21 = vector.load %arg4[%c0_12, %c0_13, %c0_14] : memref<24x1x8xf32, #tpu.memory_space<vmem>>, vector<1x1x8xf32>
    %22 = vector.shape_cast %21 : vector<1x1x8xf32> to vector<1x8xf32>
    %23 = vector.broadcast %22 : vector<1x8xf32> to vector<16x8xf32>
    %24 = arith.addf %20, %23 : vector<16x8xf32>
    %25 = vector.shape_cast %24 : vector<16x8xf32> to vector<2x8x8xf32>
    %c4 = arith.constant 4 : index
    %c0_15 = arith.constant 0 : index
    %c0_16 = arith.constant 0 : index
    %26 = vector.load %arg3[%c4, %c0_15, %c0_16] : memref<24x32x8xf32, #tpu.memory_space<vmem>>, vector<1x32x8xf32>
    %27 = vector.shape_cast %26 : vector<1x32x8xf32> to vector<32x8xf32>
    %cst_17 = arith.constant dense<0.000000e+00> : vector<16x8xf32>
    %28 = tpu.matmul %9, %27, %cst_17 {dimension_numbers = #tpu.dot_dimension_numbers<[1], [0], [0], [1], [0, 0, 1, 1], [], []>} : vector<16x32xf32>, vector<32x8xf32>, vector<16x8xf32> -> vector<16x8xf32>
    %c4_18 = arith.constant 4 : index
    %c0_19 = arith.constant 0 : index
    %c0_20 = arith.constant 0 : index
    %29 = vector.load %arg4[%c4_18, %c0_19, %c0_20] : memref<24x1x8xf32, #tpu.memory_space<vmem>>, vector<1x1x8xf32>
    %30 = vector.shape_cast %29 : vector<1x1x8xf32> to vector<1x8xf32>
    %31 = vector.broadcast %30 : vector<1x8xf32> to vector<16x8xf32>
    %32 = arith.addf %28, %31 : vector<16x8xf32>
    %33 = vector.shape_cast %32 : vector<16x8xf32> to vector<2x8x8xf32>
    %c8 = arith.constant 8 : index
    %c0_21 = arith.constant 0 : index
    %c0_22 = arith.constant 0 : index
    %34 = vector.load %arg3[%c8, %c0_21, %c0_22] : memref<24x32x8xf32, #tpu.memory_space<vmem>>, vector<1x32x8xf32>
    %35 = vector.shape_cast %34 : vector<1x32x8xf32> to vector<32x8xf32>
    %cst_23 = arith.constant dense<0.000000e+00> : vector<16x8xf32>
    %36 = tpu.matmul %9, %35, %cst_23 {dimension_numbers = #tpu.dot_dimension_numbers<[1], [0], [0], [1], [0, 0, 1, 1], [], []>} : vector<16x32xf32>, vector<32x8xf32>, vector<16x8xf32> -> vector<16x8xf32>
    %c8_24 = arith.constant 8 : index
    %c0_25 = arith.constant 0 : index
    %c0_26 = arith.constant 0 : index
    %37 = vector.load %arg4[%c8_24, %c0_25, %c0_26] : memref<24x1x8xf32, #tpu.memory_space<vmem>>, vector<1x1x8xf32>
    %38 = vector.shape_cast %37 : vector<1x1x8xf32> to vector<1x8xf32>
    %39 = vector.broadcast %38 : vector<1x8xf32> to vector<16x8xf32>
    %40 = arith.addf %36, %39 : vector<16x8xf32>
    %41 = vector.shape_cast %40 : vector<16x8xf32> to vector<2x8x8xf32>
    "tpu.trace_start"() <{level = 10 : i32, message = "bqd,bkd->bqk"}> : () -> ()
    %cst_27 = arith.constant dense<0.000000e+00> : vector<2x8x8xf32>
    %42 = tpu.matmul %25, %33, %cst_27 {dimension_numbers = #tpu.dot_dimension_numbers<[2], [2], [1], [1], [0, 0, 0, 1, 1, 1], [0], [0]>} : vector<2x8x8xf32>, vector<2x8x8xf32>, vector<2x8x8xf32> -> vector<2x8x8xf32>
    "tpu.trace_stop"() : () -> ()
    %cst_28 = arith.constant dense<0xFF800000> : vector<2x8xf32>
    %43 = vector.multi_reduction <maximumf>, %42, %cst_28 [2] : vector<2x8x8xf32> to vector<2x8xf32>
    %44 = vector.shape_cast %43 : vector<2x8xf32> to vector<2x8x1xf32>
    %45 = vector.broadcast %44 : vector<2x8x1xf32> to vector<2x8x8xf32>
    %46 = arith.subf %42, %45 : vector<2x8x8xf32>
    %47 = math.exp %46 : vector<2x8x8xf32>
    %cst_29 = arith.constant dense<0.000000e+00> : vector<2x8xf32>
    %48 = vector.multi_reduction <add>, %47, %cst_29 [2] : vector<2x8x8xf32> to vector<2x8xf32>
    %49 = vector.shape_cast %48 : vector<2x8xf32> to vector<2x8x1xf32>
    %50 = tpu.reciprocal %49 {approx = true} : vector<2x8x1xf32> -> vector<2x8x1xf32>
    %51 = vector.broadcast %50 : vector<2x8x1xf32> to vector<2x8x8xf32>
    %52 = arith.mulf %47, %51 : vector<2x8x8xf32>
    "tpu.trace_start"() <{level = 10 : i32, message = "bqk,bkd->bqd"}> : () -> ()
    %cst_30 = arith.constant dense<0.000000e+00> : vector<2x8x8xf32>
    %53 = tpu.matmul %52, %41, %cst_30 {dimension_numbers = #tpu.dot_dimension_numbers<[2], [1], [1], [2], [0, 0, 0, 1, 1, 2], [0], [0]>} : vector<2x8x8xf32>, vector<2x8x8xf32>, vector<2x8x8xf32> -> vector<2x8x8xf32>
    "tpu.trace_stop"() : () -> ()
    %54 = vector.shape_cast %53 : vector<2x8x8xf32> to vector<16x8xf32>
    %c1 = arith.constant 1 : index
    %c0_31 = arith.constant 0 : index
    %c0_32 = arith.constant 0 : index
    %55 = vector.load %arg3[%c1, %c0_31, %c0_32] : memref<24x32x8xf32, #tpu.memory_space<vmem>>, vector<1x32x8xf32>
    %56 = vector.shape_cast %55 : vector<1x32x8xf32> to vector<32x8xf32>
    %cst_33 = arith.constant dense<0.000000e+00> : vector<16x8xf32>
    %57 = tpu.matmul %9, %56, %cst_33 {dimension_numbers = #tpu.dot_dimension_numbers<[1], [0], [0], [1], [0, 0, 1, 1], [], []>} : vector<16x32xf32>, vector<32x8xf32>, vector<16x8xf32> -> vector<16x8xf32>
    %c1_34 = arith.constant 1 : index
    %c0_35 = arith.constant 0 : index
    %c0_36 = arith.constant 0 : index
    %58 = vector.load %arg4[%c1_34, %c0_35, %c0_36] : memref<24x1x8xf32, #tpu.memory_space<vmem>>, vector<1x1x8xf32>
    %59 = vector.shape_cast %58 : vector<1x1x8xf32> to vector<1x8xf32>
    %60 = vector.broadcast %59 : vector<1x8xf32> to vector<16x8xf32>
    %61 = arith.addf %57, %60 : vector<16x8xf32>
    %62 = vector.shape_cast %61 : vector<16x8xf32> to vector<2x8x8xf32>
    %c5 = arith.constant 5 : index
    %c0_37 = arith.constant 0 : index
    %c0_38 = arith.constant 0 : index
    %63 = vector.load %arg3[%c5, %c0_37, %c0_38] : memref<24x32x8xf32, #tpu.memory_space<vmem>>, vector<1x32x8xf32>
    %64 = vector.shape_cast %63 : vector<1x32x8xf32> to vector<32x8xf32>
    %cst_39 = arith.constant dense<0.000000e+00> : vector<16x8xf32>
    %65 = tpu.matmul %9, %64, %cst_39 {dimension_numbers = #tpu.dot_dimension_numbers<[1], [0], [0], [1], [0, 0, 1, 1], [], []>} : vector<16x32xf32>, vector<32x8xf32>, vector<16x8xf32> -> vector<16x8xf32>
    %c5_40 = arith.constant 5 : index
    %c0_41 = arith.constant 0 : index
    %c0_42 = arith.constant 0 : index
    %66 = vector.load %arg4[%c5_40, %c0_41, %c0_42] : memref<24x1x8xf32, #tpu.memory_space<vmem>>, vector<1x1x8xf32>
    %67 = vector.shape_cast %66 : vector<1x1x8xf32> to vector<1x8xf32>
    %68 = vector.broadcast %67 : vector<1x8xf32> to vector<16x8xf32>
    %69 = arith.addf %65, %68 : vector<16x8xf32>
    %70 = vector.shape_cast %69 : vector<16x8xf32> to vector<2x8x8xf32>
    %c9 = arith.constant 9 : index
    %c0_43 = arith.constant 0 : index
    %c0_44 = arith.constant 0 : index
    %71 = vector.load %arg3[%c9, %c0_43, %c0_44] : memref<24x32x8xf32, #tpu.memory_space<vmem>>, vector<1x32x8xf32>
    %72 = vector.shape_cast %71 : vector<1x32x8xf32> to vector<32x8xf32>
    %cst_45 = arith.constant dense<0.000000e+00> : vector<16x8xf32>
    %73 = tpu.matmul %9, %72, %cst_45 {dimension_numbers = #tpu.dot_dimension_numbers<[1], [0], [0], [1], [0, 0, 1, 1], [], []>} : vector<16x32xf32>, vector<32x8xf32>, vector<16x8xf32> -> vector<16x8xf32>
    %c9_46 = arith.constant 9 : index
    %c0_47 = arith.constant 0 : index
    %c0_48 = arith.constant 0 : index
    %74 = vector.load %arg4[%c9_46, %c0_47, %c0_48] : memref<24x1x8xf32, #tpu.memory_space<vmem>>, vector<1x1x8xf32>
    %75 = vector.shape_cast %74 : vector<1x1x8xf32> to vector<1x8xf32>
    %76 = vector.broadcast %75 : vector<1x8xf32> to vector<16x8xf32>
    %77 = arith.addf %73, %76 : vector<16x8xf32>
    %78 = vector.shape_cast %77 : vector<16x8xf32> to vector<2x8x8xf32>
    "tpu.trace_start"() <{level = 10 : i32, message = "bqd,bkd->bqk"}> : () -> ()
    %cst_49 = arith.constant dense<0.000000e+00> : vector<2x8x8xf32>
    %79 = tpu.matmul %62, %70, %cst_49 {dimension_numbers = #tpu.dot_dimension_numbers<[2], [2], [1], [1], [0, 0, 0, 1, 1, 1], [0], [0]>} : vector<2x8x8xf32>, vector<2x8x8xf32>, vector<2x8x8xf32> -> vector<2x8x8xf32>
    "tpu.trace_stop"() : () -> ()
    %cst_50 = arith.constant dense<0xFF800000> : vector<2x8xf32>
    %80 = vector.multi_reduction <maximumf>, %79, %cst_50 [2] : vector<2x8x8xf32> to vector<2x8xf32>
    %81 = vector.shape_cast %80 : vector<2x8xf32> to vector<2x8x1xf32>
    %82 = vector.broadcast %81 : vector<2x8x1xf32> to vector<2x8x8xf32>
    %83 = arith.subf %79, %82 : vector<2x8x8xf32>
    %84 = math.exp %83 : vector<2x8x8xf32>
    %cst_51 = arith.constant dense<0.000000e+00> : vector<2x8xf32>
    %85 = vector.multi_reduction <add>, %84, %cst_51 [2] : vector<2x8x8xf32> to vector<2x8xf32>
    %86 = vector.shape_cast %85 : vector<2x8xf32> to vector<2x8x1xf32>
    %87 = tpu.reciprocal %86 {approx = true} : vector<2x8x1xf32> -> vector<2x8x1xf32>
    %88 = vector.broadcast %87 : vector<2x8x1xf32> to vector<2x8x8xf32>
    %89 = arith.mulf %84, %88 : vector<2x8x8xf32>
    "tpu.trace_start"() <{level = 10 : i32, message = "bqk,bkd->bqd"}> : () -> ()
    %cst_52 = arith.constant dense<0.000000e+00> : vector<2x8x8xf32>
    %90 = tpu.matmul %89, %78, %cst_52 {dimension_numbers = #tpu.dot_dimension_numbers<[2], [1], [1], [2], [0, 0, 0, 1, 1, 2], [0], [0]>} : vector<2x8x8xf32>, vector<2x8x8xf32>, vector<2x8x8xf32> -> vector<2x8x8xf32>
    "tpu.trace_stop"() : () -> ()
    %91 = vector.shape_cast %90 : vector<2x8x8xf32> to vector<16x8xf32>
    %c2 = arith.constant 2 : index
    %c0_53 = arith.constant 0 : index
    %c0_54 = arith.constant 0 : index
    %92 = vector.load %arg3[%c2, %c0_53, %c0_54] : memref<24x32x8xf32, #tpu.memory_space<vmem>>, vector<1x32x8xf32>
    %93 = vector.shape_cast %92 : vector<1x32x8xf32> to vector<32x8xf32>
    %cst_55 = arith.constant dense<0.000000e+00> : vector<16x8xf32>
    %94 = tpu.matmul %9, %93, %cst_55 {dimension_numbers = #tpu.dot_dimension_numbers<[1], [0], [0], [1], [0, 0, 1, 1], [], []>} : vector<16x32xf32>, vector<32x8xf32>, vector<16x8xf32> -> vector<16x8xf32>
    %c2_56 = arith.constant 2 : index
    %c0_57 = arith.constant 0 : index
    %c0_58 = arith.constant 0 : index
    %95 = vector.load %arg4[%c2_56, %c0_57, %c0_58] : memref<24x1x8xf32, #tpu.memory_space<vmem>>, vector<1x1x8xf32>
    %96 = vector.shape_cast %95 : vector<1x1x8xf32> to vector<1x8xf32>
    %97 = vector.broadcast %96 : vector<1x8xf32> to vector<16x8xf32>
    %98 = arith.addf %94, %97 : vector<16x8xf32>
    %99 = vector.shape_cast %98 : vector<16x8xf32> to vector<2x8x8xf32>
    %c6 = arith.constant 6 : index
    %c0_59 = arith.constant 0 : index
    %c0_60 = arith.constant 0 : index
    %100 = vector.load %arg3[%c6, %c0_59, %c0_60] : memref<24x32x8xf32, #tpu.memory_space<vmem>>, vector<1x32x8xf32>
    %101 = vector.shape_cast %100 : vector<1x32x8xf32> to vector<32x8xf32>
    %cst_61 = arith.constant dense<0.000000e+00> : vector<16x8xf32>
    %102 = tpu.matmul %9, %101, %cst_61 {dimension_numbers = #tpu.dot_dimension_numbers<[1], [0], [0], [1], [0, 0, 1, 1], [], []>} : vector<16x32xf32>, vector<32x8xf32>, vector<16x8xf32> -> vector<16x8xf32>
    %c6_62 = arith.constant 6 : index
    %c0_63 = arith.constant 0 : index
    %c0_64 = arith.constant 0 : index
    %103 = vector.load %arg4[%c6_62, %c0_63, %c0_64] : memref<24x1x8xf32, #tpu.memory_space<vmem>>, vector<1x1x8xf32>
    %104 = vector.shape_cast %103 : vector<1x1x8xf32> to vector<1x8xf32>
    %105 = vector.broadcast %104 : vector<1x8xf32> to vector<16x8xf32>
    %106 = arith.addf %102, %105 : vector<16x8xf32>
    %107 = vector.shape_cast %106 : vector<16x8xf32> to vector<2x8x8xf32>
    %c10 = arith.constant 10 : index
    %c0_65 = arith.constant 0 : index
    %c0_66 = arith.constant 0 : index
    %108 = vector.load %arg3[%c10, %c0_65, %c0_66] : memref<24x32x8xf32, #tpu.memory_space<vmem>>, vector<1x32x8xf32>
    %109 = vector.shape_cast %108 : vector<1x32x8xf32> to vector<32x8xf32>
    %cst_67 = arith.constant dense<0.000000e+00> : vector<16x8xf32>
    %110 = tpu.matmul %9, %109, %cst_67 {dimension_numbers = #tpu.dot_dimension_numbers<[1], [0], [0], [1], [0, 0, 1, 1], [], []>} : vector<16x32xf32>, vector<32x8xf32>, vector<16x8xf32> -> vector<16x8xf32>
    %c10_68 = arith.constant 10 : index
    %c0_69 = arith.constant 0 : index
    %c0_70 = arith.constant 0 : index
    %111 = vector.load %arg4[%c10_68, %c0_69, %c0_70] : memref<24x1x8xf32, #tpu.memory_space<vmem>>, vector<1x1x8xf32>
    %112 = vector.shape_cast %111 : vector<1x1x8xf32> to vector<1x8xf32>
    %113 = vector.broadcast %112 : vector<1x8xf32> to vector<16x8xf32>
    %114 = arith.addf %110, %113 : vector<16x8xf32>
    %115 = vector.shape_cast %114 : vector<16x8xf32> to vector<2x8x8xf32>
    "tpu.trace_start"() <{level = 10 : i32, message = "bqd,bkd->bqk"}> : () -> ()
    %cst_71 = arith.constant dense<0.000000e+00> : vector<2x8x8xf32>
    %116 = tpu.matmul %99, %107, %cst_71 {dimension_numbers = #tpu.dot_dimension_numbers<[2], [2], [1], [1], [0, 0, 0, 1, 1, 1], [0], [0]>} : vector<2x8x8xf32>, vector<2x8x8xf32>, vector<2x8x8xf32> -> vector<2x8x8xf32>
    "tpu.trace_stop"() : () -> ()
    %cst_72 = arith.constant dense<0xFF800000> : vector<2x8xf32>
    %117 = vector.multi_reduction <maximumf>, %116, %cst_72 [2] : vector<2x8x8xf32> to vector<2x8xf32>
    %118 = vector.shape_cast %117 : vector<2x8xf32> to vector<2x8x1xf32>
    %119 = vector.broadcast %118 : vector<2x8x1xf32> to vector<2x8x8xf32>
    %120 = arith.subf %116, %119 : vector<2x8x8xf32>
    %121 = math.exp %120 : vector<2x8x8xf32>
    %cst_73 = arith.constant dense<0.000000e+00> : vector<2x8xf32>
    %122 = vector.multi_reduction <add>, %121, %cst_73 [2] : vector<2x8x8xf32> to vector<2x8xf32>
    %123 = vector.shape_cast %122 : vector<2x8xf32> to vector<2x8x1xf32>
    %124 = tpu.reciprocal %123 {approx = true} : vector<2x8x1xf32> -> vector<2x8x1xf32>
    %125 = vector.broadcast %124 : vector<2x8x1xf32> to vector<2x8x8xf32>
    %126 = arith.mulf %121, %125 : vector<2x8x8xf32>
    "tpu.trace_start"() <{level = 10 : i32, message = "bqk,bkd->bqd"}> : () -> ()
    %cst_74 = arith.constant dense<0.000000e+00> : vector<2x8x8xf32>
    %127 = tpu.matmul %126, %115, %cst_74 {dimension_numbers = #tpu.dot_dimension_numbers<[2], [1], [1], [2], [0, 0, 0, 1, 1, 2], [0], [0]>} : vector<2x8x8xf32>, vector<2x8x8xf32>, vector<2x8x8xf32> -> vector<2x8x8xf32>
    "tpu.trace_stop"() : () -> ()
    %128 = vector.shape_cast %127 : vector<2x8x8xf32> to vector<16x8xf32>
    %c3 = arith.constant 3 : index
    %c0_75 = arith.constant 0 : index
    %c0_76 = arith.constant 0 : index
    %129 = vector.load %arg3[%c3, %c0_75, %c0_76] : memref<24x32x8xf32, #tpu.memory_space<vmem>>, vector<1x32x8xf32>
    %130 = vector.shape_cast %129 : vector<1x32x8xf32> to vector<32x8xf32>
    %cst_77 = arith.constant dense<0.000000e+00> : vector<16x8xf32>
    %131 = tpu.matmul %9, %130, %cst_77 {dimension_numbers = #tpu.dot_dimension_numbers<[1], [0], [0], [1], [0, 0, 1, 1], [], []>} : vector<16x32xf32>, vector<32x8xf32>, vector<16x8xf32> -> vector<16x8xf32>
    %c3_78 = arith.constant 3 : index
    %c0_79 = arith.constant 0 : index
    %c0_80 = arith.constant 0 : index
    %132 = vector.load %arg4[%c3_78, %c0_79, %c0_80] : memref<24x1x8xf32, #tpu.memory_space<vmem>>, vector<1x1x8xf32>
    %133 = vector.shape_cast %132 : vector<1x1x8xf32> to vector<1x8xf32>
    %134 = vector.broadcast %133 : vector<1x8xf32> to vector<16x8xf32>
    %135 = arith.addf %131, %134 : vector<16x8xf32>
    %136 = vector.shape_cast %135 : vector<16x8xf32> to vector<2x8x8xf32>
    %c7 = arith.constant 7 : index
    %c0_81 = arith.constant 0 : index
    %c0_82 = arith.constant 0 : index
    %137 = vector.load %arg3[%c7, %c0_81, %c0_82] : memref<24x32x8xf32, #tpu.memory_space<vmem>>, vector<1x32x8xf32>
    %138 = vector.shape_cast %137 : vector<1x32x8xf32> to vector<32x8xf32>
    %cst_83 = arith.constant dense<0.000000e+00> : vector<16x8xf32>
    %139 = tpu.matmul %9, %138, %cst_83 {dimension_numbers = #tpu.dot_dimension_numbers<[1], [0], [0], [1], [0, 0, 1, 1], [], []>} : vector<16x32xf32>, vector<32x8xf32>, vector<16x8xf32> -> vector<16x8xf32>
    %c7_84 = arith.constant 7 : index
    %c0_85 = arith.constant 0 : index
    %c0_86 = arith.constant 0 : index
    %140 = vector.load %arg4[%c7_84, %c0_85, %c0_86] : memref<24x1x8xf32, #tpu.memory_space<vmem>>, vector<1x1x8xf32>
    %141 = vector.shape_cast %140 : vector<1x1x8xf32> to vector<1x8xf32>
    %142 = vector.broadcast %141 : vector<1x8xf32> to vector<16x8xf32>
    %143 = arith.addf %139, %142 : vector<16x8xf32>
    %144 = vector.shape_cast %143 : vector<16x8xf32> to vector<2x8x8xf32>
    %c11 = arith.constant 11 : index
    %c0_87 = arith.constant 0 : index
    %c0_88 = arith.constant 0 : index
    %145 = vector.load %arg3[%c11, %c0_87, %c0_88] : memref<24x32x8xf32, #tpu.memory_space<vmem>>, vector<1x32x8xf32>
    %146 = vector.shape_cast %145 : vector<1x32x8xf32> to vector<32x8xf32>
    %cst_89 = arith.constant dense<0.000000e+00> : vector<16x8xf32>
    %147 = tpu.matmul %9, %146, %cst_89 {dimension_numbers = #tpu.dot_dimension_numbers<[1], [0], [0], [1], [0, 0, 1, 1], [], []>} : vector<16x32xf32>, vector<32x8xf32>, vector<16x8xf32> -> vector<16x8xf32>
    %c11_90 = arith.constant 11 : index
    %c0_91 = arith.constant 0 : index
    %c0_92 = arith.constant 0 : index
    %148 = vector.load %arg4[%c11_90, %c0_91, %c0_92] : memref<24x1x8xf32, #tpu.memory_space<vmem>>, vector<1x1x8xf32>
    %149 = vector.shape_cast %148 : vector<1x1x8xf32> to vector<1x8xf32>
    %150 = vector.broadcast %149 : vector<1x8xf32> to vector<16x8xf32>
    %151 = arith.addf %147, %150 : vector<16x8xf32>
    %152 = vector.shape_cast %151 : vector<16x8xf32> to vector<2x8x8xf32>
    "tpu.trace_start"() <{level = 10 : i32, message = "bqd,bkd->bqk"}> : () -> ()
    %cst_93 = arith.constant dense<0.000000e+00> : vector<2x8x8xf32>
    %153 = tpu.matmul %136, %144, %cst_93 {dimension_numbers = #tpu.dot_dimension_numbers<[2], [2], [1], [1], [0, 0, 0, 1, 1, 1], [0], [0]>} : vector<2x8x8xf32>, vector<2x8x8xf32>, vector<2x8x8xf32> -> vector<2x8x8xf32>
    "tpu.trace_stop"() : () -> ()
    %cst_94 = arith.constant dense<0xFF800000> : vector<2x8xf32>
    %154 = vector.multi_reduction <maximumf>, %153, %cst_94 [2] : vector<2x8x8xf32> to vector<2x8xf32>
    %155 = vector.shape_cast %154 : vector<2x8xf32> to vector<2x8x1xf32>
    %156 = vector.broadcast %155 : vector<2x8x1xf32> to vector<2x8x8xf32>
    %157 = arith.subf %153, %156 : vector<2x8x8xf32>
    %158 = math.exp %157 : vector<2x8x8xf32>
    %cst_95 = arith.constant dense<0.000000e+00> : vector<2x8xf32>
    %159 = vector.multi_reduction <add>, %158, %cst_95 [2] : vector<2x8x8xf32> to vector<2x8xf32>
    %160 = vector.shape_cast %159 : vector<2x8xf32> to vector<2x8x1xf32>
    %161 = tpu.reciprocal %160 {approx = true} : vector<2x8x1xf32> -> vector<2x8x1xf32>
    %162 = vector.broadcast %161 : vector<2x8x1xf32> to vector<2x8x8xf32>
    %163 = arith.mulf %158, %162 : vector<2x8x8xf32>
    "tpu.trace_start"() <{level = 10 : i32, message = "bqk,bkd->bqd"}> : () -> ()
    %cst_96 = arith.constant dense<0.000000e+00> : vector<2x8x8xf32>
    %164 = tpu.matmul %163, %152, %cst_96 {dimension_numbers = #tpu.dot_dimension_numbers<[2], [1], [1], [2], [0, 0, 0, 1, 1, 2], [0], [0]>} : vector<2x8x8xf32>, vector<2x8x8xf32>, vector<2x8x8xf32> -> vector<2x8x8xf32>
    "tpu.trace_stop"() : () -> ()
    %165 = vector.shape_cast %164 : vector<2x8x8xf32> to vector<16x8xf32>
    %166 = tpu.concatenate %54, %91, %128, %165 in 1 : vector<16x8xf32>, vector<16x8xf32>, vector<16x8xf32>, vector<16x8xf32> -> vector<16x32xf32>
    %c0_97 = arith.constant 0 : index
    %c0_98 = arith.constant 0 : index
    %c0_99 = arith.constant 0 : index
    %167 = vector.load %arg5[%c0_97, %c0_98, %c0_99] : memref<2x32x32xf32, #tpu.memory_space<vmem>>, vector<1x32x32xf32>
    %168 = vector.shape_cast %167 : vector<1x32x32xf32> to vector<32x32xf32>
    %cst_100 = arith.constant dense<0.000000e+00> : vector<16x32xf32>
    %169 = tpu.matmul %166, %168, %cst_100 {dimension_numbers = #tpu.dot_dimension_numbers<[1], [0], [0], [1], [0, 0, 1, 1], [], []>} : vector<16x32xf32>, vector<32x32xf32>, vector<16x32xf32> -> vector<16x32xf32>
    %170 = vector.broadcast %12 : vector<1x32xf32> to vector<16x32xf32>
    %171 = arith.addf %169, %170 : vector<16x32xf32>
    %172 = arith.addf %9, %171 : vector<16x32xf32>
    %cst_101 = arith.constant dense<0.000000e+00> : vector<16xf32>
    %173 = vector.multi_reduction <add>, %172, %cst_101 [1] : vector<16x32xf32> to vector<16xf32>
    %174 = vector.shape_cast %173 : vector<16xf32> to vector<16x1xf32>
    %cst_102 = arith.constant 3.200000e+01 : f32
    %175 = vector.broadcast %cst_102 : f32 to vector<16x1xf32>
    %176 = arith.divf %174, %175 : vector<16x1xf32>
    %177 = vector.broadcast %176 : vector<16x1xf32> to vector<16x32xf32>
    %178 = arith.subf %172, %177 : vector<16x32xf32>
    %179 = arith.mulf %178, %178 : vector<16x32xf32>
    %cst_103 = arith.constant dense<0.000000e+00> : vector<16xf32>
    %180 = vector.multi_reduction <add>, %179, %cst_103 [1] : vector<16x32xf32> to vector<16xf32>
    %181 = vector.shape_cast %180 : vector<16xf32> to vector<16x1xf32>
    %cst_104 = arith.constant 3.200000e+01 : f32
    %182 = vector.broadcast %cst_104 : f32 to vector<16x1xf32>
    %183 = arith.divf %181, %182 : vector<16x1xf32>
    %184 = vector.broadcast %176 : vector<16x1xf32> to vector<16x32xf32>
    %185 = arith.subf %172, %184 : vector<16x32xf32>
    %cst_105 = arith.constant 9.99999996E-13 : f32
    %186 = vector.broadcast %cst_105 : f32 to vector<16x1xf32>
    %187 = arith.addf %183, %186 : vector<16x1xf32>
    %188 = math.rsqrt %187 : vector<16x1xf32>
    %189 = vector.broadcast %188 : vector<16x1xf32> to vector<16x32xf32>
    %190 = arith.mulf %185, %189 : vector<16x32xf32>
    %191 = vector.broadcast %13 : vector<1x32xf32> to vector<16x32xf32>
    %192 = arith.mulf %190, %191 : vector<16x32xf32>
    %193 = vector.broadcast %14 : vector<1x32xf32> to vector<16x32xf32>
    %194 = arith.addf %192, %193 : vector<16x32xf32>
    %c0_106 = arith.constant 0 : index
    %c0_107 = arith.constant 0 : index
    %c0_108 = arith.constant 0 : index
    %195 = vector.load %arg6[%c0_106, %c0_107, %c0_108] : memref<2x32x64xf32, #tpu.memory_space<vmem>>, vector<1x32x64xf32>
    %196 = vector.shape_cast %195 : vector<1x32x64xf32> to vector<32x64xf32>
    %cst_109 = arith.constant dense<0.000000e+00> : vector<16x64xf32>
    %197 = tpu.matmul %194, %196, %cst_109 {dimension_numbers = #tpu.dot_dimension_numbers<[1], [0], [0], [1], [0, 0, 1, 1], [], []>} : vector<16x32xf32>, vector<32x64xf32>, vector<16x64xf32> -> vector<16x64xf32>
    %c0_110 = arith.constant 0 : index
    %c0_111 = arith.constant 0 : index
    %c0_112 = arith.constant 0 : index
    %198 = vector.load %arg7[%c0_110, %c0_111, %c0_112] : memref<2x1x64xf32, #tpu.memory_space<vmem>>, vector<1x1x64xf32>
    %199 = vector.shape_cast %198 : vector<1x1x64xf32> to vector<1x64xf32>
    %200 = vector.broadcast %199 : vector<1x64xf32> to vector<16x64xf32>
    %201 = arith.addf %197, %200 : vector<16x64xf32>
    %cst_113 = arith.constant 5.000000e-01 : f32
    %202 = vector.broadcast %cst_113 : f32 to vector<16x64xf32>
    %203 = arith.mulf %202, %201 : vector<16x64xf32>
    %cst_114 = arith.constant 2.000000e+00 : f32
    %204 = math.sqrt %cst_114 : f32
    %205 = vector.broadcast %204 : f32 to vector<16x64xf32>
    %206 = arith.divf %201, %205 : vector<16x64xf32>
    %207 = math.erf %206 : vector<16x64xf32>
    %cst_115 = arith.constant 1.000000e+00 : f32
    %208 = vector.broadcast %cst_115 : f32 to vector<16x64xf32>
    %209 = arith.addf %208, %207 : vector<16x64xf32>
    %210 = arith.mulf %203, %209 : vector<16x64xf32>
    %c0_116 = arith.constant 0 : index
    %c0_117 = arith.constant 0 : index
    %c0_118 = arith.constant 0 : index
    %211 = vector.load %arg8[%c0_116, %c0_117, %c0_118] : memref<2x64x32xf32, #tpu.memory_space<vmem>>, vector<1x64x32xf32>
    %212 = vector.shape_cast %211 : vector<1x64x32xf32> to vector<64x32xf32>
    %cst_119 = arith.constant dense<0.000000e+00> : vector<16x32xf32>
    %213 = tpu.matmul %210, %212, %cst_119 {dimension_numbers = #tpu.dot_dimension_numbers<[1], [0], [0], [1], [0, 0, 1, 1], [], []>} : vector<16x64xf32>, vector<64x32xf32>, vector<16x32xf32> -> vector<16x32xf32>
    %214 = vector.broadcast %15 : vector<1x32xf32> to vector<16x32xf32>
    %215 = arith.addf %213, %214 : vector<16x32xf32>
    %216 = arith.addf %194, %215 : vector<16x32xf32>
    %cst_120 = arith.constant dense<0.000000e+00> : vector<16xf32>
    %217 = vector.multi_reduction <add>, %216, %cst_120 [1] : vector<16x32xf32> to vector<16xf32>
    %218 = vector.shape_cast %217 : vector<16xf32> to vector<16x1xf32>
    %cst_121 = arith.constant 3.200000e+01 : f32
    %219 = vector.broadcast %cst_121 : f32 to vector<16x1xf32>
    %220 = arith.divf %218, %219 : vector<16x1xf32>
    %221 = vector.broadcast %220 : vector<16x1xf32> to vector<16x32xf32>
    %222 = arith.subf %216, %221 : vector<16x32xf32>
    %223 = arith.mulf %222, %222 : vector<16x32xf32>
    %cst_122 = arith.constant dense<0.000000e+00> : vector<16xf32>
    %224 = vector.multi_reduction <add>, %223, %cst_122 [1] : vector<16x32xf32> to vector<16xf32>
    %225 = vector.shape_cast %224 : vector<16xf32> to vector<16x1xf32>
    %cst_123 = arith.constant 3.200000e+01 : f32
    %226 = vector.broadcast %cst_123 : f32 to vector<16x1xf32>
    %227 = arith.divf %225, %226 : vector<16x1xf32>
    %228 = vector.broadcast %220 : vector<16x1xf32> to vector<16x32xf32>
    %229 = arith.subf %216, %228 : vector<16x32xf32>
    %cst_124 = arith.constant 9.99999996E-13 : f32
    %230 = vector.broadcast %cst_124 : f32 to vector<16x1xf32>
    %231 = arith.addf %227, %230 : vector<16x1xf32>
    %232 = math.rsqrt %231 : vector<16x1xf32>
    %233 = vector.broadcast %232 : vector<16x1xf32> to vector<16x32xf32>
    %234 = arith.mulf %229, %233 : vector<16x32xf32>
    %235 = vector.broadcast %16 : vector<1x32xf32> to vector<16x32xf32>
    %236 = arith.mulf %234, %235 : vector<16x32xf32>
    %237 = vector.broadcast %17 : vector<1x32xf32> to vector<16x32xf32>
    %238 = arith.addf %236, %237 : vector<16x32xf32>
    %c1_125 = arith.constant 1 : index
    %c0_126 = arith.constant 0 : index
    %c0_127 = arith.constant 0 : index
    %239 = vector.load %arg9[%c1_125, %c0_126, %c0_127] : memref<2x6x32xf32, #tpu.memory_space<vmem>>, vector<1x6x32xf32>
    %240 = vector.shape_cast %239 : vector<1x6x32xf32> to vector<6x32xf32>
    %241 = vector.extract_strided_slice %240 {offsets = [0, 0], sizes = [1, 32], strides = [1, 1]} : vector<6x32xf32> to vector<1x32xf32>
    %242 = vector.extract_strided_slice %240 {offsets = [1, 0], sizes = [1, 32], strides = [1, 1]} : vector<6x32xf32> to vector<1x32xf32>
    %243 = vector.extract_strided_slice %240 {offsets = [2, 0], sizes = [1, 32], strides = [1, 1]} : vector<6x32xf32> to vector<1x32xf32>
    %244 = vector.extract_strided_slice %240 {offsets = [3, 0], sizes = [1, 32], strides = [1, 1]} : vector<6x32xf32> to vector<1x32xf32>
    %245 = vector.extract_strided_slice %240 {offsets = [4, 0], sizes = [1, 32], strides = [1, 1]} : vector<6x32xf32> to vector<1x32xf32>
    %246 = vector.extract_strided_slice %240 {offsets = [5, 0], sizes = [1, 32], strides = [1, 1]} : vector<6x32xf32> to vector<1x32xf32>
    %c12 = arith.constant 12 : index
    %c0_128 = arith.constant 0 : index
    %c0_129 = arith.constant 0 : index
    %247 = vector.load %arg3[%c12, %c0_128, %c0_129] : memref<24x32x8xf32, #tpu.memory_space<vmem>>, vector<1x32x8xf32>
    %248 = vector.shape_cast %247 : vector<1x32x8xf32> to vector<32x8xf32>
    %cst_130 = arith.constant dense<0.000000e+00> : vector<16x8xf32>
    %249 = tpu.matmul %238, %248, %cst_130 {dimension_numbers = #tpu.dot_dimension_numbers<[1], [0], [0], [1], [0, 0, 1, 1], [], []>} : vector<16x32xf32>, vector<32x8xf32>, vector<16x8xf32> -> vector<16x8xf32>
    %c12_131 = arith.constant 12 : index
    %c0_132 = arith.constant 0 : index
    %c0_133 = arith.constant 0 : index
    %250 = vector.load %arg4[%c12_131, %c0_132, %c0_133] : memref<24x1x8xf32, #tpu.memory_space<vmem>>, vector<1x1x8xf32>
    %251 = vector.shape_cast %250 : vector<1x1x8xf32> to vector<1x8xf32>
    %252 = vector.broadcast %251 : vector<1x8xf32> to vector<16x8xf32>
    %253 = arith.addf %249, %252 : vector<16x8xf32>
    %254 = vector.shape_cast %253 : vector<16x8xf32> to vector<2x8x8xf32>
    %c16 = arith.constant 16 : index
    %c0_134 = arith.constant 0 : index
    %c0_135 = arith.constant 0 : index
    %255 = vector.load %arg3[%c16, %c0_134, %c0_135] : memref<24x32x8xf32, #tpu.memory_space<vmem>>, vector<1x32x8xf32>
    %256 = vector.shape_cast %255 : vector<1x32x8xf32> to vector<32x8xf32>
    %cst_136 = arith.constant dense<0.000000e+00> : vector<16x8xf32>
    %257 = tpu.matmul %238, %256, %cst_136 {dimension_numbers = #tpu.dot_dimension_numbers<[1], [0], [0], [1], [0, 0, 1, 1], [], []>} : vector<16x32xf32>, vector<32x8xf32>, vector<16x8xf32> -> vector<16x8xf32>
    %c16_137 = arith.constant 16 : index
    %c0_138 = arith.constant 0 : index
    %c0_139 = arith.constant 0 : index
    %258 = vector.load %arg4[%c16_137, %c0_138, %c0_139] : memref<24x1x8xf32, #tpu.memory_space<vmem>>, vector<1x1x8xf32>
    %259 = vector.shape_cast %258 : vector<1x1x8xf32> to vector<1x8xf32>
    %260 = vector.broadcast %259 : vector<1x8xf32> to vector<16x8xf32>
    %261 = arith.addf %257, %260 : vector<16x8xf32>
    %262 = vector.shape_cast %261 : vector<16x8xf32> to vector<2x8x8xf32>
    %c20 = arith.constant 20 : index
    %c0_140 = arith.constant 0 : index
    %c0_141 = arith.constant 0 : index
    %263 = vector.load %arg3[%c20, %c0_140, %c0_141] : memref<24x32x8xf32, #tpu.memory_space<vmem>>, vector<1x32x8xf32>
    %264 = vector.shape_cast %263 : vector<1x32x8xf32> to vector<32x8xf32>
    %cst_142 = arith.constant dense<0.000000e+00> : vector<16x8xf32>
    %265 = tpu.matmul %238, %264, %cst_142 {dimension_numbers = #tpu.dot_dimension_numbers<[1], [0], [0], [1], [0, 0, 1, 1], [], []>} : vector<16x32xf32>, vector<32x8xf32>, vector<16x8xf32> -> vector<16x8xf32>
    %c20_143 = arith.constant 20 : index
    %c0_144 = arith.constant 0 : index
    %c0_145 = arith.constant 0 : index
    %266 = vector.load %arg4[%c20_143, %c0_144, %c0_145] : memref<24x1x8xf32, #tpu.memory_space<vmem>>, vector<1x1x8xf32>
    %267 = vector.shape_cast %266 : vector<1x1x8xf32> to vector<1x8xf32>
    %268 = vector.broadcast %267 : vector<1x8xf32> to vector<16x8xf32>
    %269 = arith.addf %265, %268 : vector<16x8xf32>
    %270 = vector.shape_cast %269 : vector<16x8xf32> to vector<2x8x8xf32>
    "tpu.trace_start"() <{level = 10 : i32, message = "bqd,bkd->bqk"}> : () -> ()
    %cst_146 = arith.constant dense<0.000000e+00> : vector<2x8x8xf32>
    %271 = tpu.matmul %254, %262, %cst_146 {dimension_numbers = #tpu.dot_dimension_numbers<[2], [2], [1], [1], [0, 0, 0, 1, 1, 1], [0], [0]>} : vector<2x8x8xf32>, vector<2x8x8xf32>, vector<2x8x8xf32> -> vector<2x8x8xf32>
    "tpu.trace_stop"() : () -> ()
    %cst_147 = arith.constant dense<0xFF800000> : vector<2x8xf32>
    %272 = vector.multi_reduction <maximumf>, %271, %cst_147 [2] : vector<2x8x8xf32> to vector<2x8xf32>
    %273 = vector.shape_cast %272 : vector<2x8xf32> to vector<2x8x1xf32>
    %274 = vector.broadcast %273 : vector<2x8x1xf32> to vector<2x8x8xf32>
    %275 = arith.subf %271, %274 : vector<2x8x8xf32>
    %276 = math.exp %275 : vector<2x8x8xf32>
    %cst_148 = arith.constant dense<0.000000e+00> : vector<2x8xf32>
    %277 = vector.multi_reduction <add>, %276, %cst_148 [2] : vector<2x8x8xf32> to vector<2x8xf32>
    %278 = vector.shape_cast %277 : vector<2x8xf32> to vector<2x8x1xf32>
    %279 = tpu.reciprocal %278 {approx = true} : vector<2x8x1xf32> -> vector<2x8x1xf32>
    %280 = vector.broadcast %279 : vector<2x8x1xf32> to vector<2x8x8xf32>
    %281 = arith.mulf %276, %280 : vector<2x8x8xf32>
    "tpu.trace_start"() <{level = 10 : i32, message = "bqk,bkd->bqd"}> : () -> ()
    %cst_149 = arith.constant dense<0.000000e+00> : vector<2x8x8xf32>
    %282 = tpu.matmul %281, %270, %cst_149 {dimension_numbers = #tpu.dot_dimension_numbers<[2], [1], [1], [2], [0, 0, 0, 1, 1, 2], [0], [0]>} : vector<2x8x8xf32>, vector<2x8x8xf32>, vector<2x8x8xf32> -> vector<2x8x8xf32>
    "tpu.trace_stop"() : () -> ()
    %283 = vector.shape_cast %282 : vector<2x8x8xf32> to vector<16x8xf32>
    %c13 = arith.constant 13 : index
    %c0_150 = arith.constant 0 : index
    %c0_151 = arith.constant 0 : index
    %284 = vector.load %arg3[%c13, %c0_150, %c0_151] : memref<24x32x8xf32, #tpu.memory_space<vmem>>, vector<1x32x8xf32>
    %285 = vector.shape_cast %284 : vector<1x32x8xf32> to vector<32x8xf32>
    %cst_152 = arith.constant dense<0.000000e+00> : vector<16x8xf32>
    %286 = tpu.matmul %238, %285, %cst_152 {dimension_numbers = #tpu.dot_dimension_numbers<[1], [0], [0], [1], [0, 0, 1, 1], [], []>} : vector<16x32xf32>, vector<32x8xf32>, vector<16x8xf32> -> vector<16x8xf32>
    %c13_153 = arith.constant 13 : index
    %c0_154 = arith.constant 0 : index
    %c0_155 = arith.constant 0 : index
    %287 = vector.load %arg4[%c13_153, %c0_154, %c0_155] : memref<24x1x8xf32, #tpu.memory_space<vmem>>, vector<1x1x8xf32>
    %288 = vector.shape_cast %287 : vector<1x1x8xf32> to vector<1x8xf32>
    %289 = vector.broadcast %288 : vector<1x8xf32> to vector<16x8xf32>
    %290 = arith.addf %286, %289 : vector<16x8xf32>
    %291 = vector.shape_cast %290 : vector<16x8xf32> to vector<2x8x8xf32>
    %c17 = arith.constant 17 : index
    %c0_156 = arith.constant 0 : index
    %c0_157 = arith.constant 0 : index
    %292 = vector.load %arg3[%c17, %c0_156, %c0_157] : memref<24x32x8xf32, #tpu.memory_space<vmem>>, vector<1x32x8xf32>
    %293 = vector.shape_cast %292 : vector<1x32x8xf32> to vector<32x8xf32>
    %cst_158 = arith.constant dense<0.000000e+00> : vector<16x8xf32>
    %294 = tpu.matmul %238, %293, %cst_158 {dimension_numbers = #tpu.dot_dimension_numbers<[1], [0], [0], [1], [0, 0, 1, 1], [], []>} : vector<16x32xf32>, vector<32x8xf32>, vector<16x8xf32> -> vector<16x8xf32>
    %c17_159 = arith.constant 17 : index
    %c0_160 = arith.constant 0 : index
    %c0_161 = arith.constant 0 : index
    %295 = vector.load %arg4[%c17_159, %c0_160, %c0_161] : memref<24x1x8xf32, #tpu.memory_space<vmem>>, vector<1x1x8xf32>
    %296 = vector.shape_cast %295 : vector<1x1x8xf32> to vector<1x8xf32>
    %297 = vector.broadcast %296 : vector<1x8xf32> to vector<16x8xf32>
    %298 = arith.addf %294, %297 : vector<16x8xf32>
    %299 = vector.shape_cast %298 : vector<16x8xf32> to vector<2x8x8xf32>
    %c21 = arith.constant 21 : index
    %c0_162 = arith.constant 0 : index
    %c0_163 = arith.constant 0 : index
    %300 = vector.load %arg3[%c21, %c0_162, %c0_163] : memref<24x32x8xf32, #tpu.memory_space<vmem>>, vector<1x32x8xf32>
    %301 = vector.shape_cast %300 : vector<1x32x8xf32> to vector<32x8xf32>
    %cst_164 = arith.constant dense<0.000000e+00> : vector<16x8xf32>
    %302 = tpu.matmul %238, %301, %cst_164 {dimension_numbers = #tpu.dot_dimension_numbers<[1], [0], [0], [1], [0, 0, 1, 1], [], []>} : vector<16x32xf32>, vector<32x8xf32>, vector<16x8xf32> -> vector<16x8xf32>
    %c21_165 = arith.constant 21 : index
    %c0_166 = arith.constant 0 : index
    %c0_167 = arith.constant 0 : index
    %303 = vector.load %arg4[%c21_165, %c0_166, %c0_167] : memref<24x1x8xf32, #tpu.memory_space<vmem>>, vector<1x1x8xf32>
    %304 = vector.shape_cast %303 : vector<1x1x8xf32> to vector<1x8xf32>
    %305 = vector.broadcast %304 : vector<1x8xf32> to vector<16x8xf32>
    %306 = arith.addf %302, %305 : vector<16x8xf32>
    %307 = vector.shape_cast %306 : vector<16x8xf32> to vector<2x8x8xf32>
    "tpu.trace_start"() <{level = 10 : i32, message = "bqd,bkd->bqk"}> : () -> ()
    %cst_168 = arith.constant dense<0.000000e+00> : vector<2x8x8xf32>
    %308 = tpu.matmul %291, %299, %cst_168 {dimension_numbers = #tpu.dot_dimension_numbers<[2], [2], [1], [1], [0, 0, 0, 1, 1, 1], [0], [0]>} : vector<2x8x8xf32>, vector<2x8x8xf32>, vector<2x8x8xf32> -> vector<2x8x8xf32>
    "tpu.trace_stop"() : () -> ()
    %cst_169 = arith.constant dense<0xFF800000> : vector<2x8xf32>
    %309 = vector.multi_reduction <maximumf>, %308, %cst_169 [2] : vector<2x8x8xf32> to vector<2x8xf32>
    %310 = vector.shape_cast %309 : vector<2x8xf32> to vector<2x8x1xf32>
    %311 = vector.broadcast %310 : vector<2x8x1xf32> to vector<2x8x8xf32>
    %312 = arith.subf %308, %311 : vector<2x8x8xf32>
    %313 = math.exp %312 : vector<2x8x8xf32>
    %cst_170 = arith.constant dense<0.000000e+00> : vector<2x8xf32>
    %314 = vector.multi_reduction <add>, %313, %cst_170 [2] : vector<2x8x8xf32> to vector<2x8xf32>
    %315 = vector.shape_cast %314 : vector<2x8xf32> to vector<2x8x1xf32>
    %316 = tpu.reciprocal %315 {approx = true} : vector<2x8x1xf32> -> vector<2x8x1xf32>
    %317 = vector.broadcast %316 : vector<2x8x1xf32> to vector<2x8x8xf32>
    %318 = arith.mulf %313, %317 : vector<2x8x8xf32>
    "tpu.trace_start"() <{level = 10 : i32, message = "bqk,bkd->bqd"}> : () -> ()
    %cst_171 = arith.constant dense<0.000000e+00> : vector<2x8x8xf32>
    %319 = tpu.matmul %318, %307, %cst_171 {dimension_numbers = #tpu.dot_dimension_numbers<[2], [1], [1], [2], [0, 0, 0, 1, 1, 2], [0], [0]>} : vector<2x8x8xf32>, vector<2x8x8xf32>, vector<2x8x8xf32> -> vector<2x8x8xf32>
    "tpu.trace_stop"() : () -> ()
    %320 = vector.shape_cast %319 : vector<2x8x8xf32> to vector<16x8xf32>
    %c14 = arith.constant 14 : index
    %c0_172 = arith.constant 0 : index
    %c0_173 = arith.constant 0 : index
    %321 = vector.load %arg3[%c14, %c0_172, %c0_173] : memref<24x32x8xf32, #tpu.memory_space<vmem>>, vector<1x32x8xf32>
    %322 = vector.shape_cast %321 : vector<1x32x8xf32> to vector<32x8xf32>
    %cst_174 = arith.constant dense<0.000000e+00> : vector<16x8xf32>
    %323 = tpu.matmul %238, %322, %cst_174 {dimension_numbers = #tpu.dot_dimension_numbers<[1], [0], [0], [1], [0, 0, 1, 1], [], []>} : vector<16x32xf32>, vector<32x8xf32>, vector<16x8xf32> -> vector<16x8xf32>
    %c14_175 = arith.constant 14 : index
    %c0_176 = arith.constant 0 : index
    %c0_177 = arith.constant 0 : index
    %324 = vector.load %arg4[%c14_175, %c0_176, %c0_177] : memref<24x1x8xf32, #tpu.memory_space<vmem>>, vector<1x1x8xf32>
    %325 = vector.shape_cast %324 : vector<1x1x8xf32> to vector<1x8xf32>
    %326 = vector.broadcast %325 : vector<1x8xf32> to vector<16x8xf32>
    %327 = arith.addf %323, %326 : vector<16x8xf32>
    %328 = vector.shape_cast %327 : vector<16x8xf32> to vector<2x8x8xf32>
    %c18 = arith.constant 18 : index
    %c0_178 = arith.constant 0 : index
    %c0_179 = arith.constant 0 : index
    %329 = vector.load %arg3[%c18, %c0_178, %c0_179] : memref<24x32x8xf32, #tpu.memory_space<vmem>>, vector<1x32x8xf32>
    %330 = vector.shape_cast %329 : vector<1x32x8xf32> to vector<32x8xf32>
    %cst_180 = arith.constant dense<0.000000e+00> : vector<16x8xf32>
    %331 = tpu.matmul %238, %330, %cst_180 {dimension_numbers = #tpu.dot_dimension_numbers<[1], [0], [0], [1], [0, 0, 1, 1], [], []>} : vector<16x32xf32>, vector<32x8xf32>, vector<16x8xf32> -> vector<16x8xf32>
    %c18_181 = arith.constant 18 : index
    %c0_182 = arith.constant 0 : index
    %c0_183 = arith.constant 0 : index
    %332 = vector.load %arg4[%c18_181, %c0_182, %c0_183] : memref<24x1x8xf32, #tpu.memory_space<vmem>>, vector<1x1x8xf32>
    %333 = vector.shape_cast %332 : vector<1x1x8xf32> to vector<1x8xf32>
    %334 = vector.broadcast %333 : vector<1x8xf32> to vector<16x8xf32>
    %335 = arith.addf %331, %334 : vector<16x8xf32>
    %336 = vector.shape_cast %335 : vector<16x8xf32> to vector<2x8x8xf32>
    %c22 = arith.constant 22 : index
    %c0_184 = arith.constant 0 : index
    %c0_185 = arith.constant 0 : index
    %337 = vector.load %arg3[%c22, %c0_184, %c0_185] : memref<24x32x8xf32, #tpu.memory_space<vmem>>, vector<1x32x8xf32>
    %338 = vector.shape_cast %337 : vector<1x32x8xf32> to vector<32x8xf32>
    %cst_186 = arith.constant dense<0.000000e+00> : vector<16x8xf32>
    %339 = tpu.matmul %238, %338, %cst_186 {dimension_numbers = #tpu.dot_dimension_numbers<[1], [0], [0], [1], [0, 0, 1, 1], [], []>} : vector<16x32xf32>, vector<32x8xf32>, vector<16x8xf32> -> vector<16x8xf32>
    %c22_187 = arith.constant 22 : index
    %c0_188 = arith.constant 0 : index
    %c0_189 = arith.constant 0 : index
    %340 = vector.load %arg4[%c22_187, %c0_188, %c0_189] : memref<24x1x8xf32, #tpu.memory_space<vmem>>, vector<1x1x8xf32>
    %341 = vector.shape_cast %340 : vector<1x1x8xf32> to vector<1x8xf32>
    %342 = vector.broadcast %341 : vector<1x8xf32> to vector<16x8xf32>
    %343 = arith.addf %339, %342 : vector<16x8xf32>
    %344 = vector.shape_cast %343 : vector<16x8xf32> to vector<2x8x8xf32>
    "tpu.trace_start"() <{level = 10 : i32, message = "bqd,bkd->bqk"}> : () -> ()
    %cst_190 = arith.constant dense<0.000000e+00> : vector<2x8x8xf32>
    %345 = tpu.matmul %328, %336, %cst_190 {dimension_numbers = #tpu.dot_dimension_numbers<[2], [2], [1], [1], [0, 0, 0, 1, 1, 1], [0], [0]>} : vector<2x8x8xf32>, vector<2x8x8xf32>, vector<2x8x8xf32> -> vector<2x8x8xf32>
    "tpu.trace_stop"() : () -> ()
    %cst_191 = arith.constant dense<0xFF800000> : vector<2x8xf32>
    %346 = vector.multi_reduction <maximumf>, %345, %cst_191 [2] : vector<2x8x8xf32> to vector<2x8xf32>
    %347 = vector.shape_cast %346 : vector<2x8xf32> to vector<2x8x1xf32>
    %348 = vector.broadcast %347 : vector<2x8x1xf32> to vector<2x8x8xf32>
    %349 = arith.subf %345, %348 : vector<2x8x8xf32>
    %350 = math.exp %349 : vector<2x8x8xf32>
    %cst_192 = arith.constant dense<0.000000e+00> : vector<2x8xf32>
    %351 = vector.multi_reduction <add>, %350, %cst_192 [2] : vector<2x8x8xf32> to vector<2x8xf32>
    %352 = vector.shape_cast %351 : vector<2x8xf32> to vector<2x8x1xf32>
    %353 = tpu.reciprocal %352 {approx = true} : vector<2x8x1xf32> -> vector<2x8x1xf32>
    %354 = vector.broadcast %353 : vector<2x8x1xf32> to vector<2x8x8xf32>
    %355 = arith.mulf %350, %354 : vector<2x8x8xf32>
    "tpu.trace_start"() <{level = 10 : i32, message = "bqk,bkd->bqd"}> : () -> ()
    %cst_193 = arith.constant dense<0.000000e+00> : vector<2x8x8xf32>
    %356 = tpu.matmul %355, %344, %cst_193 {dimension_numbers = #tpu.dot_dimension_numbers<[2], [1], [1], [2], [0, 0, 0, 1, 1, 2], [0], [0]>} : vector<2x8x8xf32>, vector<2x8x8xf32>, vector<2x8x8xf32> -> vector<2x8x8xf32>
    "tpu.trace_stop"() : () -> ()
    %357 = vector.shape_cast %356 : vector<2x8x8xf32> to vector<16x8xf32>
    %c15 = arith.constant 15 : index
    %c0_194 = arith.constant 0 : index
    %c0_195 = arith.constant 0 : index
    %358 = vector.load %arg3[%c15, %c0_194, %c0_195] : memref<24x32x8xf32, #tpu.memory_space<vmem>>, vector<1x32x8xf32>
    %359 = vector.shape_cast %358 : vector<1x32x8xf32> to vector<32x8xf32>
    %cst_196 = arith.constant dense<0.000000e+00> : vector<16x8xf32>
    %360 = tpu.matmul %238, %359, %cst_196 {dimension_numbers = #tpu.dot_dimension_numbers<[1], [0], [0], [1], [0, 0, 1, 1], [], []>} : vector<16x32xf32>, vector<32x8xf32>, vector<16x8xf32> -> vector<16x8xf32>
    %c15_197 = arith.constant 15 : index
    %c0_198 = arith.constant 0 : index
    %c0_199 = arith.constant 0 : index
    %361 = vector.load %arg4[%c15_197, %c0_198, %c0_199] : memref<24x1x8xf32, #tpu.memory_space<vmem>>, vector<1x1x8xf32>
    %362 = vector.shape_cast %361 : vector<1x1x8xf32> to vector<1x8xf32>
    %363 = vector.broadcast %362 : vector<1x8xf32> to vector<16x8xf32>
    %364 = arith.addf %360, %363 : vector<16x8xf32>
    %365 = vector.shape_cast %364 : vector<16x8xf32> to vector<2x8x8xf32>
    %c19 = arith.constant 19 : index
    %c0_200 = arith.constant 0 : index
    %c0_201 = arith.constant 0 : index
    %366 = vector.load %arg3[%c19, %c0_200, %c0_201] : memref<24x32x8xf32, #tpu.memory_space<vmem>>, vector<1x32x8xf32>
    %367 = vector.shape_cast %366 : vector<1x32x8xf32> to vector<32x8xf32>
    %cst_202 = arith.constant dense<0.000000e+00> : vector<16x8xf32>
    %368 = tpu.matmul %238, %367, %cst_202 {dimension_numbers = #tpu.dot_dimension_numbers<[1], [0], [0], [1], [0, 0, 1, 1], [], []>} : vector<16x32xf32>, vector<32x8xf32>, vector<16x8xf32> -> vector<16x8xf32>
    %c19_203 = arith.constant 19 : index
    %c0_204 = arith.constant 0 : index
    %c0_205 = arith.constant 0 : index
    %369 = vector.load %arg4[%c19_203, %c0_204, %c0_205] : memref<24x1x8xf32, #tpu.memory_space<vmem>>, vector<1x1x8xf32>
    %370 = vector.shape_cast %369 : vector<1x1x8xf32> to vector<1x8xf32>
    %371 = vector.broadcast %370 : vector<1x8xf32> to vector<16x8xf32>
    %372 = arith.addf %368, %371 : vector<16x8xf32>
    %373 = vector.shape_cast %372 : vector<16x8xf32> to vector<2x8x8xf32>
    %c23 = arith.constant 23 : index
    %c0_206 = arith.constant 0 : index
    %c0_207 = arith.constant 0 : index
    %374 = vector.load %arg3[%c23, %c0_206, %c0_207] : memref<24x32x8xf32, #tpu.memory_space<vmem>>, vector<1x32x8xf32>
    %375 = vector.shape_cast %374 : vector<1x32x8xf32> to vector<32x8xf32>
    %cst_208 = arith.constant dense<0.000000e+00> : vector<16x8xf32>
    %376 = tpu.matmul %238, %375, %cst_208 {dimension_numbers = #tpu.dot_dimension_numbers<[1], [0], [0], [1], [0, 0, 1, 1], [], []>} : vector<16x32xf32>, vector<32x8xf32>, vector<16x8xf32> -> vector<16x8xf32>
    %c23_209 = arith.constant 23 : index
    %c0_210 = arith.constant 0 : index
    %c0_211 = arith.constant 0 : index
    %377 = vector.load %arg4[%c23_209, %c0_210, %c0_211] : memref<24x1x8xf32, #tpu.memory_space<vmem>>, vector<1x1x8xf32>
    %378 = vector.shape_cast %377 : vector<1x1x8xf32> to vector<1x8xf32>
    %379 = vector.broadcast %378 : vector<1x8xf32> to vector<16x8xf32>
    %380 = arith.addf %376, %379 : vector<16x8xf32>
    %381 = vector.shape_cast %380 : vector<16x8xf32> to vector<2x8x8xf32>
    "tpu.trace_start"() <{level = 10 : i32, message = "bqd,bkd->bqk"}> : () -> ()
    %cst_212 = arith.constant dense<0.000000e+00> : vector<2x8x8xf32>
    %382 = tpu.matmul %365, %373, %cst_212 {dimension_numbers = #tpu.dot_dimension_numbers<[2], [2], [1], [1], [0, 0, 0, 1, 1, 1], [0], [0]>} : vector<2x8x8xf32>, vector<2x8x8xf32>, vector<2x8x8xf32> -> vector<2x8x8xf32>
    "tpu.trace_stop"() : () -> ()
    %cst_213 = arith.constant dense<0xFF800000> : vector<2x8xf32>
    %383 = vector.multi_reduction <maximumf>, %382, %cst_213 [2] : vector<2x8x8xf32> to vector<2x8xf32>
    %384 = vector.shape_cast %383 : vector<2x8xf32> to vector<2x8x1xf32>
    %385 = vector.broadcast %384 : vector<2x8x1xf32> to vector<2x8x8xf32>
    %386 = arith.subf %382, %385 : vector<2x8x8xf32>
    %387 = math.exp %386 : vector<2x8x8xf32>
    %cst_214 = arith.constant dense<0.000000e+00> : vector<2x8xf32>
    %388 = vector.multi_reduction <add>, %387, %cst_214 [2] : vector<2x8x8xf32> to vector<2x8xf32>
    %389 = vector.shape_cast %388 : vector<2x8xf32> to vector<2x8x1xf32>
    %390 = tpu.reciprocal %389 {approx = true} : vector<2x8x1xf32> -> vector<2x8x1xf32>
    %391 = vector.broadcast %390 : vector<2x8x1xf32> to vector<2x8x8xf32>
    %392 = arith.mulf %387, %391 : vector<2x8x8xf32>
    "tpu.trace_start"() <{level = 10 : i32, message = "bqk,bkd->bqd"}> : () -> ()
    %cst_215 = arith.constant dense<0.000000e+00> : vector<2x8x8xf32>
    %393 = tpu.matmul %392, %381, %cst_215 {dimension_numbers = #tpu.dot_dimension_numbers<[2], [1], [1], [2], [0, 0, 0, 1, 1, 2], [0], [0]>} : vector<2x8x8xf32>, vector<2x8x8xf32>, vector<2x8x8xf32> -> vector<2x8x8xf32>
    "tpu.trace_stop"() : () -> ()
    %394 = vector.shape_cast %393 : vector<2x8x8xf32> to vector<16x8xf32>
    %395 = tpu.concatenate %283, %320, %357, %394 in 1 : vector<16x8xf32>, vector<16x8xf32>, vector<16x8xf32>, vector<16x8xf32> -> vector<16x32xf32>
    %c1_216 = arith.constant 1 : index
    %c0_217 = arith.constant 0 : index
    %c0_218 = arith.constant 0 : index
    %396 = vector.load %arg5[%c1_216, %c0_217, %c0_218] : memref<2x32x32xf32, #tpu.memory_space<vmem>>, vector<1x32x32xf32>
    %397 = vector.shape_cast %396 : vector<1x32x32xf32> to vector<32x32xf32>
    %cst_219 = arith.constant dense<0.000000e+00> : vector<16x32xf32>
    %398 = tpu.matmul %395, %397, %cst_219 {dimension_numbers = #tpu.dot_dimension_numbers<[1], [0], [0], [1], [0, 0, 1, 1], [], []>} : vector<16x32xf32>, vector<32x32xf32>, vector<16x32xf32> -> vector<16x32xf32>
    %399 = vector.broadcast %241 : vector<1x32xf32> to vector<16x32xf32>
    %400 = arith.addf %398, %399 : vector<16x32xf32>
    %401 = arith.addf %238, %400 : vector<16x32xf32>
    %cst_220 = arith.constant dense<0.000000e+00> : vector<16xf32>
    %402 = vector.multi_reduction <add>, %401, %cst_220 [1] : vector<16x32xf32> to vector<16xf32>
    %403 = vector.shape_cast %402 : vector<16xf32> to vector<16x1xf32>
    %cst_221 = arith.constant 3.200000e+01 : f32
    %404 = vector.broadcast %cst_221 : f32 to vector<16x1xf32>
    %405 = arith.divf %403, %404 : vector<16x1xf32>
    %406 = vector.broadcast %405 : vector<16x1xf32> to vector<16x32xf32>
    %407 = arith.subf %401, %406 : vector<16x32xf32>
    %408 = arith.mulf %407, %407 : vector<16x32xf32>
    %cst_222 = arith.constant dense<0.000000e+00> : vector<16xf32>
    %409 = vector.multi_reduction <add>, %408, %cst_222 [1] : vector<16x32xf32> to vector<16xf32>
    %410 = vector.shape_cast %409 : vector<16xf32> to vector<16x1xf32>
    %cst_223 = arith.constant 3.200000e+01 : f32
    %411 = vector.broadcast %cst_223 : f32 to vector<16x1xf32>
    %412 = arith.divf %410, %411 : vector<16x1xf32>
    %413 = vector.broadcast %405 : vector<16x1xf32> to vector<16x32xf32>
    %414 = arith.subf %401, %413 : vector<16x32xf32>
    %cst_224 = arith.constant 9.99999996E-13 : f32
    %415 = vector.broadcast %cst_224 : f32 to vector<16x1xf32>
    %416 = arith.addf %412, %415 : vector<16x1xf32>
    %417 = math.rsqrt %416 : vector<16x1xf32>
    %418 = vector.broadcast %417 : vector<16x1xf32> to vector<16x32xf32>
    %419 = arith.mulf %414, %418 : vector<16x32xf32>
    %420 = vector.broadcast %242 : vector<1x32xf32> to vector<16x32xf32>
    %421 = arith.mulf %419, %420 : vector<16x32xf32>
    %422 = vector.broadcast %243 : vector<1x32xf32> to vector<16x32xf32>
    %423 = arith.addf %421, %422 : vector<16x32xf32>
    %c1_225 = arith.constant 1 : index
    %c0_226 = arith.constant 0 : index
    %c0_227 = arith.constant 0 : index
    %424 = vector.load %arg6[%c1_225, %c0_226, %c0_227] : memref<2x32x64xf32, #tpu.memory_space<vmem>>, vector<1x32x64xf32>
    %425 = vector.shape_cast %424 : vector<1x32x64xf32> to vector<32x64xf32>
    %cst_228 = arith.constant dense<0.000000e+00> : vector<16x64xf32>
    %426 = tpu.matmul %423, %425, %cst_228 {dimension_numbers = #tpu.dot_dimension_numbers<[1], [0], [0], [1], [0, 0, 1, 1], [], []>} : vector<16x32xf32>, vector<32x64xf32>, vector<16x64xf32> -> vector<16x64xf32>
    %c1_229 = arith.constant 1 : index
    %c0_230 = arith.constant 0 : index
    %c0_231 = arith.constant 0 : index
    %427 = vector.load %arg7[%c1_229, %c0_230, %c0_231] : memref<2x1x64xf32, #tpu.memory_space<vmem>>, vector<1x1x64xf32>
    %428 = vector.shape_cast %427 : vector<1x1x64xf32> to vector<1x64xf32>
    %429 = vector.broadcast %428 : vector<1x64xf32> to vector<16x64xf32>
    %430 = arith.addf %426, %429 : vector<16x64xf32>
    %cst_232 = arith.constant 5.000000e-01 : f32
    %431 = vector.broadcast %cst_232 : f32 to vector<16x64xf32>
    %432 = arith.mulf %431, %430 : vector<16x64xf32>
    %cst_233 = arith.constant 2.000000e+00 : f32
    %433 = math.sqrt %cst_233 : f32
    %434 = vector.broadcast %433 : f32 to vector<16x64xf32>
    %435 = arith.divf %430, %434 : vector<16x64xf32>
    %436 = math.erf %435 : vector<16x64xf32>
    %cst_234 = arith.constant 1.000000e+00 : f32
    %437 = vector.broadcast %cst_234 : f32 to vector<16x64xf32>
    %438 = arith.addf %437, %436 : vector<16x64xf32>
    %439 = arith.mulf %432, %438 : vector<16x64xf32>
    %c1_235 = arith.constant 1 : index
    %c0_236 = arith.constant 0 : index
    %c0_237 = arith.constant 0 : index
    %440 = vector.load %arg8[%c1_235, %c0_236, %c0_237] : memref<2x64x32xf32, #tpu.memory_space<vmem>>, vector<1x64x32xf32>
    %441 = vector.shape_cast %440 : vector<1x64x32xf32> to vector<64x32xf32>
    %cst_238 = arith.constant dense<0.000000e+00> : vector<16x32xf32>
    %442 = tpu.matmul %439, %441, %cst_238 {dimension_numbers = #tpu.dot_dimension_numbers<[1], [0], [0], [1], [0, 0, 1, 1], [], []>} : vector<16x64xf32>, vector<64x32xf32>, vector<16x32xf32> -> vector<16x32xf32>
    %443 = vector.broadcast %244 : vector<1x32xf32> to vector<16x32xf32>
    %444 = arith.addf %442, %443 : vector<16x32xf32>
    %445 = arith.addf %423, %444 : vector<16x32xf32>
    %cst_239 = arith.constant dense<0.000000e+00> : vector<16xf32>
    %446 = vector.multi_reduction <add>, %445, %cst_239 [1] : vector<16x32xf32> to vector<16xf32>
    %447 = vector.shape_cast %446 : vector<16xf32> to vector<16x1xf32>
    %cst_240 = arith.constant 3.200000e+01 : f32
    %448 = vector.broadcast %cst_240 : f32 to vector<16x1xf32>
    %449 = arith.divf %447, %448 : vector<16x1xf32>
    %450 = vector.broadcast %449 : vector<16x1xf32> to vector<16x32xf32>
    %451 = arith.subf %445, %450 : vector<16x32xf32>
    %452 = arith.mulf %451, %451 : vector<16x32xf32>
    %cst_241 = arith.constant dense<0.000000e+00> : vector<16xf32>
    %453 = vector.multi_reduction <add>, %452, %cst_241 [1] : vector<16x32xf32> to vector<16xf32>
    %454 = vector.shape_cast %453 : vector<16xf32> to vector<16x1xf32>
    %cst_242 = arith.constant 3.200000e+01 : f32
    %455 = vector.broadcast %cst_242 : f32 to vector<16x1xf32>
    %456 = arith.divf %454, %455 : vector<16x1xf32>
    %457 = vector.broadcast %449 : vector<16x1xf32> to vector<16x32xf32>
    %458 = arith.subf %445, %457 : vector<16x32xf32>
    %cst_243 = arith.constant 9.99999996E-13 : f32
    %459 = vector.broadcast %cst_243 : f32 to vector<16x1xf32>
    %460 = arith.addf %456, %459 : vector<16x1xf32>
    %461 = math.rsqrt %460 : vector<16x1xf32>
    %462 = vector.broadcast %461 : vector<16x1xf32> to vector<16x32xf32>
    %463 = arith.mulf %458, %462 : vector<16x32xf32>
    %464 = vector.broadcast %245 : vector<1x32xf32> to vector<16x32xf32>
    %465 = arith.mulf %463, %464 : vector<16x32xf32>
    %466 = vector.broadcast %246 : vector<1x32xf32> to vector<16x32xf32>
    %467 = arith.addf %465, %466 : vector<16x32xf32>
    %468 = vector.shape_cast %467 : vector<16x32xf32> to vector<2x8x32xf32>
    %c0_244 = arith.constant 0 : index
    %c0_245 = arith.constant 0 : index
    %469 = vector.load %arg10[%c0_244, %c0_245] : memref<1x32xf32, #tpu.memory_space<vmem>>, vector<1x32xf32>
    %470 = vector.shape_cast %469 : vector<1x32xf32> to vector<1x1x32xf32>
    %471 = vector.broadcast %470 : vector<1x1x32xf32> to vector<2x8x32xf32>
    %472 = arith.mulf %468, %471 : vector<2x8x32xf32>
    %cst_246 = arith.constant dense<0.000000e+00> : vector<2x8xf32>
    %473 = vector.multi_reduction <add>, %472, %cst_246 [2] : vector<2x8x32xf32> to vector<2x8xf32>
    %474 = vector.shape_cast %473 : vector<2x8xf32> to vector<2x8x1xf32>
    %cst_247 = arith.constant dense<0xFF800000> : vector<2x1xf32>
    %475 = vector.multi_reduction <maximumf>, %474, %cst_247 [1] : vector<2x8x1xf32> to vector<2x1xf32>
    %476 = vector.shape_cast %475 : vector<2x1xf32> to vector<2x1x1xf32>
    %477 = vector.broadcast %476 : vector<2x1x1xf32> to vector<2x8x1xf32>
    %478 = arith.subf %474, %477 : vector<2x8x1xf32>
    %479 = math.exp %478 : vector<2x8x1xf32>
    %cst_248 = arith.constant dense<0.000000e+00> : vector<2x1xf32>
    %480 = vector.multi_reduction <add>, %479, %cst_248 [1] : vector<2x8x1xf32> to vector<2x1xf32>
    %481 = vector.shape_cast %480 : vector<2x1xf32> to vector<2x1x1xf32>
    %482 = tpu.reciprocal %481 {approx = true} : vector<2x1x1xf32> -> vector<2x1x1xf32>
    %483 = vector.broadcast %482 : vector<2x1x1xf32> to vector<2x8x1xf32>
    %484 = arith.mulf %479, %483 : vector<2x8x1xf32>
    %485 = vector.broadcast %484 : vector<2x8x1xf32> to vector<2x8x32xf32>
    %486 = arith.mulf %485, %468 : vector<2x8x32xf32>
    %cst_249 = arith.constant dense<0.000000e+00> : vector<2x32xf32>
    %487 = vector.multi_reduction <add>, %486, %cst_249 [1] : vector<2x8x32xf32> to vector<2x32xf32>
    %c0_250 = arith.constant 0 : index
    %488 = memref.load %arg12[%c0_250] : memref<2xf32, #tpu.memory_space<smem>>
    %c1_251 = arith.constant 1 : index
    %489 = memref.load %arg12[%c1_251] : memref<2xf32, #tpu.memory_space<smem>>
    %cst_252 = arith.constant 0.000000e+00 : f32
    %490 = vector.broadcast %cst_252 : f32 to vector<2x32xf32>
    %491 = arith.cmpf oge, %487, %490 : vector<2x32xf32>
    %492 = vector.broadcast %488 : f32 to vector<2x32xf32>
    %493 = arith.mulf %492, %487 : vector<2x32xf32>
    %494 = arith.select %491, %487, %493 : vector<2x32xi1>, vector<2x32xf32>
    %c0_253 = arith.constant 0 : index
    %c0_254 = arith.constant 0 : index
    %495 = vector.load %arg11[%c0_253, %c0_254] : memref<32x1xf32, #tpu.memory_space<vmem>>, vector<32x1xf32>
    %cst_255 = arith.constant dense<0.000000e+00> : vector<2x1xf32>
    %496 = tpu.matmul %494, %495, %cst_255 {dimension_numbers = #tpu.dot_dimension_numbers<[1], [0], [0], [1], [0, 0, 1, 1], [], []>} : vector<2x32xf32>, vector<32x1xf32>, vector<2x1xf32> -> vector<2x1xf32>
    %497 = vector.broadcast %489 : f32 to vector<2x1xf32>
    %498 = arith.addf %496, %497 : vector<2x1xf32>
    %499 = arith.negf %498 : vector<2x1xf32>
    %500 = math.exp %499 : vector<2x1xf32>
    %cst_256 = arith.constant 1.000000e+00 : f32
    %501 = vector.broadcast %cst_256 : f32 to vector<2x1xf32>
    %502 = arith.addf %501, %500 : vector<2x1xf32>
    %503 = arith.divf %501, %502 : vector<2x1xf32>
    %c0_257 = arith.constant 0 : index
    %c0_258 = arith.constant 0 : index
    %504 = vector.load %arg13[%c0_257, %c0_258] : memref<2x1xf32, #tpu.memory_space<vmem>>, vector<2x1xf32>
    tpu.vector_store %arg13[%c0_257, %c0_258], %503 {strides = array<i32>} : memref<2x1xf32, #tpu.memory_space<vmem>>, vector<2x1xf32>,
    return
  }
}

</mosaic_0001>

<bundles_post_ra>
// kernel: forward.1
= control target key start
LH: loop header
LB: loop body
LE: loop exit
PB: predicated region body
PF: predicated region fallthrough
CT: control target
= control target key end

     0   :  { %18 = vsyncpa [#allocation3], 0  ;;  %s8392_s0 = inlined_call_operand.vmem [shape: s32[16,1], index: 0, kind: input, shape index: {}]   ;;  %s8393_s1 = inlined_call_operand.vmem [shape: f32[128,32], index: 1, kind: input, shape index: {}]   ;;  %s8394_s2 = inlined_call_operand.vmem [shape: f32[16,32], index: 2, kind: input, shape index: {}]   ;;  %s8395_s3 = inlined_call_operand.vmem [shape: f32[24,32,8], index: 3, kind: input, shape index: {}]   ;;  %s8396_s4 = inlined_call_operand.vmem [shape: f32[24,1,8], index: 4, kind: input, shape index: {}]   ;;  %s8397_s5 = inlined_call_operand.vmem [shape: f32[2,32,32], index: 5, kind: input, shape index: {}]   ;;  %s8398_s6 = inlined_call_operand.vmem [shape: f32[2,32,64], index: 6, kind: input, shape index: {}]   ;;  %s8399_s7 = inlined_call_operand.vmem [shape: f32[2,1,64], index: 7, kind: input, shape index: {}]   ;;  %s8400_s8 = inlined_call_operand.vmem [shape: f32[2,64,32], index: 8, kind: input, shape index: {}]   ;;  %s8401_s9 = inlined_call_operand.vmem [shape: f32[2,6,32], index: 9, kind: input, shape index: {}]   ;;  %s8402_s10 = inlined_call_operand.vmem [shape: f32[1,32], index: 10, kind: input, shape index: {}]   ;;  %s8403_s11 = inlined_call_operand.vmem [shape: f32[32,1], index: 11, kind: input, shape index: {}]   ;;  %s8404_s12 = inlined_call_operand.vmem [shape: f32[2], index: 12, kind: input, shape index: {}]   ;;  %s8405_s13 = inlined_call_operand.vmem [shape: f32[2,1], index: 13, kind: output, shape index: {}]  }
   0x1   :  { %s49_s27 = sshll.u32 %s8404_s12, 4  ;;  %s50_s27 = int_to_ptr.vmem [resolvable:$true] %s49_s27 }
   0x2   :  { %s7324_s28 = scalar_lea.vmem %s50_s27, 16  ;;  %p7329_p1 = scmp.lt.s32.totalorder %s50_s27, %s50_s27 }
   0x3   :  { %p7325_p0 = scmp.ne.s32.totalorder %s50_s27, %s7324_s28  ;;  %p7330_p2 = scmp.lt.s32.totalorder %s7324_s28, %s7324_s28 }
   0x5   :  { %p7331_p3 = por %p7330_p2, %p7329_p1 }
   0x7   :  { %p7332_p4 = pnand %p7331_p3, %p7325_p0 }
   0x9   :  { %7335 = shalt.err (!%p7332_p4)
}
   0xa   :  { %s7338_s29 = smov [#allocation2]  }
   0xb   :  { %52 = dma.vmem_to_smem %s50_s27, 16, %s7338_s29, [#allocation3]  }
   0xc   :  { %7336 = dma.done.wait [#allocation3], 16  }
   0xd   :  { %7337 = vsyncadd [#allocation3], 4294967280 }
   0xe   :  { %56 = sfence }
   0xf   :  { %v57_v0 = vld [vmem:[%s8392_s0] sm:$0xff]  ;;  %v7339_v2 = vmov 0   ;;  %v74_v3 = vld [vmem:[%s8393_s1 + $0x8] sm:$0xff]  ;;  %v75_v4 = vld [vmem:[%s8393_s1 + $0x10] sm:$0xff]  ;;  %v59_v33 = vlaneseq  ;;  %v7340_v36 = vmov 1.0   ;;  %vm178_vm2 = vcmask 261120  }
  0x10   :  { %v73_v1 = vld [vmem:[%s8393_s1] sm:$0xff]  ;;  %7223 = vset.pattern.permute.xlu0 %v7339_v2  ;;  %v76_v5 = vld [vmem:[%s8393_s1 + $0x18] sm:$0xff]  ;;  %v58_v8 = vld [vmem:[%s8392_s0 + $0x8] sm:$0xff]  ;;  %vm7342_vm3 = vmmov 0   ;;  %vm436_vm4 = vcmask 64512   ;;  %s7343_s28 = smov 8  }
  0x11   :  { %62 = vperm.xlu0 %7223, %v57_v0   ;;  %v6920_v6 = vpack.c.bf16 %v74_v3, %v73_v1  ;;  %v6924_v7 = vpack.c.bf16 %v76_v5, %v75_v4  ;;  %v77_v9 = vld [vmem:[%s8393_s1 + $0x20] sm:$0xff]  ;;  %v78_v10 = vld [vmem:[%s8393_s1 + $0x28] sm:$0xff]  ;;  %v79_v12 = vld [vmem:[%s8393_s1 + $0x30] sm:$0xff]  ;;  %v60_v34 = vand.u32 127, %v59_v33  ;;  %v7341_v4 = vmov 0.0   ;;  %s7344_s29 = smov 16  }
  0x12   :  { %v6928_v11 = vpack.c.bf16 %v78_v10, %v77_v9  ;;  %v80_v13 = vld [vmem:[%s8393_s1 + $0x38] sm:$0xff]  ;;  %v167_v14 = vld [vmem:[%s8395_s3] sm:$0xff]  ;;  %v168_v15 = vld [vmem:[%s8395_s3 + $0x8] sm:$0xff]  ;;  %s7345_s18 = smov 24   ;;  %vm2535_vm5 = vcmask 130048   ;;  %vm2538_vm6 = vcmask 195584  }
  0x13   :  { %6921 = vmatprep.subr.bf16.mxu0 %v6920_v6  ;;  %v6952_v16 = vpack.c.bf16 %v168_v15, %v167_v14  ;;  %v6932_v17 = vpack.c.bf16 %v80_v13, %v79_v12  ;;  %v81_v18 = vld [vmem:[%s8393_s1 + $0x40] sm:$0xff]  ;;  %v82_v19 = vld [vmem:[%s8393_s1 + $0x48] sm:$0xff]  ;;  %v83_v21 = vld [vmem:[%s8393_s1 + $0x50] sm:$0xff]  ;;  %vm2786_vm7 = vcmask 523264   ;;  %vm5731_vm10 = vcmask 1041409   ;;  %s6090_s16 = sld [smem:[#allocation2 + $0x1]] }
  0x14   :  { %6923 = vmatpush3.bf16.msra.mxu0 %v6920_v6  ;;  %v6936_v20 = vpack.c.bf16 %v82_v19, %v81_v18  ;;  %v84_v22 = vld [vmem:[%s8393_s1 + $0x58] sm:$0xff]  ;;  %v85_v24 = vld [vmem:[%s8393_s1 + $0x60] sm:$0xff]  ;;  %v86_v25 = vld [vmem:[%s8393_s1 + $0x68] sm:$0xff]  ;;  %vm5811_vm11 = vcmask 1024  }
  0x15   :  { %65 = vperm.xlu0 %7223, %v58_v8   ;;  %6925 = vmatprep.subr.bf16.mxu0 %v6924_v7  ;;  %v6940_v23 = vpack.c.bf16 %v84_v22, %v83_v21  ;;  %v6944_v26 = vpack.c.bf16 %v86_v25, %v85_v24  ;;  %v87_v27 = vld [vmem:[%s8393_s1 + $0x70] sm:$0xff]  ;;  %v88_v28 = vld [vmem:[%s8393_s1 + $0x78] sm:$0xff]  ;;  %v5847_v30 = vld [vmem:[%s8395_s3 + $0x20] sm:$0xff] }
  0x16   :  { %6953 = vmatprep.subr.bf16.mxu1 %v6952_v16  ;;  %v6948_v29 = vpack.c.bf16 %v88_v28, %v87_v27  ;;  %v5848_v31 = vld [vmem:[%s8395_s3 + $0x28] sm:$0xff]  ;;  %v169_v38 = vld [vmem:[%s8395_s3 + $0x10] sm:$0xff]  ;;  %v170_v39 = vld [vmem:[%s8395_s3 + $0x18] sm:$0xff] }
  0x17   :  { %6955 = vmatpush3.bf16.msra.mxu1 %v6952_v16  ;;  %v6976_v32 = vpack.c.bf16 %v5848_v31, %v5847_v30  ;;  %v5849_v40 = vld [vmem:[%s8395_s3 + $0x30] sm:$0xff]  ;;  %v6956_v41 = vpack.c.bf16 %v170_v39, %v169_v38  ;;  %v5850_v42 = vld [vmem:[%s8395_s3 + $0x38] sm:$0xff]  ;;  %v5825_v44 = vld [vmem:[%s8395_s3 + $0x80] sm:$0xff] }
  0x18   :  { %6927 = vmatpush3.bf16.msra.mxu0 %v6924_v7  ;;  %v6980_v43 = vpack.c.bf16 %v5850_v42, %v5849_v40  ;;  %v5826_v45 = vld [vmem:[%s8395_s3 + $0x88] sm:$0xff]  ;;  %v5863_v47 = vld [vmem:[%s8395_s3 + $0x120] sm:$0xff]  ;;  %v5827_v53 = vld [vmem:[%s8395_s3 + $0x90] sm:$0xff] }
  0x19   :  { %6929 = vmatprep.subr.bf16.mxu0 %v6928_v11  ;;  %6957 = vmatprep.subr.bf16.mxu1 %v6956_v41  ;;  %v6960_v46 = vpack.c.bf16 %v5826_v45, %v5825_v44  ;;  %v5864_v48 = vld [vmem:[%s8395_s3 + $0x128] sm:$0xff]  ;;  %v89_v50 = vld [vmem:[%s8394_s2] sm:$0xff]  ;;  %v5828_v55 = vld [vmem:[%s8395_s3 + $0x98] sm:$0xff] }
  0x1a   :  { %v6992_v49 = vpack.c.bf16 %v5864_v48, %v5863_v47  ;;  %v90_v51 = vld [vmem:[%s8394_s2 + $0x8] sm:$0xff]  ;;  %v5865_v56 = vld [vmem:[%s8395_s3 + $0x130] sm:$0xff]  ;;  %v5866_v57 = vld [vmem:[%s8395_s3 + $0x138] sm:$0xff]  ;;  %v6964_v60 = vpack.c.bf16 %v5828_v55, %v5827_v53 }
  0x1b   :  { %6959 = vmatpush3.bf16.msra.mxu1 %v6956_v41  ;;  %v6996_v61 = vpack.c.bf16 %v5866_v57, %v5865_v56  ;;  %v5833_v62 = vld [vmem:[%s8395_s3 + $0x100] sm:$0xff]  ;;  %v5834_v63 = vld [vmem:[%s8395_s3 + $0x108] sm:$0xff]  ;;  %v5835_v1 = vld [vmem:[%s8395_s3 + $0x110] sm:$0xff] }
  0x1c   :  { %6931 = vmatpush3.bf16.msra.mxu0 %v6928_v11  ;;  %6961 = vmatprep.subr.bf16.mxu1 %v6960_v46  ;;  %v6968_v0 = vpack.c.bf16 %v5834_v63, %v5833_v62  ;;  %v5836_v2 = vld [vmem:[%s8395_s3 + $0x118] sm:$0xff]  ;;  %v5868_v9 = vld [vmem:[%s8396_s4 + $0x9] ss:$0 sm:$0xff]  ;;  %v5830_v10 = vld [vmem:[%s8396_s4 + $0x4] ss:$0 sm:$0xff] }
  0x1d   :  { %6933 = vmatprep.subr.bf16.mxu0 %v6932_v17  ;;  %v6972_v3 = vpack.c.bf16 %v5836_v2, %v5835_v1  ;;  %v5822_v16 = vld [vmem:[%s8396_s4] ss:$0 sm:$0xff]  ;;  %v5838_v21 = vld [vmem:[%s8396_s4 + $0x8] ss:$0 sm:$0xff]  ;;  %v5860_v62 = vld [vmem:[%s8396_s4 + $0x5] ss:$0 sm:$0xff] }
  0x1e   :  { %v5856_v47 = vld [vmem:[%s8395_s3 + $0xa8] sm:$0xff]  ;;  %v5852_v1 = vld [vmem:[%s8396_s4 + $0x1] ss:$0 sm:$0xff] }
  0x20   :  { %6935 = vmatpush3.bf16.msra.mxu0 %v6932_v17 }
  0x21   :  { %6937 = vmatprep.subr.bf16.mxu0 %v6936_v20 }
  0x24   :  { %6939 = vmatpush3.bf16.msra.mxu0 %v6936_v20 }
  0x25   :  { %6941 = vmatprep.subr.bf16.mxu0 %v6940_v23 }
  0x28   :  { %6943 = vmatpush3.bf16.msra.mxu0 %v6940_v23 }
  0x29   :  { %6945 = vmatprep.subr.bf16.mxu0 %v6944_v26 }
  0x2c   :  { %6947 = vmatpush3.bf16.msra.mxu0 %v6944_v26 }
  0x2d   :  { %6949 = vmatprep.subr.bf16.mxu0 %v6948_v29 }
  0x30   :  { %6951 = vmatpush3.bf16.msra.mxu0 %v6948_v29 }
  0x31   :  { %6977 = vmatprep.subr.bf16.mxu0 %v6976_v32 }
  0x90   :  { %v63_v35 = vpop.permute.xlu0 %62 }
  0x91   :  { %vm67_vm0 = vcmp.eq.s32.totalorder %v60_v34, %v63_v35 }
  0x92   :  { %6400 = vmatprep.mubr.msk.f32.mxu0 %vm67_vm0, %v7340_v36 }
  0x94   :  { %v66_v37 = vpop.permute.xlu0 %65 }
  0x95   :  { %vm68_vm1 = vcmp.eq.s32.totalorder %v60_v34, %v66_v37 }
  0x96   :  { %6401 = vmatmul.mubr.msk.f32.vlgmr.msra.gmra.mrb[0].mxu0 %vm68_vm1, %v7340_v36 }
  0x97   :  { %6979 = vmatpush3.bf16.msra.mxu0 %v6976_v32 }
  0x98   :  { %6981 = vmatprep.subr.bf16.mxu0 %v6980_v43 }
  0x9b   :  { %6983 = vmatpush3.bf16.msra.mxu0 %v6980_v43 }
  0x9c   :  { %6993 = vmatprep.subr.bf16.mxu0 %v6992_v49 }
 0x169   :  { %v6402_v52 = vpop.f32.mrb[0].mxu0 }
 0x16a   :  { %v157_v54 = vpop.f32.mrb[1].mxu0  ;;  %v7531_v59 = vadd.f32 %v6402_v52, %v90_v51  ;;  %v5857_v51 = vld [vmem:[%s8395_s3 + $0xb0] sm:$0xff]  ;;  %v5858_v52 = vld [vmem:[%s8395_s3 + $0xb8] sm:$0xff] }
 0x16b   :  { %v7529_v58 = vadd.f32 %v157_v54, %v89_v50  ;;  %v6988_v55 = vpack.c.bf16 %v5858_v52, %v5857_v51  ;;  %v5890_v52 = vld [vmem:[%s8396_s4 + $0x6] ss:$0 sm:$0xff] }
 0x16d   :  { %6411 = vmatprep.mubr.msk.f32.mxu1 %vm178_vm2, %v7529_v58  ;;  %6464 = vmatprep.mubr.msk.f32.mxu0 %vm178_vm2, %v7529_v58 }
 0x16e   :  { %6412 = vmatmul.mubr.msk.f32.vlgmr.msra.gmra.mrb[0].mxu1 %vm178_vm2, %v7531_v59  ;;  %6465 = vmatmul.mubr.msk.f32.vlgmr.msra.gmra.mrb[2].mxu0 %vm178_vm2, %v7531_v59 }
 0x16f   :  { %6963 = vmatpush3.bf16.msra.mxu1 %v6960_v46  ;;  %6995 = vmatpush3.bf16.msra.mxu0 %v6992_v49  ;;  %v5855_v46 = vld [vmem:[%s8395_s3 + $0xa0] sm:$0xff] }
 0x170   :  { %6422 = vmatprep.mubr.msk.f32.mxu1 %vm178_vm2, %v7529_v58  ;;  %6486 = vmatprep.mubr.msk.f32.mxu0 %vm178_vm2, %v7529_v58  ;;  %v6984_v50 = vpack.c.bf16 %v5856_v47, %v5855_v46  ;;  %v5896_v46 = vld [vmem:[%s8395_s3 + $0x158] sm:$0xff] }
 0x171   :  { %6965 = vmatprep.subr.bf16.mxu1 %v6964_v60  ;;  %6997 = vmatprep.subr.bf16.mxu0 %v6996_v61 }
 0x173   :  { %6967 = vmatpush3.bf16.msra.mxu1 %v6964_v60  ;;  %6999 = vmatpush3.bf16.msra.mxu0 %v6996_v61 }
 0x174   :  { %6969 = vmatprep.subr.bf16.mxu1 %v6968_v0  ;;  %6499 = vmatprep.subr.mxu0 %v7341_v4 }
 0x176   :  { %6423 = vmatmul.mubr.msk.f32.vlgmr.msra.gmra.mrb[2].mxu1 %vm178_vm2, %v7531_v59  ;;  %6487 = vmatmul.mubr.msk.f32.vlgmr.msra.gmra.mrb[4].mxu0 %vm178_vm2, %v7531_v59 }
 0x177   :  { %6971 = vmatpush3.bf16.msra.mxu1 %v6968_v0  ;;  %6433 = vmatprep.mubr.msk.f32.mxu1 %vm178_vm2, %v7529_v58 }
 0x178   :  { %6973 = vmatprep.subr.bf16.mxu1 %v6972_v3  ;;  %6501 = vmatprep.mubr.msk.f32.mxu0 %vm7342_vm3, %v7341_v4 }
 0x17b   :  { %6975 = vmatpush3.bf16.msra.mxu1 %v6972_v3 }
 0x17c   :  { %6436 = vmatprep.subr.mxu1 %v7341_v4 }
 0x17e   :  { %6434 = vmatmul.mubr.msk.f32.vlgmr.msra.gmra.mrb[4].mxu1 %vm178_vm2, %v7531_v59 }
 0x17f   :  { %6438 = vmatprep.mubr.msk.f32.mxu1 %vm7342_vm3, %v7341_v4 }
 0x241   :  { %v6413_v5 = vpop.f32.mrb[0].mxu1  ;;  %v7571_v6 = vpop.f32.mrb[2].mxu0 }
 0x242   :  { %v251_v7 = vpop.f32.mrb[1].mxu1  ;;  %v7573_v8 = vpop.f32.mrb[3].mxu0  ;;  %v257_v23 = vadd.f32 %v6413_v5, %v5822_v16 }
 0x243   :  { %v252_v19 = vadd.f32 %v5822_v16, %v251_v7  ;;  %v837_v3 = vadd.f32 %v5852_v1, %v7573_v8  ;;  %v842_v7 = vadd.f32 %v7571_v6, %v5852_v1 }
 0x249   :  { %v6424_v11 = vpop.f32.mrb[2].mxu1  ;;  %v6488_v12 = vpop.f32.mrb[4].mxu0 }
 0x24a   :  { %v7581_v13 = vadd.f32 %v6488_v12, %v5868_v9  ;;  %v339_v14 = vpop.f32.mrb[3].mxu1  ;;  %v1012_v15 = vpop.f32.mrb[5].mxu0  ;;  %v345_v20 = vadd.f32 %v6424_v11, %v5830_v10 }
 0x24b   :  { %v340_v17 = vadd.f32 %v5830_v10, %v339_v14  ;;  %v1013_v18 = vadd.f32 %v5868_v9, %v1012_v15 }
 0x24d   :  { %6437 = vmatpush3.xpose.msk.msra.mxu1 %vm436_vm4, %v340_v17  ;;  %6500 = vmatpush3.msra.mxu0 %v1013_v18 }
 0x24e   :  { %6441 = vmatprep.subr.mxu1 %v7341_v4 }
 0x250   :  { %6439 = vmatmul.mubr.msk.f32.vlgmr.msra.gmra.mrb[6].mxu1 %vm436_vm4, %v252_v19 }
 0x251   :  { %v6435_v22 = vpop.f32.mrb[4].mxu1  ;;  %6442 = vmatpush3.xpose.msk.msra.mxu1 %vm436_vm4, %v345_v20  ;;  %6443 = vmatprep.mubr.msk.f32.mxu1 %vm7342_vm3, %v7341_v4 }
 0x252   :  { %v433_v24 = vadd.f32 %v6435_v22, %v5838_v21  ;;  %v427_v25 = vpop.f32.mrb[5].mxu1  ;;  %6446 = vmatprep.subr.mxu1 %v7341_v4 }
 0x253   :  { %v428_v26 = vadd.f32 %v5838_v21, %v427_v25 }
 0x254   :  { %6444 = vmatmul.mubr.msk.f32.vlgmr.msra.gmra.mrb[8].mxu1 %vm436_vm4, %v257_v23  ;;  %v5885_v23 = vld [vmem:[%s8395_s3 + $0xc0] sm:$0xff] }
 0x255   :  { %6447 = vmatpush3.msra.mxu1 %v428_v26  ;;  %6448 = vmatprep.mubr.msk.f32.mxu1 %vm7342_vm3, %v7341_v4  ;;  %v5877_v26 = vld [vmem:[%s8395_s3 + $0x40] sm:$0xff] }
 0x256   :  { %6451 = vmatprep.subr.mxu1 %v7341_v4 }
 0x323   :  { %v509_v27 = vpop.f32.mrb[6].mxu1 }
 0x324   :  { %v6440_v28 = vpop.f32.mrb[7].mxu1  ;;  %v589_v29 = vsel %vm436_vm4, %v509_v27, -inf }
 0x325   :  { %590 = vmax.xlane.f32.xlu1 %v589_v29 }
 0x327   :  { %v585_v30 = vpop.f32.mrb[8].mxu1 }
 0x328   :  { %v6445_v31 = vpop.f32.mrb[9].mxu1  ;;  %v592_v32 = vsel %vm436_vm4, %v585_v30, -inf }
 0x329   :  { %593 = vmax.xlane.f32.xlu1 %v592_v32  ;;  %v5887_v31 = vld [vmem:[%s8395_s3 + $0xd0] sm:$0xff]  ;;  %v5888_v32 = vld [vmem:[%s8395_s3 + $0xd8] sm:$0xff] }
 0x3b2   :  { %v591_v34 = vpop.xlane.xlu1 %590 }
 0x3b3   :  { %v595_v35 = vsub.f32 %v509_v27, %v591_v34  ;;  %v5878_v27 = vld [vmem:[%s8395_s3 + $0x48] sm:$0xff] }
 0x3b4   :  { %v7000_v28 = vpack.c.bf16 %v5878_v27, %v5877_v26  ;;  %v5907_v27 = vld [vmem:[%s8395_s3 + $0x60] sm:$0xff] }
 0x3b5   :  { %v597_v36 = vmul.f32 1.442695, %v595_v35 }
 0x3b6   :  { %v594_v37 = vpop.xlane.xlu1 %593  ;;  %7001 = vmatprep.subr.bf16.mxu0 %v7000_v28 }
 0x3b7   :  { %7224 = vpow2.f32 %v597_v36  ;;  %v596_v38 = vsub.f32 %v585_v30, %v594_v37  ;;  %v7012_v36 = vpack.c.bf16 %v5888_v32, %v5887_v31  ;;  %v5879_v37 = vld [vmem:[%s8395_s3 + $0x50] sm:$0xff] }
 0x3b8   :  { %v5917_v32 = vld [vmem:[%s8395_s3 + $0xf0] sm:$0xff] }
 0x3b9   :  { %v599_v39 = vmul.f32 1.442695, %v596_v38  ;;  %v5880_v38 = vld [vmem:[%s8395_s3 + $0x58] sm:$0xff] }
 0x3bb   :  { %7226 = vpow2.f32 %v599_v39 }
 0x3c1   :  { %v7225_v40 = vpop.eup %7224 }
 0x3c2   :  { %v601_v41 = vsel %vm436_vm4, %v7225_v40, 0.0 }
 0x3c3   :  { %602 = vadd.xlane.f32.xlu0 %v601_v41  ;;  %v7004_v41 = vpack.c.bf16 %v5880_v38, %v5879_v37  ;;  %v5909_v38 = vld [vmem:[%s8395_s3 + $0x70] sm:$0xff] }
 0x3c5   :  { %v7227_v42 = vpop.eup %7226 }
 0x3c6   :  { %v604_v43 = vsel %vm436_vm4, %v7227_v42, 0.0 }
 0x3c7   :  { %605 = vadd.xlane.f32.xlu1 %v604_v43  ;;  %v5894_v43 = vld [vmem:[%s8395_s3 + $0x148] sm:$0xff] }
 0x450   :  { %v603_v44 = vpop.xlane.xlu0 %602 }
 0x451   :  { %7228 = vrcp.f32 %v603_v44 }
 0x454   :  { %v606_v45 = vpop.xlane.xlu1 %605 }
 0x455   :  { %7230 = vrcp.f32 %v606_v45  ;;  %v5895_v45 = vld [vmem:[%s8395_s3 + $0x150] sm:$0xff] }
 0x456   :  { %v7020_v47 = vpack.c.bf16 %v5896_v46, %v5895_v45  ;;  %v5925_v46 = vld [vmem:[%s8395_s3 + $0x170] sm:$0xff] }
 0x45b   :  { %v7229_v48 = vpop.eup %7228 }
 0x45c   :  { %v609_v49 = vmul.f32 %v7229_v48, %v7225_v40 }
 0x45e   :  { %6449 = vmatmul.mubr.msk.f32.vlgmr.msra.gmra.mrb[10].mxu1 %vm436_vm4, %v609_v49 }
 0x45f   :  { %v7231_v53 = vpop.eup %7230  ;;  %6452 = vmatpush3.msra.mxu1 %v433_v24  ;;  %6453 = vmatprep.mubr.msk.f32.mxu1 %vm7342_vm3, %v7341_v4  ;;  %v5886_v24 = vld [vmem:[%s8395_s3 + $0xc8] sm:$0xff] }
 0x460   :  { %v610_v54 = vmul.f32 %v7231_v53, %v7227_v42  ;;  %6985 = vmatprep.subr.bf16.mxu1 %v6984_v50  ;;  %v7008_v25 = vpack.c.bf16 %v5886_v24, %v5885_v23  ;;  %v5893_v42 = vld [vmem:[%s8395_s3 + $0x140] sm:$0xff] }
 0x461   :  { %v7016_v44 = vpack.c.bf16 %v5894_v43, %v5893_v42  ;;  %v5915_v24 = vld [vmem:[%s8395_s3 + $0xe0] sm:$0xff] }
 0x462   :  { %6454 = vmatmul.mubr.msk.f32.vlgmr.msra.gmra.mrb[12].mxu1 %vm436_vm4, %v610_v54  ;;  %v5923_v43 = vld [vmem:[%s8395_s3 + $0x160] sm:$0xff] }
 0x463   :  { %6987 = vmatpush3.bf16.msra.mxu1 %v6984_v50  ;;  %6475 = vmatprep.mubr.msk.f32.mxu1 %vm178_vm2, %v7529_v58 }
 0x464   :  { %6989 = vmatprep.subr.bf16.mxu1 %v6988_v55 }
 0x467   :  { %6991 = vmatpush3.bf16.msra.mxu1 %v6988_v55 }
 0x468   :  { %6489 = vmatprep.subr.mxu1 %v7341_v4 }
 0x46a   :  { %6476 = vmatmul.mubr.msk.f32.vlgmr.msra.gmra.mrb[14].mxu1 %vm178_vm2, %v7531_v59 }
 0x46b   :  { %6491 = vmatprep.mubr.msk.f32.mxu1 %vm7342_vm3, %v7341_v4 }
 0x531   :  { %v7627_v56 = vpop.f32.mrb[10].mxu1 }
 0x532   :  { %v6450_v57 = vpop.f32.mrb[11].mxu1 }
 0x533   :  { %v5882_v57 = vld [vmem:[%s8396_s4 + $0x2] ss:$0 sm:$0xff] }
 0x535   :  { %v7629_v60 = vpop.f32.mrb[12].mxu1 }
 0x536   :  { %v6455_v61 = vpop.f32.mrb[13].mxu1 }
 0x53d   :  { %v6477_v63 = vpop.f32.mrb[14].mxu1 }
 0x53e   :  { %v924_v0 = vpop.f32.mrb[15].mxu1  ;;  %v930_v5 = vadd.f32 %v6477_v63, %v5860_v62 }
 0x53f   :  { %v925_v2 = vadd.f32 %v5860_v62, %v924_v0 }
 0x541   :  { %6490 = vmatpush3.xpose.msk.msra.mxu1 %vm436_vm4, %v925_v2  ;;  %v5898_v2 = vld [vmem:[%s8396_s4 + $0xa] ss:$0 sm:$0xff] }
 0x542   :  { %6494 = vmatprep.subr.mxu1 %v7341_v4 }
 0x544   :  { %6492 = vmatmul.mubr.msk.f32.vlgmr.msra.gmra.mrb[16].mxu1 %vm436_vm4, %v837_v3 }
 0x545   :  { %6495 = vmatpush3.xpose.msk.msra.mxu1 %vm436_vm4, %v930_v5  ;;  %6496 = vmatprep.mubr.msk.f32.mxu1 %vm7342_vm3, %v7341_v4 }
 0x546   :  { %6504 = vmatprep.subr.mxu1 %v7341_v4 }
 0x548   :  { %6497 = vmatmul.mubr.msk.f32.vlgmr.msra.gmra.mrb[18].mxu1 %vm436_vm4, %v842_v7 }
 0x549   :  { %6505 = vmatpush3.msra.mxu1 %v7581_v13  ;;  %6506 = vmatprep.mubr.msk.f32.mxu1 %vm7342_vm3, %v7341_v4 }
 0x54a   :  { %7009 = vmatprep.subr.bf16.mxu1 %v7008_v25 }
 0x617   :  { %v1093_v8 = vpop.f32.mrb[16].mxu1 }
 0x618   :  { %v6493_v9 = vpop.f32.mrb[17].mxu1  ;;  %v1173_v14 = vsel %vm436_vm4, %v1093_v8, -inf }
 0x61b   :  { %v1169_v10 = vpop.f32.mrb[18].mxu1 }
 0x61c   :  { %v6498_v11 = vpop.f32.mrb[19].mxu1  ;;  %v1176_v12 = vsel %vm436_vm4, %v1169_v10, -inf }
 0x61d   :  { %1177 = vmax.xlane.f32.xlu1 %v1176_v12 }
 0x621   :  { %1174 = vmax.xlane.f32.xlu1 %v1173_v14 }
 0x6aa   :  { %v1178_v6 = vpop.xlane.xlu1 %1177 }
 0x6ab   :  { %v1180_v15 = vsub.f32 %v1169_v10, %v1178_v6 }
 0x6ad   :  { %v1183_v16 = vmul.f32 1.442695, %v1180_v15 }
 0x6ae   :  { %v1175_v17 = vpop.xlane.xlu1 %1174 }
 0x6af   :  { %7232 = vpow2.f32 %v1183_v16  ;;  %v1179_v18 = vsub.f32 %v1093_v8, %v1175_v17 }
 0x6b1   :  { %v1181_v13 = vmul.f32 1.442695, %v1179_v18 }
 0x6b3   :  { %7234 = vpow2.f32 %v1181_v13 }
 0x6b9   :  { %v7233_v19 = vpop.eup %7232 }
 0x6ba   :  { %v1188_v20 = vsel %vm436_vm4, %v7233_v19, 0.0 }
 0x6bb   :  { %1189 = vadd.xlane.f32.xlu1 %v1188_v20 }
 0x6bd   :  { %v7235_v21 = vpop.eup %7234 }
 0x6be   :  { %v1185_v22 = vsel %vm436_vm4, %v7235_v21, 0.0 }
 0x6bf   :  { %1186 = vadd.xlane.f32.xlu1 %v1185_v22 }
 0x748   :  { %v1190_v29 = vpop.xlane.xlu1 %1189 }
 0x749   :  { %7236 = vrcp.f32 %v1190_v29 }
 0x74c   :  { %v1187_v30 = vpop.xlane.xlu1 %1186 }
 0x74d   :  { %7238 = vrcp.f32 %v1187_v30 }
 0x753   :  { %v7237_v34 = vpop.eup %7236 }
 0x754   :  { %v1194_v35 = vmul.f32 %v7237_v34, %v7233_v19  ;;  %v5918_v34 = vld [vmem:[%s8395_s3 + $0xf8] sm:$0xff] }
 0x755   :  { %v7036_v37 = vpack.c.bf16 %v5918_v34, %v5917_v32 }
 0x756   :  { %6507 = vmatmul.mubr.msk.f32.vlgmr.msra.gmra.mrb[20].mxu1 %vm436_vm4, %v1194_v35 }
 0x757   :  { %v7239_v39 = vpop.eup %7238  ;;  %7011 = vmatpush3.bf16.msra.mxu1 %v7008_v25  ;;  %6528 = vmatprep.mubr.msk.f32.mxu1 %vm178_vm2, %v7529_v58  ;;  %v5916_v25 = vld [vmem:[%s8395_s3 + $0xe8] sm:$0xff] }
 0x758   :  { %v1193_v40 = vmul.f32 %v7239_v39, %v7235_v21  ;;  %7013 = vmatprep.subr.bf16.mxu1 %v7012_v36  ;;  %v7032_v26 = vpack.c.bf16 %v5916_v25, %v5915_v24  ;;  %v5910_v39 = vld [vmem:[%s8395_s3 + $0x78] sm:$0xff] }
 0x759   :  { %v7028_v42 = vpack.c.bf16 %v5910_v39, %v5909_v38 }
 0x75a   :  { %6502 = vmatmul.mubr.msk.f32.vlgmr.msra.gmra.mrb[6].mxu0 %vm436_vm4, %v1193_v40 }
 0x75b   :  { %7003 = vmatpush3.bf16.msra.mxu0 %v7000_v28  ;;  %7015 = vmatpush3.bf16.msra.mxu1 %v7012_v36  ;;  %v5908_v28 = vld [vmem:[%s8395_s3 + $0x68] sm:$0xff] }
 0x75c   :  { %6517 = vmatprep.mubr.msk.f32.mxu0 %vm178_vm2, %v7529_v58  ;;  %7005 = vmatprep.subr.bf16.mxu0 %v7004_v41  ;;  %v7024_v29 = vpack.c.bf16 %v5908_v28, %v5907_v27 }
 0x75d   :  { %6542 = vmatprep.subr.mxu1 %v7341_v4 }
 0x75e   :  { %6529 = vmatmul.mubr.msk.f32.vlgmr.msra.gmra.mrb[22].mxu1 %vm178_vm2, %v7531_v59 }
 0x75f   :  { %7007 = vmatpush3.bf16.msra.mxu0 %v7004_v41  ;;  %6544 = vmatprep.mubr.msk.f32.mxu1 %vm7342_vm3, %v7341_v4 }
 0x760   :  { %7017 = vmatprep.subr.bf16.mxu0 %v7016_v44 }
 0x762   :  { %6518 = vmatmul.mubr.msk.f32.vlgmr.msra.gmra.mrb[8].mxu0 %vm178_vm2, %v7531_v59 }
 0x763   :  { %7019 = vmatpush3.bf16.msra.mxu0 %v7016_v44  ;;  %6539 = vmatprep.mubr.msk.f32.mxu0 %vm178_vm2, %v7529_v58  ;;  %v5924_v44 = vld [vmem:[%s8395_s3 + $0x168] sm:$0xff] }
 0x764   :  { %7021 = vmatprep.subr.bf16.mxu0 %v7020_v47  ;;  %v7040_v45 = vpack.c.bf16 %v5924_v44, %v5923_v43 }
 0x767   :  { %7023 = vmatpush3.bf16.msra.mxu0 %v7020_v47  ;;  %v5926_v47 = vld [vmem:[%s8395_s3 + $0x178] sm:$0xff] }
 0x768   :  { %6552 = vmatprep.subr.mxu0 %v7341_v4 }
 0x76a   :  { %6540 = vmatmul.mubr.msk.f32.vlgmr.msra.gmra.mrb[10].mxu0 %vm178_vm2, %v7531_v59 }
 0x76b   :  { %6554 = vmatprep.mubr.msk.f32.mxu0 %vm7342_vm3, %v7341_v4 }
 0x829   :  { %v7710_v48 = vpop.f32.mrb[20].mxu1 }
 0x82a   :  { %v6508_v49 = vpop.f32.mrb[21].mxu1 }
 0x82b   :  { %v7044_v49 = vpack.c.bf16 %v5926_v47, %v5925_v46 }
 0x82d   :  { %v7712_v50 = vpop.f32.mrb[6].mxu0 }
 0x82e   :  { %v6503_v51 = vpop.f32.mrb[7].mxu0 }
 0x831   :  { %v6530_v53 = vpop.f32.mrb[22].mxu1 }
 0x832   :  { %v1508_v54 = vpop.f32.mrb[23].mxu1  ;;  %v1514_v0 = vadd.f32 %v6530_v53, %v5890_v52 }
 0x833   :  { %v1509_v55 = vadd.f32 %v5890_v52, %v1508_v54 }
 0x835   :  { %v6519_v61 = vpop.f32.mrb[8].mxu0  ;;  %6543 = vmatpush3.xpose.msk.msra.mxu1 %vm436_vm4, %v1509_v55  ;;  %v5920_v55 = vld [vmem:[%s8396_s4 + $0x7] ss:$0 sm:$0xff] }
 0x836   :  { %v1420_v62 = vpop.f32.mrb[9].mxu0  ;;  %6547 = vmatprep.subr.mxu1 %v7341_v4  ;;  %v1426_v1 = vadd.f32 %v6519_v61, %v5882_v57 }
 0x837   :  { %v1421_v63 = vadd.f32 %v5882_v57, %v1420_v62 }
 0x839   :  { %6545 = vmatmul.mubr.msk.f32.vlgmr.msra.gmra.mrb[24].mxu1 %vm436_vm4, %v1421_v63  ;;  %v5912_v63 = vld [vmem:[%s8396_s4 + $0x3] ss:$0 sm:$0xff] }
 0x83a   :  { %6548 = vmatpush3.xpose.msk.msra.mxu1 %vm436_vm4, %v1514_v0  ;;  %6549 = vmatprep.mubr.msk.f32.mxu1 %vm7342_vm3, %v7341_v4 }
 0x83b   :  { %6557 = vmatprep.subr.mxu1 %v7341_v4 }
 0x83d   :  { %v6541_v3 = vpop.f32.mrb[10].mxu0  ;;  %6550 = vmatmul.mubr.msk.f32.vlgmr.msra.gmra.mrb[26].mxu1 %vm436_vm4, %v1426_v1 }
 0x83e   :  { %v1602_v5 = vadd.f32 %v6541_v3, %v5898_v2  ;;  %v1596_v7 = vpop.f32.mrb[11].mxu0  ;;  %6559 = vmatprep.mubr.msk.f32.mxu1 %vm7342_vm3, %v7341_v4 }
 0x83f   :  { %v1597_v8 = vadd.f32 %v5898_v2, %v1596_v7  ;;  %v5928_v7 = vld [vmem:[%s8396_s4 + $0xb] ss:$0 sm:$0xff] }
 0x840   :  { %6558 = vmatpush3.msra.mxu1 %v1602_v5 }
 0x841   :  { %6553 = vmatpush3.msra.mxu0 %v1597_v8  ;;  %7033 = vmatprep.subr.bf16.mxu1 %v7032_v26 }
 0x842   :  { %7025 = vmatprep.subr.bf16.mxu0 %v7024_v29 }
 0x90c   :  { %v1677_v9 = vpop.f32.mrb[24].mxu1 }
 0x90d   :  { %v6546_v10 = vpop.f32.mrb[25].mxu1  ;;  %v1757_v6 = vsel %vm436_vm4, %v1677_v9, -inf }
 0x910   :  { %v1753_v11 = vpop.f32.mrb[26].mxu1 }
 0x911   :  { %v6551_v12 = vpop.f32.mrb[27].mxu1  ;;  %v1760_v14 = vsel %vm436_vm4, %v1753_v11, -inf }
 0x912   :  { %1761 = vmax.xlane.f32.xlu1 %v1760_v14 }
 0x916   :  { %1758 = vmax.xlane.f32.xlu1 %v1757_v6 }
 0x99f   :  { %v1762_v15 = vpop.xlane.xlu1 %1761 }
 0x9a0   :  { %v1764_v16 = vsub.f32 %v1753_v11, %v1762_v15 }
 0x9a2   :  { %v1767_v17 = vmul.f32 1.442695, %v1764_v16 }
 0x9a3   :  { %v1759_v18 = vpop.xlane.xlu1 %1758 }
 0x9a4   :  { %7240 = vpow2.f32 %v1767_v17  ;;  %v1763_v13 = vsub.f32 %v1677_v9, %v1759_v18 }
 0x9a6   :  { %v1765_v19 = vmul.f32 1.442695, %v1763_v13 }
 0x9a8   :  { %7242 = vpow2.f32 %v1765_v19 }
 0x9ae   :  { %v7241_v20 = vpop.eup %7240 }
 0x9af   :  { %v1772_v21 = vsel %vm436_vm4, %v7241_v20, 0.0 }
 0x9b0   :  { %1773 = vadd.xlane.f32.xlu1 %v1772_v21 }
 0x9b2   :  { %v7243_v22 = vpop.eup %7242 }
 0x9b3   :  { %v1769_v23 = vsel %vm436_vm4, %v7243_v22, 0.0 }
 0x9b4   :  { %1770 = vadd.xlane.f32.xlu0 %v1769_v23 }
 0xa3d   :  { %v1774_v30 = vpop.xlane.xlu1 %1773 }
 0xa3e   :  { %7244 = vrcp.f32 %v1774_v30 }
 0xa41   :  { %v1771_v31 = vpop.xlane.xlu0 %1770 }
 0xa42   :  { %7246 = vrcp.f32 %v1771_v31 }
 0xa48   :  { %v7245_v35 = vpop.eup %7244 }
 0xa49   :  { %v1778_v36 = vmul.f32 %v7245_v35, %v7241_v20  ;;  %v2543_v35 = vld [vmem:[%s8397_s5 + $0x10] sm:$0xff] }
 0xa4b   :  { %6560 = vmatmul.mubr.msk.f32.vlgmr.msra.gmra.mrb[28].mxu1 %vm436_vm4, %v1778_v36  ;;  %v2544_v36 = vld [vmem:[%s8397_s5 + $0x18] sm:$0xff] }
 0xa4c   :  { %v7247_v40 = vpop.eup %7246  ;;  %7035 = vmatpush3.bf16.msra.mxu1 %v7032_v26  ;;  %6581 = vmatprep.mubr.msk.f32.mxu1 %vm178_vm2, %v7529_v58 }
 0xa4d   :  { %v1777_v41 = vmul.f32 %v7247_v40, %v7243_v22  ;;  %7037 = vmatprep.subr.bf16.mxu1 %v7036_v37 }
 0xa4f   :  { %6555 = vmatmul.mubr.msk.f32.vlgmr.msra.gmra.mrb[12].mxu0 %vm436_vm4, %v1777_v41 }
 0xa50   :  { %7027 = vmatpush3.bf16.msra.mxu0 %v7024_v29  ;;  %7039 = vmatpush3.bf16.msra.mxu1 %v7036_v37  ;;  %v7052_v37 = vpack.c.bf16 %v2544_v36, %v2543_v35 }
 0xa51   :  { %6570 = vmatprep.mubr.msk.f32.mxu0 %vm178_vm2, %v7529_v58  ;;  %7029 = vmatprep.subr.bf16.mxu0 %v7028_v42 }
 0xa52   :  { %6595 = vmatprep.subr.mxu1 %v7341_v4 }
 0xa53   :  { %6582 = vmatmul.mubr.msk.f32.vlgmr.msra.gmra.mrb[30].mxu1 %vm178_vm2, %v7531_v59 }
 0xa54   :  { %7031 = vmatpush3.bf16.msra.mxu0 %v7028_v42  ;;  %6597 = vmatprep.mubr.msk.f32.mxu1 %vm7342_vm3, %v7341_v4 }
 0xa55   :  { %7041 = vmatprep.subr.bf16.mxu0 %v7040_v45 }
 0xa57   :  { %6571 = vmatmul.mubr.msk.f32.vlgmr.msra.gmra.mrb[14].mxu0 %vm178_vm2, %v7531_v59 }
 0xa58   :  { %7043 = vmatpush3.bf16.msra.mxu0 %v7040_v45  ;;  %6592 = vmatprep.mubr.msk.f32.mxu0 %vm178_vm2, %v7529_v58 }
 0xa59   :  { %7045 = vmatprep.subr.bf16.mxu0 %v7044_v49 }
 0xa5c   :  { %7047 = vmatpush3.bf16.msra.mxu0 %v7044_v49 }
 0xa5d   :  { %6605 = vmatprep.subr.mxu0 %v7341_v4 }
 0xa5f   :  { %6593 = vmatmul.mubr.msk.f32.vlgmr.msra.gmra.mrb[16].mxu0 %vm178_vm2, %v7531_v59 }
 0xa60   :  { %6607 = vmatprep.mubr.msk.f32.mxu0 %vm7342_vm3, %v7341_v4 }
 0xb1e   :  { %v1921_v51 = vpop.f32.mrb[28].mxu1 }
 0xb1f   :  { %v6561_v52 = vpop.f32.mrb[29].mxu1 }
 0xb22   :  { %v1848_v53 = vpop.f32.mrb[12].mxu0 }
 0xb23   :  { %v6556_v54 = vpop.f32.mrb[13].mxu0 }
 0xb26   :  { %v6583_v57 = vpop.f32.mrb[30].mxu1 }
 0xb27   :  { %v2092_v61 = vpop.f32.mrb[31].mxu1  ;;  %v2098_v3 = vadd.f32 %v6583_v57, %v5920_v55 }
 0xb28   :  { %v2093_v62 = vadd.f32 %v5920_v55, %v2092_v61  ;;  %v7855_v61 = vld [vmem:[%s8401_s9] sm:$0x3f] }
 0xb2a   :  { %v6572_v0 = vpop.f32.mrb[14].mxu0  ;;  %6596 = vmatpush3.xpose.msk.msra.mxu1 %vm436_vm4, %v2093_v62 }
 0xb2b   :  { %v2004_v1 = vpop.f32.mrb[15].mxu0  ;;  %6600 = vmatprep.subr.mxu1 %v7341_v4  ;;  %v2010_v5 = vadd.f32 %v6572_v0, %v5912_v63 }
 0xb2c   :  { %v2005_v2 = vadd.f32 %v5912_v63, %v2004_v1 }
 0xb2e   :  { %6598 = vmatmul.mubr.msk.f32.vlgmr.msra.gmra.mrb[32].mxu1 %vm436_vm4, %v2005_v2 }
 0xb2f   :  { %6601 = vmatpush3.xpose.msk.msra.mxu1 %vm436_vm4, %v2098_v3  ;;  %6602 = vmatprep.mubr.msk.f32.mxu1 %vm7342_vm3, %v7341_v4 }
 0xb30   :  { %6610 = vmatprep.subr.mxu1 %v7341_v4 }
 0xb32   :  { %v6594_v8 = vpop.f32.mrb[16].mxu0  ;;  %6603 = vmatmul.mubr.msk.f32.vlgmr.msra.gmra.mrb[34].mxu1 %vm436_vm4, %v2010_v5 }
 0xb33   :  { %v2186_v9 = vadd.f32 %v6594_v8, %v5928_v7  ;;  %v2180_v10 = vpop.f32.mrb[17].mxu0  ;;  %6612 = vmatprep.mubr.msk.f32.mxu1 %vm7342_vm3, %v7341_v4 }
 0xb34   :  { %v2181_v11 = vadd.f32 %v5928_v7, %v2180_v10 }
 0xb35   :  { %6611 = vmatpush3.msra.mxu1 %v2186_v9 }
 0xb36   :  { %6606 = vmatpush3.msra.mxu0 %v2181_v11 }
 0xc01   :  { %v2261_v12 = vpop.f32.mrb[32].mxu1 }
 0xc02   :  { %v6599_v14 = vpop.f32.mrb[33].mxu1  ;;  %v2341_v6 = vsel %vm436_vm4, %v2261_v12, -inf }
 0xc03   :  { %2342 = vmax.xlane.f32.xlu1 %v2341_v6 }
 0xc05   :  { %v2337_v15 = vpop.f32.mrb[34].mxu1 }
 0xc06   :  { %v6604_v16 = vpop.f32.mrb[35].mxu1  ;;  %v2344_v17 = vsel %vm436_vm4, %v2337_v15, -inf }
 0xc07   :  { %2345 = vmax.xlane.f32.xlu0 %v2344_v17  ;;  %v2672_v16 = vld [vmem:[%s8398_s6 + $0x8] sm:$0xff] }
 0xc90   :  { %v2343_v18 = vpop.xlane.xlu1 %2342 }
 0xc91   :  { %v2347_v13 = vsub.f32 %v2261_v12, %v2343_v18  ;;  %v2673_v18 = vld [vmem:[%s8398_s6 + $0x10] sm:$0xff] }
 0xc93   :  { %v2349_v19 = vmul.f32 1.442695, %v2347_v13  ;;  %v2674_v13 = vld [vmem:[%s8398_s6 + $0x18] sm:$0xff] }
 0xc94   :  { %v2346_v20 = vpop.xlane.xlu0 %2345 }
 0xc95   :  { %7248 = vpow2.f32 %v2349_v19  ;;  %v2348_v21 = vsub.f32 %v2337_v15, %v2346_v20  ;;  %v7060_v19 = vpack.c.bf16 %v2674_v13, %v2673_v18 }
 0xc97   :  { %v2351_v22 = vmul.f32 1.442695, %v2348_v21 }
 0xc99   :  { %7250 = vpow2.f32 %v2351_v22 }
 0xc9f   :  { %v7249_v23 = vpop.eup %7248 }
 0xca0   :  { %v2353_v24 = vsel %vm436_vm4, %v7249_v23, 0.0 }
 0xca1   :  { %2354 = vadd.xlane.f32.xlu1 %v2353_v24 }
 0xca3   :  { %v7251_v25 = vpop.eup %7250 }
 0xca4   :  { %v2356_v26 = vsel %vm436_vm4, %v7251_v25, 0.0 }
 0xca5   :  { %2357 = vadd.xlane.f32.xlu0 %v2356_v26 }
 0xcb2   :  { %2511 = vrot.lane.b32.xlu1 %v7712_v50, %s7343_s28  ;;  %v2541_v50 = vld [vmem:[%s8397_s5] sm:$0xff] }
 0xcb6   :  { %2519 = vrot.lane.b32.xlu1 %v1848_v53, %s7344_s29 }
 0xcba   :  { %2521 = vrot.lane.b32.xlu1 %v1921_v51, %s7344_s29 }
 0xcbb   :  { %2513 = vrot.lane.b32.xlu0 %v7710_v48, %s7343_s28  ;;  %v2542_v48 = vld [vmem:[%s8397_s5 + $0x8] sm:$0xff] }
 0xcbc   :  { %v7048_v34 = vpack.c.bf16 %v2542_v48, %v2541_v50 }
 0xcbe   :  { %7049 = vmatprep.subr.bf16.mxu0 %v7048_v34 }
 0xd2e   :  { %v2355_v27 = vpop.xlane.xlu1 %2354 }
 0xd2f   :  { %7252 = vrcp.f32 %v2355_v27 }
 0xd32   :  { %v2358_v28 = vpop.xlane.xlu0 %2357  ;;  %v2512_v42 = vpop.permute.xlu1 %2511 }
 0xd33   :  { %7254 = vrcp.f32 %v2358_v28  ;;  %v2533_v45 = vsel %vm436_vm4, %v7627_v56, %v2512_v42  ;;  %v7849_v56 = vshrl.u32 %v59_v33, 7 }
 0xd35   :  { %v2547_v57 = vsub.s32 0, %v7849_v56  ;;  %v2661_v26 = vsub.s32 1, %v7849_v56  ;;  %v2667_v27 = vsub.s32 2, %v7849_v56 }
 0xd36   :  { %v2520_v43 = vpop.permute.xlu1 %2519  ;;  %v2514_v44 = vpop.permute.xlu0 %2513 }
 0xd37   :  { %v2536_v46 = vsel %vm2535_vm5, %v2533_v45, %v2520_v43  ;;  %v2534_v52 = vsel %vm436_vm4, %v7629_v60, %v2514_v44  ;;  %v2548_v60 = vrot.slane %v7855_v61, %v2547_v57  ;;  %v2662_v28 = vrot.slane %v7855_v61, %v2661_v26  ;;  %v2778_v43 = vld [vmem:[%s8400_s8 + $0x20] sm:$0xff]  ;;  %v2779_v44 = vld [vmem:[%s8400_s8 + $0x28] sm:$0xff] }
 0xd38   :  { %v7072_v45 = vpack.c.bf16 %v2779_v44, %v2778_v43 }
 0xd39   :  { %v7253_v29 = vpop.eup %7252 }
 0xd3a   :  { %v2361_v30 = vmul.f32 %v7253_v29, %v7249_v23  ;;  %v2522_v47 = vpop.permute.xlu1 %2521 }
 0xd3b   :  { %v2537_v53 = vsel %vm2535_vm5, %v2534_v52, %v2522_v47  ;;  %v2781_v47 = vld [vmem:[%s8400_s8 + $0x38] sm:$0xff] }
 0xd3c   :  { %6608 = vmatmul.mubr.msk.f32.vlgmr.msra.gmra.mrb[18].mxu0 %vm436_vm4, %v2361_v30 }
 0xd3d   :  { %v7255_v31 = vpop.eup %7254  ;;  %7051 = vmatpush3.bf16.msra.mxu0 %v7048_v34 }
 0xd3e   :  { %v2362_v32 = vmul.f32 %v7255_v31, %v7251_v25  ;;  %7053 = vmatprep.subr.bf16.mxu0 %v7052_v37  ;;  %v2668_v31 = vrot.slane %v7855_v61, %v2667_v27 }
 0xd40   :  { %6613 = vmatmul.mubr.msk.f32.vlgmr.msra.gmra.mrb[36].mxu1 %vm436_vm4, %v2362_v32 }
 0xd41   :  { %7055 = vmatpush3.bf16.msra.mxu0 %v7052_v37  ;;  %v2774_v37 = vld [vmem:[%s8400_s8] sm:$0xff] }
 0xe0f   :  { %v2432_v38 = vpop.f32.mrb[18].mxu0 }
 0xe10   :  { %v6609_v39 = vpop.f32.mrb[19].mxu0  ;;  %2527 = vrot.lane.b32.xlu0 %v2432_v38, %s7345_s18  ;;  %v2775_v38 = vld [vmem:[%s8400_s8 + $0x8] sm:$0xff] }
 0xe11   :  { %v7064_v39 = vpack.c.bf16 %v2775_v38, %v2774_v37  ;;  %v5953_v38 = vld [vmem:[%s8395_s3 + $0x200] sm:$0xff] }
 0xe13   :  { %v2505_v40 = vpop.f32.mrb[36].mxu1  ;;  %7065 = vmatprep.subr.bf16.mxu0 %v7064_v39 }
 0xe14   :  { %2529 = vrot.lane.b32.xlu1 %v2505_v40, %s7345_s18  ;;  %v6614_v41 = vpop.f32.mrb[37].mxu1  ;;  %v2776_v40 = vld [vmem:[%s8400_s8 + $0x10] sm:$0xff] }
 0xe15   :  { %v2777_v41 = vld [vmem:[%s8400_s8 + $0x18] sm:$0xff] }
 0xe16   :  { %v7068_v42 = vpack.c.bf16 %v2777_v41, %v2776_v40 }
 0xe82   :  { %v2528_v49 = vpop.permute.xlu0 %2527 }
 0xe83   :  { %v2539_v51 = vsel %vm2538_vm6, %v2536_v46, %v2528_v49  ;;  %v2780_v46 = vld [vmem:[%s8400_s8 + $0x30] sm:$0xff] }
 0xe84   :  { %6623 = vmatprep.mubr.msk.f32.mxu0 %vm178_vm2, %v2539_v51  ;;  %v7076_v49 = vpack.c.bf16 %v2781_v47, %v2780_v46  ;;  %v5939_v51 = vld [vmem:[%s8399_s7] ss:$0 sm:$0xff]  ;;  %v2898_v47 = vsub.s32 4, %v7849_v56 }
 0xe86   :  { %v2530_v54 = vpop.permute.xlu1 %2529 }
 0xe87   :  { %v2540_v55 = vsel %vm2538_vm6, %v2537_v53, %v2530_v54 }
 0xe88   :  { %6624 = vmatmul.mubr.msk.f32.vlgmr.msra.gmra.mrb[20].mxu0 %vm178_vm2, %v2540_v55 }
 0xe89   :  { %7067 = vmatpush3.bf16.msra.mxu0 %v7064_v39  ;;  %v5954_v39 = vld [vmem:[%s8395_s3 + $0x208] sm:$0xff] }
 0xe8a   :  { %7069 = vmatprep.subr.bf16.mxu0 %v7068_v42  ;;  %v7088_v40 = vpack.c.bf16 %v5954_v39, %v5953_v38  ;;  %v5983_v38 = vld [vmem:[%s8395_s3 + $0x220] sm:$0xff]  ;;  %v5984_v39 = vld [vmem:[%s8395_s3 + $0x228] sm:$0xff] }
 0xe8d   :  { %7071 = vmatpush3.bf16.msra.mxu0 %v7068_v42 }
 0xe8e   :  { %7073 = vmatprep.subr.bf16.mxu0 %v7072_v45 }
 0xe91   :  { %7075 = vmatpush3.bf16.msra.mxu0 %v7072_v45 }
 0xe92   :  { %7077 = vmatprep.subr.bf16.mxu0 %v7076_v49 }
 0xe95   :  { %7079 = vmatpush3.bf16.msra.mxu0 %v7076_v49  ;;  %v2904_v49 = vsub.s32 5, %v7849_v56 }
 0xf5b   :  { %v6625_v62 = vpop.f32.mrb[20].mxu0 }
 0xf5c   :  { %v2627_v63 = vadd.f32 %v6625_v62, %v2548_v60  ;;  %v2621_v0 = vpop.f32.mrb[21].mxu0 }
 0xf5d   :  { %v2622_v1 = vadd.f32 %v2621_v0, %v2548_v60 }
 0xf5e   :  { %v2631_v2 = vadd.f32 %v2627_v63, %v7531_v59 }
 0xf5f   :  { %v2630_v33 = vadd.f32 %v2622_v1, %v7529_v58  ;;  %v2671_v58 = vld [vmem:[%s8398_s6] sm:$0xff] }
 0xf60   :  { %v2635_v3 = vsel %vm178_vm2, %v2631_v2, 0.0  ;;  %v7056_v17 = vpack.c.bf16 %v2672_v16, %v2671_v58 }
 0xf61   :  { %2636 = vadd.xlane.f32.xlu1 %v2635_v3  ;;  %v2632_v5 = vsel %vm178_vm2, %v2630_v33, 0.0 }
 0xf62   :  { %2633 = vadd.xlane.f32.xlu0 %v2632_v5  ;;  %7057 = vmatprep.subr.bf16.mxu1 %v7056_v17 }
 0xf63   :  { %7059 = vmatpush3.bf16.msra.mxu1 %v7056_v17 }
 0xf64   :  { %7061 = vmatprep.subr.bf16.mxu1 %v7060_v19 }
 0xf67   :  { %7063 = vmatpush3.bf16.msra.mxu1 %v7060_v19 }
 0xfee   :  { %v2637_v7 = vpop.xlane.xlu1 %2636 }
 0xfef   :  { %v2640_v8 = vmul.f32 0.03125, %v2637_v7  ;;  %v2634_v9 = vpop.xlane.xlu0 %2633 }
 0xff0   :  { %v2639_v10 = vmul.f32 0.03125, %v2634_v9 }
 0xff1   :  { %v2642_v11 = vsub.f32 %v2631_v2, %v2640_v8  ;;  %v2784_v8 = vsub.s32 3, %v7849_v56  ;;  %v5724_v56 = vld [vmem:[%s8403_s11] sm:$0xff] }
 0xff2   :  { %v2641_v12 = vsub.f32 %v2630_v33, %v2639_v10 }
 0xff3   :  { %v2644_v15 = vmul.f32 %v2642_v11, %v2642_v11  ;;  %v2785_v9 = vrot.slane %v7855_v61, %v2784_v8 }
 0xff4   :  { %v2643_v14 = vmul.f32 %v2641_v12, %v2641_v12 }
 0xff5   :  { %v2648_v59 = vsel %vm178_vm2, %v2644_v15, 0.0 }
 0xff6   :  { %v2645_v6 = vsel %vm178_vm2, %v2643_v14, 0.0 }
 0xff7   :  { %2646 = vadd.xlane.f32.xlu0 %v2645_v6 }
 0xffb   :  { %2649 = vadd.xlane.f32.xlu0 %v2648_v59 }
0x1084   :  { %v2647_v20 = vpop.xlane.xlu0 %2646 }
0x1085   :  { %v2651_v21 = vmul.f32 0.03125, %v2647_v20 }
0x1087   :  { %v2653_v22 = vadd.f32 1e-12, %v2651_v21 }
0x1088   :  { %v2650_v23 = vpop.xlane.xlu0 %2649 }
0x1089   :  { %7256 = vrsqrt.f32 %v2653_v22  ;;  %v2652_v24 = vmul.f32 0.03125, %v2650_v23 }
0x108b   :  { %v2654_v25 = vadd.f32 1e-12, %v2652_v24 }
0x108d   :  { %7258 = vrsqrt.f32 %v2654_v25  ;;  %v5945_v25 = vld [vmem:[%s8395_s3 + $0x180] sm:$0xff] }
0x1093   :  { %v7257_v29 = vpop.eup %7256 }
0x1094   :  { %v2657_v30 = vmul.f32 %v7257_v29, %v2641_v12 }
0x1096   :  { %v2663_v32 = vmul.f32 %v2662_v28, %v2657_v30  ;;  %v5961_v30 = vld [vmem:[%s8395_s3 + $0x280] sm:$0xff] }
0x1097   :  { %v7259_v50 = vpop.eup %7258 }
0x1098   :  { %v2658_v48 = vmul.f32 %v7259_v50, %v2642_v11  ;;  %v2669_v34 = vadd.f32 %v2668_v31, %v2663_v32  ;;  %v5947_v50 = vld [vmem:[%s8395_s3 + $0x190] sm:$0xff] }
0x109a   :  { %v2664_v35 = vmul.f32 %v2662_v28, %v2658_v48  ;;  %6634 = vmatprep.mubr.msk.f32.mxu1 %vm178_vm2, %v2669_v34  ;;  %v5946_v28 = vld [vmem:[%s8395_s3 + $0x188] sm:$0xff]  ;;  %v5948_v48 = vld [vmem:[%s8395_s3 + $0x198] sm:$0xff] }
0x109b   :  { %v7080_v29 = vpack.c.bf16 %v5946_v28, %v5945_v25 }
0x109c   :  { %v2670_v36 = vadd.f32 %v2668_v31, %v2664_v35  ;;  %v5962_v31 = vld [vmem:[%s8395_s3 + $0x288] sm:$0xff]  ;;  %v5963_v35 = vld [vmem:[%s8395_s3 + $0x290] sm:$0xff] }
0x109d   :  { %v7096_v32 = vpack.c.bf16 %v5962_v31, %v5961_v30  ;;  %7081 = vmatprep.subr.bf16.mxu1 %v7080_v29 }
0x109e   :  { %6635 = vmatmul.mubr.msk.f32.vlgmr.msra.gmra.mrb[38].mxu1 %vm178_vm2, %v2670_v36 }
0x109f   :  { %7083 = vmatpush3.bf16.msra.mxu1 %v7080_v29  ;;  %7097 = vmatprep.subr.bf16.mxu0 %v7096_v32 }
0x1171   :  { %v6636_v52 = vpop.f32.mrb[38].mxu1 }
0x1172   :  { %v2760_v53 = vadd.f32 %v6636_v52, %v5939_v51  ;;  %v2754_v54 = vpop.f32.mrb[39].mxu1 }
0x1173   :  { %v2755_v55 = vadd.f32 %v5939_v51, %v2754_v54  ;;  %v2899_v51 = vrot.slane %v7855_v61, %v2898_v47 }
0x1174   :  { %v2767_v60 = vmul.f32 0.70710677, %v2760_v53  ;;  %v2764_v3 = vmul.f32 0.5, %v2760_v53 }
0x1175   :  { %v2766_v62 = vmul.f32 0.70710677, %v2755_v55  ;;  %v2763_v2 = vmul.f32 0.5, %v2755_v55  ;;  %v2905_v55 = vrot.slane %v7855_v61, %v2904_v49  ;;  %v5966_v61 = vld [vmem:[%s8396_s4 + $0x14] ss:$0 sm:$0xff] }
0x1176   :  { %7260 = verf.f32 %v2767_v60 }
0x1177   :  { %7262 = verf.f32 %v2766_v62 }
0x1180   :  { %v7261_v63 = vpop.eup %7260 }
0x1181   :  { %v7263_v0 = vpop.eup %7262  ;;  %v2771_v1 = vadd.f32 1.0, %v7261_v63 }
0x1182   :  { %v2770_v33 = vadd.f32 1.0, %v7263_v0  ;;  %v5955_v0 = vld [vmem:[%s8395_s3 + $0x210] sm:$0xff] }
0x1183   :  { %v2773_v7 = vmul.f32 %v2771_v1, %v2764_v3  ;;  %v5956_v1 = vld [vmem:[%s8395_s3 + $0x218] sm:$0xff] }
0x1184   :  { %v2772_v5 = vmul.f32 %v2770_v33, %v2763_v2  ;;  %v7092_v3 = vpack.c.bf16 %v5956_v1, %v5955_v0  ;;  %v5993_v1 = vld [vmem:[%s8395_s3 + $0x2b0] sm:$0xff] }
0x1186   :  { %6653 = vmatprep.mubr.msk.f32.mxu0 %vm2786_vm7, %v2772_v5 }
0x1187   :  { %6654 = vmatmul.mubr.msk.f32.vlgmr.msra.gmra.mrb[22].mxu0 %vm2786_vm7, %v2773_v7 }
0x1188   :  { %7099 = vmatpush3.bf16.msra.mxu0 %v7096_v32 }
0x125a   :  { %v6655_v10 = vpop.f32.mrb[22].mxu0 }
0x125b   :  { %v2865_v11 = vadd.f32 %v6655_v10, %v2785_v9  ;;  %v2859_v12 = vpop.f32.mrb[23].mxu0 }
0x125c   :  { %v2860_v14 = vadd.f32 %v2859_v12, %v2785_v9  ;;  %v5958_v12 = vld [vmem:[%s8396_s4 + $0x10] ss:$0 sm:$0xff] }
0x125d   :  { %v2869_v6 = vadd.f32 %v2865_v11, %v2670_v36  ;;  %v5964_v36 = vld [vmem:[%s8395_s3 + $0x298] sm:$0xff] }
0x125e   :  { %v2868_v15 = vadd.f32 %v2860_v14, %v2669_v34  ;;  %v7084_v34 = vpack.c.bf16 %v5948_v48, %v5947_v50  ;;  %v7100_v37 = vpack.c.bf16 %v5964_v36, %v5963_v35  ;;  %v5975_v35 = vld [vmem:[%s8395_s3 + $0x1a0] sm:$0xff]  ;;  %v5976_v36 = vld [vmem:[%s8395_s3 + $0x1a8] sm:$0xff] }
0x125f   :  { %v2873_v59 = vsel %vm178_vm2, %v2869_v6, 0.0 }
0x1260   :  { %2874 = vadd.xlane.f32.xlu0 %v2873_v59  ;;  %v2870_v58 = vsel %vm178_vm2, %v2868_v15, 0.0  ;;  %7085 = vmatprep.subr.bf16.mxu1 %v7084_v34 }
0x1261   :  { %2871 = vadd.xlane.f32.xlu1 %v2870_v58  ;;  %7087 = vmatpush3.bf16.msra.mxu1 %v7084_v34 }
0x1262   :  { %7101 = vmatprep.subr.bf16.mxu0 %v7100_v37  ;;  %7089 = vmatprep.subr.bf16.mxu1 %v7088_v40 }
0x1263   :  { %7103 = vmatpush3.bf16.msra.mxu0 %v7100_v37  ;;  %v7104_v37 = vpack.c.bf16 %v5976_v36, %v5975_v35 }
0x1264   :  { %6699 = vmatprep.subr.mxu0 %v7341_v4 }
0x12ed   :  { %v2875_v16 = vpop.xlane.xlu0 %2874 }
0x12ee   :  { %v2877_v17 = vmul.f32 0.03125, %v2875_v16  ;;  %v2872_v18 = vpop.xlane.xlu1 %2871 }
0x12ef   :  { %v2876_v13 = vmul.f32 0.03125, %v2872_v18 }
0x12f0   :  { %v2879_v19 = vsub.f32 %v2869_v6, %v2877_v17 }
0x12f1   :  { %v2878_v20 = vsub.f32 %v2868_v15, %v2876_v13  ;;  %v5950_v15 = vld [vmem:[%s8396_s4 + $0xc] ss:$0 sm:$0xff] }
0x12f2   :  { %v2881_v21 = vmul.f32 %v2879_v19, %v2879_v19 }
0x12f3   :  { %v2880_v22 = vmul.f32 %v2878_v20, %v2878_v20 }
0x12f4   :  { %v2885_v23 = vsel %vm178_vm2, %v2881_v21, 0.0 }
0x12f5   :  { %2886 = vadd.xlane.f32.xlu0 %v2885_v23  ;;  %v2882_v24 = vsel %vm178_vm2, %v2880_v22, 0.0 }
0x12f6   :  { %2883 = vadd.xlane.f32.xlu1 %v2882_v24 }
0x1382   :  { %v2887_v41 = vpop.xlane.xlu0 %2886 }
0x1383   :  { %v2889_v42 = vmul.f32 0.03125, %v2887_v41  ;;  %v2884_v43 = vpop.xlane.xlu1 %2883 }
0x1384   :  { %v2888_v44 = vmul.f32 0.03125, %v2884_v43  ;;  %v5977_v43 = vld [vmem:[%s8395_s3 + $0x1b0] sm:$0xff] }
0x1385   :  { %v2891_v45 = vadd.f32 1e-12, %v2889_v42 }
0x1386   :  { %v2890_v46 = vadd.f32 1e-12, %v2888_v44  ;;  %v5978_v44 = vld [vmem:[%s8395_s3 + $0x1b8] sm:$0xff] }
0x1387   :  { %7264 = vrsqrt.f32 %v2891_v45 }
0x1388   :  { %7266 = vrsqrt.f32 %v2890_v46 }
0x1391   :  { %v7265_v52 = vpop.eup %7264 }
0x1392   :  { %v7267_v53 = vpop.eup %7266  ;;  %v2895_v54 = vmul.f32 %v7265_v52, %v2879_v19  ;;  %v5985_v52 = vld [vmem:[%s8395_s3 + $0x230] sm:$0xff] }
0x1393   :  { %v2894_v60 = vmul.f32 %v7267_v53, %v2878_v20  ;;  %v5986_v53 = vld [vmem:[%s8395_s3 + $0x238] sm:$0xff] }
0x1394   :  { %v2901_v62 = vmul.f32 %v2899_v51, %v2895_v54  ;;  %v5991_v54 = vld [vmem:[%s8395_s3 + $0x2a0] sm:$0xff] }
0x1395   :  { %v2900_v63 = vmul.f32 %v2899_v51, %v2894_v60  ;;  %v7108_v51 = vpack.c.bf16 %v5978_v44, %v5977_v43  ;;  %v6013_v43 = vld [vmem:[%s8395_s3 + $0x240] sm:$0xff]  ;;  %v6014_v44 = vld [vmem:[%s8395_s3 + $0x248] sm:$0xff] }
0x1396   :  { %v7972_v33 = vadd.f32 %v2905_v55, %v2901_v62 }
0x1397   :  { %v7970_v2 = vadd.f32 %v2905_v55, %v2900_v63  ;;  %v5992_v55 = vld [vmem:[%s8395_s3 + $0x2a8] sm:$0xff]  ;;  %v7116_v63 = vpack.c.bf16 %v5986_v53, %v5985_v52  ;;  %v6007_v52 = vld [vmem:[%s8395_s3 + $0x1d0] sm:$0xff]  ;;  %v6008_v53 = vld [vmem:[%s8395_s3 + $0x1d8] sm:$0xff] }
0x1398   :  { %v7120_v0 = vpack.c.bf16 %v5992_v55, %v5991_v54 }
0x1399   :  { %6664 = vmatprep.mubr.msk.f32.mxu1 %vm178_vm2, %v7970_v2  ;;  %6686 = vmatprep.mubr.msk.f32.mxu0 %vm178_vm2, %v7970_v2 }
0x139a   :  { %6665 = vmatmul.mubr.msk.f32.vlgmr.msra.gmra.mrb[40].mxu1 %vm178_vm2, %v7972_v33  ;;  %6687 = vmatmul.mubr.msk.f32.vlgmr.msra.gmra.mrb[24].mxu0 %vm178_vm2, %v7972_v33 }
0x139b   :  { %7091 = vmatpush3.bf16.msra.mxu1 %v7088_v40  ;;  %6675 = vmatprep.mubr.msk.f32.mxu1 %vm178_vm2, %v7970_v2  ;;  %v7112_v40 = vpack.c.bf16 %v5984_v39, %v5983_v38 }
0x139c   :  { %7093 = vmatprep.subr.bf16.mxu1 %v7092_v3  ;;  %6701 = vmatprep.mubr.msk.f32.mxu0 %vm7342_vm3, %v7341_v4 }
0x139f   :  { %7095 = vmatpush3.bf16.msra.mxu1 %v7092_v3  ;;  %v5994_v3 = vld [vmem:[%s8395_s3 + $0x2b8] sm:$0xff] }
0x13a0   :  { %6689 = vmatprep.subr.mxu1 %v7341_v4 }
0x13a2   :  { %6676 = vmatmul.mubr.msk.f32.vlgmr.msra.gmra.mrb[42].mxu1 %vm178_vm2, %v7972_v33 }
0x13a3   :  { %6691 = vmatprep.mubr.msk.f32.mxu1 %vm7342_vm3, %v7341_v4 }
0x146d   :  { %v6666_v5 = vpop.f32.mrb[40].mxu1  ;;  %v6688_v7 = vpop.f32.mrb[24].mxu0 }
0x146e   :  { %v2995_v9 = vpop.f32.mrb[41].mxu1  ;;  %v3171_v10 = vpop.f32.mrb[25].mxu0  ;;  %v3001_v17 = vadd.f32 %v6666_v5, %v5950_v15  ;;  %v3177_v18 = vadd.f32 %v6688_v7, %v5966_v61 }
0x146f   :  { %v3172_v11 = vadd.f32 %v5966_v61, %v3171_v10  ;;  %v2996_v58 = vadd.f32 %v5950_v15, %v2995_v9  ;;  %v7124_v61 = vpack.c.bf16 %v5994_v3, %v5993_v1  ;;  %v6022_v1 = vld [vmem:[%s8395_s3 + $0x2c8] sm:$0xff] }
0x1471   :  { %6700 = vmatpush3.msra.mxu0 %v3172_v11 }
0x1472   :  { %7105 = vmatprep.subr.bf16.mxu0 %v7104_v37 }
0x1475   :  { %v6677_v14 = vpop.f32.mrb[42].mxu1 }
0x1476   :  { %v3083_v6 = vpop.f32.mrb[43].mxu1  ;;  %v3089_v16 = vadd.f32 %v6677_v14, %v5958_v12  ;;  %v5988_v14 = vld [vmem:[%s8396_s4 + $0x11] ss:$0 sm:$0xff] }
0x1477   :  { %v3084_v59 = vadd.f32 %v5958_v12, %v3083_v6 }
0x1479   :  { %6690 = vmatpush3.xpose.msk.msra.mxu1 %vm436_vm4, %v3084_v59  ;;  %v5980_v59 = vld [vmem:[%s8396_s4 + $0xd] ss:$0 sm:$0xff] }
0x147a   :  { %6694 = vmatprep.subr.mxu1 %v7341_v4 }
0x147c   :  { %6692 = vmatmul.mubr.msk.f32.vlgmr.msra.gmra.mrb[44].mxu1 %vm436_vm4, %v2996_v58 }
0x147d   :  { %6695 = vmatpush3.xpose.msk.msra.mxu1 %vm436_vm4, %v3089_v16  ;;  %6696 = vmatprep.mubr.msk.f32.mxu1 %vm7342_vm3, %v7341_v4  ;;  %v5996_v16 = vld [vmem:[%s8396_s4 + $0x15] ss:$0 sm:$0xff] }
0x147e   :  { %6704 = vmatprep.subr.mxu1 %v7341_v4 }
0x1480   :  { %6697 = vmatmul.mubr.msk.f32.vlgmr.msra.gmra.mrb[46].mxu1 %vm436_vm4, %v3001_v17 }
0x1481   :  { %6705 = vmatpush3.msra.mxu1 %v3177_v18  ;;  %6706 = vmatprep.mubr.msk.f32.mxu1 %vm7342_vm3, %v7341_v4 }
0x1482   :  { %7113 = vmatprep.subr.bf16.mxu1 %v7112_v40 }
0x154f   :  { %v3252_v13 = vpop.f32.mrb[44].mxu1 }
0x1550   :  { %v6693_v19 = vpop.f32.mrb[45].mxu1  ;;  %v3332_v20 = vsel %vm436_vm4, %v3252_v13, -inf }
0x1551   :  { %3333 = vmax.xlane.f32.xlu0 %v3332_v20 }
0x1553   :  { %v3328_v21 = vpop.f32.mrb[46].mxu1 }
0x1554   :  { %v6698_v22 = vpop.f32.mrb[47].mxu1  ;;  %v3335_v23 = vsel %vm436_vm4, %v3328_v21, -inf }
0x1555   :  { %3336 = vmax.xlane.f32.xlu1 %v3335_v23 }
0x15de   :  { %v3334_v24 = vpop.xlane.xlu0 %3333 }
0x15df   :  { %v3338_v25 = vsub.f32 %v3252_v13, %v3334_v24 }
0x15e1   :  { %v3340_v28 = vmul.f32 1.442695, %v3338_v25 }
0x15e2   :  { %v3337_v29 = vpop.xlane.xlu1 %3336 }
0x15e3   :  { %7268 = vpow2.f32 %v3340_v28  ;;  %v3339_v30 = vsub.f32 %v3328_v21, %v3337_v29 }
0x15e5   :  { %v3342_v31 = vmul.f32 1.442695, %v3339_v30 }
0x15e7   :  { %7270 = vpow2.f32 %v3342_v31 }
0x15ed   :  { %v7269_v32 = vpop.eup %7268 }
0x15ee   :  { %v3344_v50 = vsel %vm436_vm4, %v7269_v32, 0.0 }
0x15ef   :  { %3345 = vadd.xlane.f32.xlu0 %v3344_v50 }
0x15f1   :  { %v7271_v48 = vpop.eup %7270 }
0x15f2   :  { %v3347_v34 = vsel %vm436_vm4, %v7271_v48, 0.0 }
0x15f3   :  { %3348 = vadd.xlane.f32.xlu1 %v3347_v34 }
0x167c   :  { %v3346_v41 = vpop.xlane.xlu0 %3345 }
0x167d   :  { %7272 = vrcp.f32 %v3346_v41  ;;  %v6006_v41 = vld [vmem:[%s8395_s3 + $0x1c8] sm:$0xff] }
0x1680   :  { %v3349_v42 = vpop.xlane.xlu1 %3348 }
0x1681   :  { %7274 = vrcp.f32 %v3349_v42 }
0x1687   :  { %v7273_v45 = vpop.eup %7272 }
0x1688   :  { %v3352_v46 = vmul.f32 %v7273_v45, %v7269_v32  ;;  %v7136_v45 = vpack.c.bf16 %v6014_v44, %v6013_v43 }
0x168a   :  { %6702 = vmatmul.mubr.msk.f32.vlgmr.msra.gmra.mrb[26].mxu0 %vm436_vm4, %v3352_v46 }
0x168b   :  { %v7275_v60 = vpop.eup %7274  ;;  %7107 = vmatpush3.bf16.msra.mxu0 %v7104_v37  ;;  %6717 = vmatprep.mubr.msk.f32.mxu0 %vm178_vm2, %v7970_v2 }
0x168c   :  { %v3353_v62 = vmul.f32 %v7275_v60, %v7271_v48  ;;  %7109 = vmatprep.subr.bf16.mxu0 %v7108_v51  ;;  %v7132_v60 = vpack.c.bf16 %v6008_v53, %v6007_v52  ;;  %v6036_v52 = vld [vmem:[%s8395_s3 + $0x1e8] sm:$0xff] }
0x168e   :  { %6707 = vmatmul.mubr.msk.f32.vlgmr.msra.gmra.mrb[48].mxu1 %vm436_vm4, %v3353_v62  ;;  %v6015_v62 = vld [vmem:[%s8395_s3 + $0x250] sm:$0xff] }
0x168f   :  { %7111 = vmatpush3.bf16.msra.mxu0 %v7108_v51  ;;  %7115 = vmatpush3.bf16.msra.mxu1 %v7112_v40  ;;  %v6005_v40 = vld [vmem:[%s8395_s3 + $0x1c0] sm:$0xff] }
0x1690   :  { %6728 = vmatprep.mubr.msk.f32.mxu1 %vm178_vm2, %v7970_v2  ;;  %7117 = vmatprep.subr.bf16.mxu1 %v7116_v63  ;;  %v7128_v42 = vpack.c.bf16 %v6006_v41, %v6005_v40 }
0x1691   :  { %7121 = vmatprep.subr.bf16.mxu0 %v7120_v0 }
0x1692   :  { %6718 = vmatmul.mubr.msk.f32.vlgmr.msra.gmra.mrb[28].mxu0 %vm178_vm2, %v7972_v33 }
0x1693   :  { %7119 = vmatpush3.bf16.msra.mxu1 %v7116_v63  ;;  %7123 = vmatpush3.bf16.msra.mxu0 %v7120_v0  ;;  %v6016_v63 = vld [vmem:[%s8395_s3 + $0x258] sm:$0xff]  ;;  %v6021_v0 = vld [vmem:[%s8395_s3 + $0x2c0] sm:$0xff] }
0x1694   :  { %6739 = vmatprep.mubr.msk.f32.mxu0 %vm178_vm2, %v7970_v2  ;;  %7125 = vmatprep.subr.bf16.mxu0 %v7124_v61 }
0x1695   :  { %6742 = vmatprep.subr.mxu1 %v7341_v4 }
0x1696   :  { %6729 = vmatmul.mubr.msk.f32.vlgmr.msra.gmra.mrb[50].mxu1 %vm178_vm2, %v7972_v33 }
0x1697   :  { %7127 = vmatpush3.bf16.msra.mxu0 %v7124_v61  ;;  %6744 = vmatprep.mubr.msk.f32.mxu1 %vm7342_vm3, %v7341_v4 }
0x1698   :  { %6752 = vmatprep.subr.mxu0 %v7341_v4 }
0x169a   :  { %6740 = vmatmul.mubr.msk.f32.vlgmr.msra.gmra.mrb[30].mxu0 %vm178_vm2, %v7972_v33 }
0x169b   :  { %6754 = vmatprep.mubr.msk.f32.mxu0 %vm7342_vm3, %v7341_v4 }
0x175d   :  { %v8070_v5 = vpop.f32.mrb[26].mxu0 }
0x175e   :  { %v6703_v7 = vpop.f32.mrb[27].mxu0 }
0x175f   :  { %v7140_v7 = vpack.c.bf16 %v6016_v63, %v6015_v62 }
0x1761   :  { %v8072_v9 = vpop.f32.mrb[48].mxu1 }
0x1762   :  { %v6708_v10 = vpop.f32.mrb[49].mxu1 }
0x1763   :  { %v7144_v10 = vpack.c.bf16 %v6022_v1, %v6021_v0  ;;  %v6037_v0 = vld [vmem:[%s8395_s3 + $0x1f0] sm:$0xff]  ;;  %v6038_v1 = vld [vmem:[%s8395_s3 + $0x1f8] sm:$0xff] }
0x1765   :  { %v6719_v11 = vpop.f32.mrb[28].mxu0 }
0x1766   :  { %v3579_v12 = vpop.f32.mrb[29].mxu0  ;;  %v3585_v21 = vadd.f32 %v6719_v11, %v5980_v59  ;;  %v6023_v11 = vld [vmem:[%s8395_s3 + $0x2d0] sm:$0xff] }
0x1767   :  { %v3580_v18 = vadd.f32 %v5980_v59, %v3579_v12  ;;  %v6024_v12 = vld [vmem:[%s8395_s3 + $0x2d8] sm:$0xff] }
0x1769   :  { %v6730_v6 = vpop.f32.mrb[50].mxu1 }
0x176a   :  { %v3667_v15 = vpop.f32.mrb[51].mxu1  ;;  %v3673_v19 = vadd.f32 %v6730_v6, %v5988_v14 }
0x176b   :  { %v3668_v58 = vadd.f32 %v5988_v14, %v3667_v15  ;;  %v7148_v14 = vpack.c.bf16 %v6024_v12, %v6023_v11  ;;  %v6046_v11 = vld [vmem:[%s8395_s3 + $0x278] sm:$0xff]  ;;  %v6051_v12 = vld [vmem:[%s8395_s3 + $0x2e0] sm:$0xff] }
0x176d   :  { %v6741_v17 = vpop.f32.mrb[30].mxu0  ;;  %6743 = vmatpush3.xpose.msk.msra.mxu1 %vm436_vm4, %v3668_v58 }
0x176e   :  { %v3755_v13 = vpop.f32.mrb[31].mxu0  ;;  %6747 = vmatprep.subr.mxu1 %v7341_v4  ;;  %v3761_v22 = vadd.f32 %v6741_v17, %v5996_v16 }
0x176f   :  { %v3756_v20 = vadd.f32 %v5996_v16, %v3755_v13 }
0x1770   :  { %6745 = vmatmul.mubr.msk.f32.vlgmr.msra.gmra.mrb[52].mxu1 %vm436_vm4, %v3580_v18  ;;  %v6018_v18 = vld [vmem:[%s8396_s4 + $0x12] ss:$0 sm:$0xff] }
0x1771   :  { %6748 = vmatpush3.xpose.msk.msra.mxu1 %vm436_vm4, %v3673_v19  ;;  %6753 = vmatpush3.msra.mxu0 %v3756_v20  ;;  %v6010_v20 = vld [vmem:[%s8396_s4 + $0xe] ss:$0 sm:$0xff] }
0x1772   :  { %6749 = vmatprep.mubr.msk.f32.mxu1 %vm7342_vm3, %v7341_v4  ;;  %6757 = vmatprep.subr.mxu1 %v7341_v4 }
0x1773   :  { %7129 = vmatprep.subr.bf16.mxu0 %v7128_v42 }
0x1774   :  { %6750 = vmatmul.mubr.msk.f32.vlgmr.msra.gmra.mrb[54].mxu1 %vm436_vm4, %v3585_v21 }
0x1775   :  { %6758 = vmatpush3.msra.mxu1 %v3761_v22  ;;  %6759 = vmatprep.mubr.msk.f32.mxu1 %vm7342_vm3, %v7341_v4  ;;  %v6026_v22 = vld [vmem:[%s8396_s4 + $0x16] ss:$0 sm:$0xff] }
0x1776   :  { %7137 = vmatprep.subr.bf16.mxu1 %v7136_v45 }
0x1843   :  { %v3836_v23 = vpop.f32.mrb[52].mxu1 }
0x1844   :  { %v6746_v24 = vpop.f32.mrb[53].mxu1  ;;  %v3916_v25 = vsel %vm436_vm4, %v3836_v23, -inf }
0x1845   :  { %3917 = vmax.xlane.f32.xlu0 %v3916_v25 }
0x1847   :  { %v3912_v28 = vpop.f32.mrb[54].mxu1 }
0x1848   :  { %v6751_v29 = vpop.f32.mrb[55].mxu1  ;;  %v3919_v30 = vsel %vm436_vm4, %v3912_v28, -inf }
0x1849   :  { %3920 = vmax.xlane.f32.xlu1 %v3919_v30 }
0x18d2   :  { %v3918_v31 = vpop.xlane.xlu0 %3917 }
0x18d3   :  { %v3922_v32 = vsub.f32 %v3836_v23, %v3918_v31 }
0x18d5   :  { %v3924_v50 = vmul.f32 1.442695, %v3922_v32 }
0x18d6   :  { %v3921_v48 = vpop.xlane.xlu1 %3920 }
0x18d7   :  { %7276 = vpow2.f32 %v3924_v50  ;;  %v3923_v34 = vsub.f32 %v3912_v28, %v3921_v48 }
0x18d9   :  { %v3926_v35 = vmul.f32 1.442695, %v3923_v34 }
0x18db   :  { %7278 = vpow2.f32 %v3926_v35 }
0x18e1   :  { %v7277_v36 = vpop.eup %7276 }
0x18e2   :  { %v3928_v37 = vsel %vm436_vm4, %v7277_v36, 0.0 }
0x18e3   :  { %3929 = vadd.xlane.f32.xlu0 %v3928_v37 }
0x18e5   :  { %v7279_v38 = vpop.eup %7278 }
0x18e6   :  { %v3931_v39 = vsel %vm436_vm4, %v7279_v38, 0.0 }
0x18e7   :  { %3932 = vadd.xlane.f32.xlu1 %v3931_v39 }
0x1970   :  { %v3930_v46 = vpop.xlane.xlu0 %3929 }
0x1971   :  { %7280 = vrcp.f32 %v3930_v46 }
0x1974   :  { %v3933_v51 = vpop.xlane.xlu1 %3932 }
0x1975   :  { %7282 = vrcp.f32 %v3933_v51  ;;  %v6035_v51 = vld [vmem:[%s8395_s3 + $0x1e0] sm:$0xff] }
0x1976   :  { %v7152_v53 = vpack.c.bf16 %v6036_v52, %v6035_v51 }
0x197b   :  { %v7281_v54 = vpop.eup %7280 }
0x197c   :  { %v3936_v55 = vmul.f32 %v7281_v54, %v7277_v36  ;;  %v6043_v54 = vld [vmem:[%s8395_s3 + $0x260] sm:$0xff] }
0x197e   :  { %6755 = vmatmul.mubr.msk.f32.vlgmr.msra.gmra.mrb[32].mxu0 %vm436_vm4, %v3936_v55  ;;  %v6044_v55 = vld [vmem:[%s8395_s3 + $0x268] sm:$0xff] }
0x197f   :  { %v7283_v3 = vpop.eup %7282  ;;  %7131 = vmatpush3.bf16.msra.mxu0 %v7128_v42  ;;  %6770 = vmatprep.mubr.msk.f32.mxu0 %vm178_vm2, %v7970_v2 }
0x1980   :  { %v3937_v61 = vmul.f32 %v7283_v3, %v7279_v38  ;;  %7133 = vmatprep.subr.bf16.mxu0 %v7132_v60 }
0x1982   :  { %6760 = vmatmul.mubr.msk.f32.vlgmr.msra.gmra.mrb[56].mxu1 %vm436_vm4, %v3937_v61 }
0x1983   :  { %7135 = vmatpush3.bf16.msra.mxu0 %v7132_v60  ;;  %7139 = vmatpush3.bf16.msra.mxu1 %v7136_v45  ;;  %v7160_v60 = vpack.c.bf16 %v6044_v55, %v6043_v54 }
0x1984   :  { %6781 = vmatprep.mubr.msk.f32.mxu1 %vm178_vm2, %v7970_v2  ;;  %7141 = vmatprep.subr.bf16.mxu1 %v7140_v7 }
0x1985   :  { %7145 = vmatprep.subr.bf16.mxu0 %v7144_v10 }
0x1986   :  { %6771 = vmatmul.mubr.msk.f32.vlgmr.msra.gmra.mrb[34].mxu0 %vm178_vm2, %v7972_v33 }
0x1987   :  { %7143 = vmatpush3.bf16.msra.mxu1 %v7140_v7  ;;  %7147 = vmatpush3.bf16.msra.mxu0 %v7144_v10  ;;  %v7156_v7 = vpack.c.bf16 %v6038_v1, %v6037_v0  ;;  %v6045_v10 = vld [vmem:[%s8395_s3 + $0x270] sm:$0xff] }
0x1988   :  { %6792 = vmatprep.mubr.msk.f32.mxu0 %vm178_vm2, %v7970_v2  ;;  %7149 = vmatprep.subr.bf16.mxu0 %v7148_v14 }
0x1989   :  { %6795 = vmatprep.subr.mxu1 %v7341_v4 }
0x198a   :  { %6782 = vmatmul.mubr.msk.f32.vlgmr.msra.gmra.mrb[58].mxu1 %vm178_vm2, %v7972_v33 }
0x198b   :  { %7151 = vmatpush3.bf16.msra.mxu0 %v7148_v14  ;;  %6797 = vmatprep.mubr.msk.f32.mxu1 %vm7342_vm3, %v7341_v4  ;;  %v6052_v14 = vld [vmem:[%s8395_s3 + $0x2e8] sm:$0xff] }
0x198c   :  { %6805 = vmatprep.subr.mxu0 %v7341_v4 }
0x198e   :  { %6793 = vmatmul.mubr.msk.f32.vlgmr.msra.gmra.mrb[36].mxu0 %vm178_vm2, %v7972_v33 }
0x198f   :  { %6807 = vmatprep.mubr.msk.f32.mxu0 %vm7342_vm3, %v7341_v4 }
0x1a51   :  { %v8153_v6 = vpop.f32.mrb[32].mxu0 }
0x1a52   :  { %v6756_v15 = vpop.f32.mrb[33].mxu0 }
0x1a55   :  { %v8155_v59 = vpop.f32.mrb[56].mxu1 }
0x1a56   :  { %v6761_v58 = vpop.f32.mrb[57].mxu1 }
0x1a59   :  { %v6772_v16 = vpop.f32.mrb[34].mxu0 }
0x1a5a   :  { %v4163_v17 = vpop.f32.mrb[35].mxu0  ;;  %v4169_v30 = vadd.f32 %v6772_v16, %v6010_v20  ;;  %v7164_v16 = vpack.c.bf16 %v6046_v11, %v6045_v10 }
0x1a5b   :  { %v4164_v24 = vadd.f32 %v6010_v20, %v4163_v17  ;;  %v7168_v17 = vpack.c.bf16 %v6052_v14, %v6051_v12  ;;  %v6067_v14 = vld [vmem:[%s8397_s5 + $0x30] sm:$0xff] }
0x1a5d   :  { %v6783_v13 = vpop.f32.mrb[58].mxu1 }
0x1a5e   :  { %v4251_v19 = vpop.f32.mrb[59].mxu1  ;;  %v4257_v28 = vadd.f32 %v6783_v13, %v6018_v18  ;;  %v6054_v13 = vld [vmem:[%s8395_s3 + $0x2f8] sm:$0xff] }
0x1a5f   :  { %v4252_v21 = vadd.f32 %v6018_v18, %v4251_v19  ;;  %v6053_v18 = vld [vmem:[%s8395_s3 + $0x2f0] sm:$0xff] }
0x1a60   :  { %v7172_v19 = vpack.c.bf16 %v6054_v13, %v6053_v18 }
0x1a61   :  { %v6794_v23 = vpop.f32.mrb[36].mxu0  ;;  %6796 = vmatpush3.xpose.msk.msra.mxu1 %vm436_vm4, %v4252_v21 }
0x1a62   :  { %v4339_v25 = vpop.f32.mrb[37].mxu0  ;;  %6800 = vmatprep.subr.mxu1 %v7341_v4  ;;  %v4345_v31 = vadd.f32 %v6794_v23, %v6026_v22 }
0x1a63   :  { %v4340_v29 = vadd.f32 %v6026_v22, %v4339_v25 }
0x1a64   :  { %6798 = vmatmul.mubr.msk.f32.vlgmr.msra.gmra.mrb[60].mxu1 %vm436_vm4, %v4164_v24 }
0x1a65   :  { %6801 = vmatpush3.xpose.msk.msra.mxu1 %vm436_vm4, %v4257_v28  ;;  %6806 = vmatpush3.msra.mxu0 %v4340_v29  ;;  %v6048_v28 = vld [vmem:[%s8396_s4 + $0x13] ss:$0 sm:$0xff] }
0x1a66   :  { %6802 = vmatprep.mubr.msk.f32.mxu1 %vm7342_vm3, %v7341_v4  ;;  %6810 = vmatprep.subr.mxu1 %v7341_v4 }
0x1a67   :  { %7153 = vmatprep.subr.bf16.mxu0 %v7152_v53 }
0x1a68   :  { %6803 = vmatmul.mubr.msk.f32.vlgmr.msra.gmra.mrb[62].mxu1 %vm436_vm4, %v4169_v30 }
0x1a69   :  { %6811 = vmatpush3.msra.mxu1 %v4345_v31  ;;  %6812 = vmatprep.mubr.msk.f32.mxu1 %vm7342_vm3, %v7341_v4  ;;  %v6040_v31 = vld [vmem:[%s8396_s4 + $0xf] ss:$0 sm:$0xff] }
0x1a6a   :  { %7161 = vmatprep.subr.bf16.mxu1 %v7160_v60 }
0x1b37   :  { %v4420_v32 = vpop.f32.mrb[60].mxu1 }
0x1b38   :  { %v6799_v50 = vpop.f32.mrb[61].mxu1  ;;  %v4500_v48 = vsel %vm436_vm4, %v4420_v32, -inf }
0x1b39   :  { %4501 = vmax.xlane.f32.xlu0 %v4500_v48  ;;  %v6056_v50 = vld [vmem:[%s8396_s4 + $0x17] ss:$0 sm:$0xff] }
0x1b3b   :  { %v4496_v34 = vpop.f32.mrb[62].mxu1 }
0x1b3c   :  { %v6804_v35 = vpop.f32.mrb[63].mxu1  ;;  %v4503_v36 = vsel %vm436_vm4, %v4496_v34, -inf }
0x1b3d   :  { %4504 = vmax.xlane.f32.xlu1 %v4503_v36 }
0x1bc6   :  { %v4502_v37 = vpop.xlane.xlu0 %4501 }
0x1bc7   :  { %v4506_v38 = vsub.f32 %v4420_v32, %v4502_v37 }
0x1bc9   :  { %v4508_v39 = vmul.f32 1.442695, %v4506_v38 }
0x1bca   :  { %v4505_v40 = vpop.xlane.xlu1 %4504 }
0x1bcb   :  { %7284 = vpow2.f32 %v4508_v39  ;;  %v4507_v41 = vsub.f32 %v4496_v34, %v4505_v40 }
0x1bcd   :  { %v4510_v42 = vmul.f32 1.442695, %v4507_v41 }
0x1bcf   :  { %7286 = vpow2.f32 %v4510_v42 }
0x1bd5   :  { %v7285_v43 = vpop.eup %7284 }
0x1bd6   :  { %v4512_v44 = vsel %vm436_vm4, %v7285_v43, 0.0 }
0x1bd7   :  { %4513 = vadd.xlane.f32.xlu0 %v4512_v44 }
0x1bd9   :  { %v7287_v45 = vpop.eup %7286 }
0x1bda   :  { %v4515_v46 = vsel %vm436_vm4, %v7287_v45, 0.0 }
0x1bdb   :  { %4516 = vadd.xlane.f32.xlu1 %v4515_v46 }
0x1c64   :  { %v4514_v62 = vpop.xlane.xlu0 %4513 }
0x1c65   :  { %7288 = vrcp.f32 %v4514_v62 }
0x1c68   :  { %v4517_v63 = vpop.xlane.xlu1 %4516 }
0x1c69   :  { %7290 = vrcp.f32 %v4517_v63 }
0x1c6f   :  { %v7289_v3 = vpop.eup %7288 }
0x1c70   :  { %v4520_v61 = vmul.f32 %v7289_v3, %v7285_v43 }
0x1c72   :  { %6808 = vmatmul.mubr.msk.f32.vlgmr.msra.gmra.mrb[38].mxu0 %vm436_vm4, %v4520_v61 }
0x1c73   :  { %v7291_v15 = vpop.eup %7290  ;;  %7155 = vmatpush3.bf16.msra.mxu0 %v7152_v53  ;;  %6823 = vmatprep.mubr.msk.f32.mxu0 %vm178_vm2, %v7970_v2 }
0x1c74   :  { %v4521_v58 = vmul.f32 %v7291_v15, %v7287_v45  ;;  %7157 = vmatprep.subr.bf16.mxu0 %v7156_v7  ;;  %v6068_v15 = vld [vmem:[%s8397_s5 + $0x38] sm:$0xff] }
0x1c76   :  { %6813 = vmatmul.mubr.msk.f32.vlgmr.msra.gmra.mrb[64].mxu1 %vm436_vm4, %v4521_v58  ;;  %v7180_v58 = vpack.c.bf16 %v6068_v15, %v6067_v14 }
0x1c77   :  { %7159 = vmatpush3.bf16.msra.mxu0 %v7156_v7  ;;  %7163 = vmatpush3.bf16.msra.mxu1 %v7160_v60 }
0x1c78   :  { %6834 = vmatprep.mubr.msk.f32.mxu1 %vm178_vm2, %v7970_v2  ;;  %7165 = vmatprep.subr.bf16.mxu1 %v7164_v16 }
0x1c79   :  { %7169 = vmatprep.subr.bf16.mxu0 %v7168_v17 }
0x1c7a   :  { %6824 = vmatmul.mubr.msk.f32.vlgmr.msra.gmra.mrb[40].mxu0 %vm178_vm2, %v7972_v33 }
0x1c7b   :  { %7167 = vmatpush3.bf16.msra.mxu1 %v7164_v16  ;;  %7171 = vmatpush3.bf16.msra.mxu0 %v7168_v17 }
0x1c7c   :  { %6845 = vmatprep.mubr.msk.f32.mxu0 %vm178_vm2, %v7970_v2  ;;  %7173 = vmatprep.subr.bf16.mxu0 %v7172_v19 }
0x1c7d   :  { %6848 = vmatprep.subr.mxu1 %v7341_v4 }
0x1c7e   :  { %6835 = vmatmul.mubr.msk.f32.vlgmr.msra.gmra.mrb[66].mxu1 %vm178_vm2, %v7972_v33 }
0x1c7f   :  { %7175 = vmatpush3.bf16.msra.mxu0 %v7172_v19  ;;  %6850 = vmatprep.mubr.msk.f32.mxu1 %vm7342_vm3, %v7341_v4 }
0x1c80   :  { %6858 = vmatprep.subr.mxu0 %v7341_v4 }
0x1c82   :  { %6846 = vmatmul.mubr.msk.f32.vlgmr.msra.gmra.mrb[42].mxu0 %vm178_vm2, %v7972_v33 }
0x1c83   :  { %6860 = vmatprep.mubr.msk.f32.mxu0 %vm7342_vm3, %v7341_v4 }
0x1d45   :  { %v4591_v20 = vpop.f32.mrb[38].mxu0 }
0x1d46   :  { %v6809_v21 = vpop.f32.mrb[39].mxu0 }
0x1d49   :  { %v4664_v22 = vpop.f32.mrb[64].mxu1 }
0x1d4a   :  { %v6814_v23 = vpop.f32.mrb[65].mxu1 }
0x1d4d   :  { %v6825_v24 = vpop.f32.mrb[40].mxu0 }
0x1d4e   :  { %v4747_v25 = vpop.f32.mrb[41].mxu0  ;;  %v4753_v38 = vadd.f32 %v6825_v24, %v6040_v31 }
0x1d4f   :  { %v4748_v34 = vadd.f32 %v6040_v31, %v4747_v25 }
0x1d51   :  { %v6836_v29 = vpop.f32.mrb[66].mxu1 }
0x1d52   :  { %v4835_v30 = vpop.f32.mrb[67].mxu1  ;;  %v4841_v36 = vadd.f32 %v6836_v29, %v6048_v28 }
0x1d53   :  { %v4836_v32 = vadd.f32 %v6048_v28, %v4835_v30 }
0x1d55   :  { %v6847_v48 = vpop.f32.mrb[42].mxu0  ;;  %6849 = vmatpush3.xpose.msk.msra.mxu1 %vm436_vm4, %v4836_v32 }
0x1d56   :  { %v4923_v35 = vpop.f32.mrb[43].mxu0  ;;  %6853 = vmatprep.subr.mxu1 %v7341_v4  ;;  %v4929_v39 = vadd.f32 %v6847_v48, %v6056_v50 }
0x1d57   :  { %v4924_v37 = vadd.f32 %v6056_v50, %v4923_v35 }
0x1d58   :  { %6851 = vmatmul.mubr.msk.f32.vlgmr.msra.gmra.mrb[68].mxu1 %vm436_vm4, %v4748_v34 }
0x1d59   :  { %6854 = vmatpush3.xpose.msk.msra.mxu1 %vm436_vm4, %v4841_v36  ;;  %6859 = vmatpush3.msra.mxu0 %v4924_v37 }
0x1d5a   :  { %6855 = vmatprep.mubr.msk.f32.mxu1 %vm7342_vm3, %v7341_v4  ;;  %6863 = vmatprep.subr.mxu1 %v7341_v4 }
0x1d5c   :  { %6856 = vmatmul.mubr.msk.f32.vlgmr.msra.gmra.mrb[70].mxu1 %vm436_vm4, %v4753_v38 }
0x1d5d   :  { %6864 = vmatpush3.msra.mxu1 %v4929_v39  ;;  %6865 = vmatprep.mubr.msk.f32.mxu1 %vm7342_vm3, %v7341_v4 }
0x1e2b   :  { %v5004_v40 = vpop.f32.mrb[68].mxu1 }
0x1e2c   :  { %v6852_v41 = vpop.f32.mrb[69].mxu1  ;;  %v5084_v42 = vsel %vm436_vm4, %v5004_v40, -inf }
0x1e2d   :  { %5085 = vmax.xlane.f32.xlu1 %v5084_v42 }
0x1e2f   :  { %v5080_v43 = vpop.f32.mrb[70].mxu1 }
0x1e30   :  { %v6857_v44 = vpop.f32.mrb[71].mxu1  ;;  %v5087_v45 = vsel %vm436_vm4, %v5080_v43, -inf }
0x1e31   :  { %5088 = vmax.xlane.f32.xlu0 %v5087_v45 }
0x1eba   :  { %v5086_v46 = vpop.xlane.xlu1 %5085 }
0x1ebb   :  { %v5090_v51 = vsub.f32 %v5004_v40, %v5086_v46 }
0x1ebd   :  { %v5092_v52 = vmul.f32 1.442695, %v5090_v51 }
0x1ebe   :  { %v5089_v53 = vpop.xlane.xlu0 %5088 }
0x1ebf   :  { %7292 = vpow2.f32 %v5092_v52  ;;  %v5091_v54 = vsub.f32 %v5080_v43, %v5089_v53  ;;  %v6072_v52 = vld [vmem:[%s8398_s6 + $0x28] sm:$0xff] }
0x1ec1   :  { %v5094_v55 = vmul.f32 1.442695, %v5091_v54  ;;  %v6073_v54 = vld [vmem:[%s8398_s6 + $0x30] sm:$0xff] }
0x1ec3   :  { %7294 = vpow2.f32 %v5094_v55  ;;  %v6074_v55 = vld [vmem:[%s8398_s6 + $0x38] sm:$0xff] }
0x1ec9   :  { %v7293_v60 = vpop.eup %7292 }
0x1eca   :  { %v5096_v62 = vsel %vm436_vm4, %v7293_v60, 0.0 }
0x1ecb   :  { %5097 = vadd.xlane.f32.xlu1 %v5096_v62 }
0x1ecd   :  { %v7295_v63 = vpop.eup %7294 }
0x1ece   :  { %v5099_v0 = vsel %vm436_vm4, %v7295_v63, 0.0 }
0x1ecf   :  { %5100 = vadd.xlane.f32.xlu0 %v5099_v0 }
0x1edc   :  { %5254 = vrot.lane.b32.xlu1 %v8153_v6, %s7343_s28  ;;  %v6065_v6 = vld [vmem:[%s8397_s5 + $0x20] sm:$0xff] }
0x1ee0   :  { %5262 = vrot.lane.b32.xlu1 %v4591_v20, %s7344_s29 }
0x1ee4   :  { %5264 = vrot.lane.b32.xlu1 %v4664_v22, %s7344_s29 }
0x1ee5   :  { %5256 = vrot.lane.b32.xlu0 %v8155_v59, %s7343_s28  ;;  %v6066_v59 = vld [vmem:[%s8397_s5 + $0x28] sm:$0xff] }
0x1ee6   :  { %v7176_v12 = vpack.c.bf16 %v6066_v59, %v6065_v6 }
0x1ee8   :  { %7177 = vmatprep.subr.bf16.mxu0 %v7176_v12 }
0x1f58   :  { %v5098_v1 = vpop.xlane.xlu1 %5097 }
0x1f59   :  { %7296 = vrcp.f32 %v5098_v1 }
0x1f5c   :  { %v5101_v3 = vpop.xlane.xlu0 %5100  ;;  %v5255_v19 = vpop.permute.xlu1 %5254 }
0x1f5d   :  { %7298 = vrcp.f32 %v5101_v3  ;;  %v5276_v22 = vsel %vm436_vm4, %v8070_v5, %v5255_v19  ;;  %v8294_v5 = vld [vmem:[%s8401_s9 + $0x8] sm:$0x3f]  ;;  %v6083_v19 = vld [vmem:[%s8400_s8 + $0x60] sm:$0xff] }
0x1f5e   :  { %v5290_v50 = vrot.slane %v8294_v5, %v2547_v57  ;;  %v5409_v6 = vrot.slane %v8294_v5, %v2667_v27  ;;  %v6080_v27 = vld [vmem:[%s8400_s8 + $0x48] sm:$0xff] }
0x1f60   :  { %v5263_v20 = vpop.permute.xlu1 %5262  ;;  %v5257_v21 = vpop.permute.xlu0 %5256 }
0x1f61   :  { %v5278_v23 = vsel %vm2535_vm5, %v5276_v22, %v5263_v20  ;;  %v5277_v29 = vsel %vm436_vm4, %v8072_v9, %v5257_v21  ;;  %v6084_v20 = vld [vmem:[%s8400_s8 + $0x68] sm:$0xff]  ;;  %v6085_v22 = vld [vmem:[%s8400_s8 + $0x70] sm:$0xff] }
0x1f62   :  { %v7200_v21 = vpack.c.bf16 %v6084_v20, %v6083_v19  ;;  %v7346_v19 = vmov 0.0|0.0  }
0x1f63   :  { %v7297_v61 = vpop.eup %7296 }
0x1f64   :  { %v5104_v7 = vmul.f32 %v7297_v61, %v7293_v60  ;;  %v5265_v24 = vpop.permute.xlu1 %5264  ;;  %v7188_v60 = vpack.c.bf16 %v6074_v55, %v6073_v54 }
0x1f65   :  { %v5279_v30 = vsel %vm2535_vm5, %v5277_v29, %v5265_v24 }
0x1f66   :  { %6861 = vmatmul.mubr.msk.f32.vlgmr.msra.gmra.mrb[44].mxu0 %vm436_vm4, %v5104_v7  ;;  %v5403_v7 = vrot.slane %v8294_v5, %v2661_v26  ;;  %v6079_v26 = vld [vmem:[%s8400_s8 + $0x40] sm:$0xff] }
0x1f67   :  { %v7299_v10 = vpop.eup %7298  ;;  %7179 = vmatpush3.bf16.msra.mxu0 %v7176_v12 }
0x1f68   :  { %v5105_v11 = vmul.f32 %v7299_v10, %v7295_v63  ;;  %7181 = vmatprep.subr.bf16.mxu0 %v7180_v58 }
0x1f6a   :  { %6866 = vmatmul.mubr.msk.f32.vlgmr.msra.gmra.mrb[72].mxu1 %vm436_vm4, %v5105_v11 }
0x1f6b   :  { %7183 = vmatpush3.bf16.msra.mxu0 %v7180_v58 }
0x2039   :  { %v5175_v16 = vpop.f32.mrb[44].mxu0 }
0x203a   :  { %v6862_v17 = vpop.f32.mrb[45].mxu0  ;;  %5270 = vrot.lane.b32.xlu0 %v5175_v16, %s7345_s18 }
0x203b   :  { %v7192_v17 = vpack.c.bf16 %v6080_v27, %v6079_v26 }
0x203d   :  { %v5248_v18 = vpop.f32.mrb[72].mxu1  ;;  %7193 = vmatprep.subr.bf16.mxu0 %v7192_v17 }
0x203e   :  { %5272 = vrot.lane.b32.xlu1 %v5248_v18, %s7345_s18  ;;  %v6867_v13 = vpop.f32.mrb[73].mxu1  ;;  %v6081_v18 = vld [vmem:[%s8400_s8 + $0x50] sm:$0xff] }
0x203f   :  { %v6082_v13 = vld [vmem:[%s8400_s8 + $0x58] sm:$0xff] }
0x20ac   :  { %v5271_v25 = vpop.permute.xlu0 %5270 }
0x20ad   :  { %v5280_v28 = vsel %vm2538_vm6, %v5278_v23, %v5271_v25  ;;  %v6086_v23 = vld [vmem:[%s8400_s8 + $0x78] sm:$0xff]  ;;  %v6076_v25 = vld [vmem:[%s8399_s7 + $0x1] ss:$0 sm:$0xff] }
0x20ae   :  { %6876 = vmatprep.mubr.msk.f32.mxu0 %vm178_vm2, %v5280_v28  ;;  %v7204_v24 = vpack.c.bf16 %v6086_v23, %v6085_v22 }
0x20b0   :  { %v5273_v31 = vpop.permute.xlu1 %5272 }
0x20b1   :  { %v5281_v32 = vsel %vm2538_vm6, %v5279_v30, %v5273_v31 }
0x20b2   :  { %6877 = vmatmul.mubr.msk.f32.vlgmr.msra.gmra.mrb[46].mxu0 %vm178_vm2, %v5281_v32 }
0x20b3   :  { %7195 = vmatpush3.bf16.msra.mxu0 %v7192_v17 }
0x2185   :  { %v6878_v48 = vpop.f32.mrb[46].mxu0 }
0x2186   :  { %v5369_v34 = vadd.f32 %v6878_v48, %v5290_v50  ;;  %v5363_v35 = vpop.f32.mrb[47].mxu0 }
0x2187   :  { %v5364_v9 = vadd.f32 %v5363_v35, %v5290_v50 }
0x2188   :  { %v5373_v36 = vadd.f32 %v5369_v34, %v7972_v33 }
0x2189   :  { %v5372_v37 = vadd.f32 %v5364_v9, %v7970_v2  ;;  %v6071_v2 = vld [vmem:[%s8398_s6 + $0x20] sm:$0xff] }
0x218a   :  { %v5377_v38 = vsel %vm178_vm2, %v5373_v36, 0.0  ;;  %v7184_v53 = vpack.c.bf16 %v6072_v52, %v6071_v2 }
0x218b   :  { %5378 = vadd.xlane.f32.xlu1 %v5377_v38  ;;  %v5374_v39 = vsel %vm178_vm2, %v5372_v37, 0.0 }
0x218c   :  { %5375 = vadd.xlane.f32.xlu0 %v5374_v39  ;;  %7185 = vmatprep.subr.bf16.mxu1 %v7184_v53 }
0x218d   :  { %7187 = vmatpush3.bf16.msra.mxu1 %v7184_v53 }
0x218e   :  { %7189 = vmatprep.subr.bf16.mxu1 %v7188_v60 }
0x2191   :  { %7191 = vmatpush3.bf16.msra.mxu1 %v7188_v60 }
0x2192   :  { %7208 = vmatprep.subr.bf16.mxu1 %v7346_v19 }
0x2218   :  { %v5379_v40 = vpop.xlane.xlu1 %5378 }
0x2219   :  { %v5381_v41 = vmul.f32 0.03125, %v5379_v40  ;;  %v5376_v42 = vpop.xlane.xlu0 %5375  ;;  %v5528_v40 = vrot.slane %v8294_v5, %v2784_v8 }
0x221a   :  { %v5380_v43 = vmul.f32 0.03125, %v5376_v42 }
0x221b   :  { %v5383_v44 = vsub.f32 %v5373_v36, %v5381_v41 }
0x221c   :  { %v5382_v57 = vsub.f32 %v5372_v37, %v5380_v43 }
0x221d   :  { %v5385_v51 = vmul.f32 %v5383_v44, %v5383_v44 }
0x221e   :  { %v5384_v45 = vmul.f32 %v5382_v57, %v5382_v57 }
0x221f   :  { %v5389_v33 = vsel %vm178_vm2, %v5385_v51, 0.0 }
0x2220   :  { %v5386_v46 = vsel %vm178_vm2, %v5384_v45, 0.0 }
0x2221   :  { %5387 = vadd.xlane.f32.xlu0 %v5386_v46 }
0x2225   :  { %5390 = vadd.xlane.f32.xlu0 %v5389_v33 }
0x22ae   :  { %v5388_v62 = vpop.xlane.xlu0 %5387 }
0x22af   :  { %v5392_v63 = vmul.f32 0.03125, %v5388_v62 }
0x22b1   :  { %v5394_v0 = vadd.f32 1e-12, %v5392_v63 }
0x22b2   :  { %v5391_v1 = vpop.xlane.xlu0 %5390 }
0x22b3   :  { %7300 = vrsqrt.f32 %v5394_v0  ;;  %v5393_v3 = vmul.f32 0.03125, %v5391_v1 }
0x22b5   :  { %v5395_v61 = vadd.f32 1e-12, %v5393_v3 }
0x22b7   :  { %7302 = vrsqrt.f32 %v5395_v61 }
0x22bd   :  { %v7301_v10 = vpop.eup %7300 }
0x22be   :  { %v5398_v11 = vmul.f32 %v7301_v10, %v5382_v57 }
0x22c0   :  { %v5404_v59 = vmul.f32 %v5403_v7, %v5398_v11  ;;  %v5641_v11 = vrot.slane %v8294_v5, %v2898_v47 }
0x22c1   :  { %v7303_v12 = vpop.eup %7302 }
0x22c2   :  { %v5399_v14 = vmul.f32 %v7303_v12, %v5383_v44  ;;  %v5410_v15 = vadd.f32 %v5409_v6, %v5404_v59 }
0x22c4   :  { %v5405_v58 = vmul.f32 %v5403_v7, %v5399_v14  ;;  %6887 = vmatprep.mubr.msk.f32.mxu1 %vm178_vm2, %v5410_v15  ;;  %v5647_v14 = vrot.slane %v8294_v5, %v2904_v49  ;;  %v5725_v49 = vld [vmem:[%s8403_s11 + $0x8] sm:$0xff]  ;;  %v5726_v5 = vld [vmem:[%s8403_s11 + $0x10] sm:$0xff] }
0x22c5   :  { %v7209_v20 = vpack.c.bf16 %v5725_v49, %v5724_v56  ;;  %v5728_v49 = vstv %s6090_s16 }
0x22c6   :  { %v5411_v16 = vadd.f32 %v5409_v6, %v5405_v58 }
0x22c8   :  { %6888 = vmatmul.mubr.msk.f32.vlgmr.msra.gmra.mrb[74].mxu1 %vm178_vm2, %v5411_v16 }
0x22c9   :  { %6917 = vmatprep.mubr.msk.f32.mxu1 %vm7342_vm3, %v7341_v4  ;;  %v7196_v4 = vpack.c.bf16 %v6082_v13, %v6081_v18  ;;  %7210 = vmatpush3.bf16.msra.mxu1 %v7209_v20 }
0x22ca   :  { %7211 = vmatprep.subr.bf16.mxu1 %v7346_v19 }
0x22cb   :  { %7197 = vmatprep.subr.bf16.mxu0 %v7196_v4 }
0x22cc   :  { %7199 = vmatpush3.bf16.msra.mxu0 %v7196_v4 }
0x22cd   :  { %7201 = vmatprep.subr.bf16.mxu0 %v7200_v21 }
0x22d0   :  { %7203 = vmatpush3.bf16.msra.mxu0 %v7200_v21  ;;  %v5727_v21 = vld [vmem:[%s8403_s11 + $0x18] sm:$0xff]  ;;  %s5715_s11 = sld [smem:[#allocation2]] }
0x22d1   :  { %7205 = vmatprep.subr.bf16.mxu0 %v7204_v24  ;;  %v7212_v22 = vpack.c.bf16 %v5727_v21, %v5726_v5 }
0x22d3   :  { %7213 = vmatpush3.bf16.msra.mxu1 %v7212_v22 }
0x22d4   :  { %7207 = vmatpush3.bf16.msra.mxu0 %v7204_v24 }
0x239b   :  { %v6889_v28 = vpop.f32.mrb[74].mxu1 }
0x239c   :  { %v5503_v29 = vadd.f32 %v6889_v28, %v6076_v25  ;;  %v5497_v30 = vpop.f32.mrb[75].mxu1 }
0x239d   :  { %v5498_v31 = vadd.f32 %v6076_v25, %v5497_v30 }
0x239e   :  { %v5509_v32 = vmul.f32 0.70710677, %v5503_v29  ;;  %v5507_v37 = vmul.f32 0.5, %v5503_v29 }
0x239f   :  { %v5508_v50 = vmul.f32 0.70710677, %v5498_v31  ;;  %v5506_v9 = vmul.f32 0.5, %v5498_v31 }
0x23a0   :  { %7304 = verf.f32 %v5509_v32 }
0x23a1   :  { %7306 = verf.f32 %v5508_v50 }
0x23aa   :  { %v7305_v48 = vpop.eup %7304 }
0x23ab   :  { %v7307_v34 = vpop.eup %7306  ;;  %v5513_v35 = vadd.f32 1.0, %v7305_v48 }
0x23ac   :  { %v5512_v36 = vadd.f32 1.0, %v7307_v34 }
0x23ad   :  { %v5515_v39 = vmul.f32 %v5513_v35, %v5507_v37 }
0x23ae   :  { %v5514_v38 = vmul.f32 %v5512_v36, %v5506_v9 }
0x23b0   :  { %6906 = vmatprep.mubr.msk.f32.mxu0 %vm2786_vm7, %v5514_v38 }
0x23b1   :  { %6907 = vmatmul.mubr.msk.f32.vlgmr.msra.gmra.mrb[48].mxu0 %vm2786_vm7, %v5515_v39 }
0x2484   :  { %v6908_v41 = vpop.f32.mrb[48].mxu0 }
0x2485   :  { %v5607_v42 = vadd.f32 %v6908_v41, %v5528_v40  ;;  %v5601_v43 = vpop.f32.mrb[49].mxu0 }
0x2486   :  { %v5602_v44 = vadd.f32 %v5601_v43, %v5528_v40 }
0x2487   :  { %v5611_v57 = vadd.f32 %v5607_v42, %v5411_v16  ;;  %v6089_v16 = vld [vmem:[%s8402_s10] ss:$0 sm:$0xff] }
0x2488   :  { %v5610_v45 = vadd.f32 %v5602_v44, %v5410_v15 }
0x2489   :  { %v5615_v46 = vsel %vm178_vm2, %v5611_v57, 0.0 }
0x248a   :  { %5616 = vadd.xlane.f32.xlu0 %v5615_v46  ;;  %v5612_v51 = vsel %vm178_vm2, %v5610_v45, 0.0 }
0x248b   :  { %5613 = vadd.xlane.f32.xlu1 %v5612_v51 }
0x2517   :  { %v5617_v33 = vpop.xlane.xlu0 %5616 }
0x2518   :  { %v5619_v2 = vmul.f32 0.03125, %v5617_v33  ;;  %v5614_v52 = vpop.xlane.xlu1 %5613 }
0x2519   :  { %v5618_v53 = vmul.f32 0.03125, %v5614_v52 }
0x251a   :  { %v5621_v54 = vsub.f32 %v5611_v57, %v5619_v2 }
0x251b   :  { %v5620_v55 = vsub.f32 %v5610_v45, %v5618_v53 }
0x251c   :  { %v5623_v60 = vmul.f32 %v5621_v54, %v5621_v54 }
0x251d   :  { %v5622_v8 = vmul.f32 %v5620_v55, %v5620_v55 }
0x251e   :  { %v5627_v62 = vsel %vm178_vm2, %v5623_v60, 0.0 }
0x251f   :  { %5628 = vadd.xlane.f32.xlu0 %v5627_v62  ;;  %v5624_v63 = vsel %vm178_vm2, %v5622_v8, 0.0 }
0x2520   :  { %5625 = vadd.xlane.f32.xlu1 %v5624_v63 }
0x25ac   :  { %v5629_v0 = vpop.xlane.xlu0 %5628 }
0x25ad   :  { %v5631_v1 = vmul.f32 0.03125, %v5629_v0  ;;  %v5626_v3 = vpop.xlane.xlu1 %5625 }
0x25ae   :  { %v5630_v61 = vmul.f32 0.03125, %v5626_v3 }
0x25af   :  { %v5633_v7 = vadd.f32 1e-12, %v5631_v1 }
0x25b0   :  { %v5632_v10 = vadd.f32 1e-12, %v5630_v61 }
0x25b1   :  { %7308 = vrsqrt.f32 %v5633_v7 }
0x25b2   :  { %7310 = vrsqrt.f32 %v5632_v10 }
0x25bb   :  { %v7309_v6 = vpop.eup %7308 }
0x25bc   :  { %v7311_v59 = vpop.eup %7310  ;;  %v5637_v12 = vmul.f32 %v7309_v6, %v5621_v54 }
0x25bd   :  { %v5636_v15 = vmul.f32 %v7311_v59, %v5620_v55 }
0x25be   :  { %v5643_v58 = vmul.f32 %v5641_v11, %v5637_v12 }
0x25bf   :  { %v5642_v26 = vmul.f32 %v5641_v11, %v5636_v15 }
0x25c0   :  { %v5649_v27 = vadd.f32 %v5647_v14, %v5643_v58 }
0x25c1   :  { %v5648_v17 = vadd.f32 %v5647_v14, %v5642_v26  ;;  %v5719_v26 = vstv %s5715_s11 }
0x25c2   :  { %v5658_v18 = vmul.f32 %v6089_v16, %v5649_v27 }
0x25c3   :  { %v5657_v13 = vmul.f32 %v6089_v16, %v5648_v17 }
0x25c4   :  { %v5662_v47 = vsel %vm178_vm2, %v5658_v18, 0.0 }
0x25c5   :  { %5663 = vadd.xlane.f32.xlu0 %v5662_v47  ;;  %v5659_v4 = vsel %vm178_vm2, %v5657_v13, 0.0 }
0x25c6   :  { %5660 = vadd.xlane.f32.xlu1 %v5659_v4 }
0x2652   :  { %v5664_v23 = vpop.xlane.xlu0 %5663 }
0x2653   :  { %v5671_v24 = vrot.slane %v5664_v23, 4  ;;  %v5661_v25 = vpop.xlane.xlu1 %5660 }
0x2654   :  { %v5665_v28 = vrot.slane %v5661_v25, 4 }
0x2655   :  { %v5672_v29 = vmax.f32 %v5664_v23, %v5671_v24 }
0x2656   :  { %v5666_v30 = vmax.f32 %v5661_v25, %v5665_v28 }
0x2657   :  { %v5673_v31 = vrot.slane %v5672_v29, 2 }
0x2658   :  { %v5667_v32 = vrot.slane %v5666_v30, 2 }
0x2659   :  { %v5674_v50 = vmax.f32 %v5672_v29, %v5673_v31 }
0x265a   :  { %v5668_v48 = vmax.f32 %v5666_v30, %v5667_v32 }
0x265b   :  { %v5675_v34 = vrot.slane %v5674_v50, 1 }
0x265c   :  { %v5669_v35 = vrot.slane %v5668_v48, 1 }
0x265d   :  { %v5676_v9 = vmax.f32 %v5674_v50, %v5675_v34 }
0x265e   :  { %v5670_v36 = vmax.f32 %v5668_v48, %v5669_v35 }
0x265f   :  { %v5678_v37 = vsub.f32 %v5664_v23, %v5676_v9 }
0x2660   :  { %v5677_v38 = vsub.f32 %v5661_v25, %v5670_v36 }
0x2661   :  { %v5681_v39 = vmul.f32 1.442695, %v5678_v37 }
0x2662   :  { %v5679_v40 = vmul.f32 1.442695, %v5677_v38 }
0x2663   :  { %7312 = vpow2.f32 %v5681_v39 }
0x2664   :  { %7314 = vpow2.f32 %v5679_v40 }
0x266d   :  { %v7313_v41 = vpop.eup %7312 }
0x266e   :  { %v7315_v42 = vpop.eup %7314  ;;  %v5689_v43 = vrot.slane %v7313_v41, 4 }
0x266f   :  { %v5683_v44 = vrot.slane %v7315_v42, 4 }
0x2670   :  { %v5690_v57 = vadd.f32 %v7313_v41, %v5689_v43 }
0x2671   :  { %v5684_v45 = vadd.f32 %v7315_v42, %v5683_v44 }
0x2672   :  { %v5691_v46 = vrot.slane %v5690_v57, 2 }
0x2673   :  { %v5685_v51 = vrot.slane %v5684_v45, 2 }
0x2674   :  { %v5692_v33 = vadd.f32 %v5691_v46, %v5690_v57 }
0x2675   :  { %v5686_v2 = vadd.f32 %v5685_v51, %v5684_v45 }
0x2676   :  { %v5693_v52 = vrot.slane %v5692_v33, 1 }
0x2677   :  { %v5687_v53 = vrot.slane %v5686_v2, 1 }
0x2678   :  { %v5694_v54 = vadd.f32 %v5693_v52, %v5692_v33 }
0x2679   :  { %v5688_v55 = vadd.f32 %v5687_v53, %v5686_v2 }
0x267a   :  { %7316 = vrcp.f32 %v5694_v54 }
0x267b   :  { %7318 = vrcp.f32 %v5688_v55 }
0x2684   :  { %v7317_v60 = vpop.eup %7316 }
0x2685   :  { %v7319_v8 = vpop.eup %7318  ;;  %v5698_v62 = vmul.f32 %v7317_v60, %v7313_v41 }
0x2686   :  { %v5697_v63 = vmul.f32 %v7319_v8, %v7315_v42 }
0x2687   :  { %v5700_v0 = vmul.f32 %v5698_v62, %v5649_v27 }
0x2688   :  { %v5699_v1 = vmul.f32 %v5697_v63, %v5648_v17 }
0x2689   :  { %v5708_v3 = vsel %vm178_vm2, %v5700_v0, 0.0 }
0x268a   :  { %v5701_v61 = vsel %vm178_vm2, %v5699_v1, 0.0  ;;  %v5709_v7 = vrot.slane %v5708_v3, 4 }
0x268b   :  { %v5702_v10 = vrot.slane %v5701_v61, 4 }
0x268c   :  { %v5710_v11 = vadd.f32 %v5709_v7, %v5708_v3 }
0x268d   :  { %v5703_v6 = vadd.f32 %v5702_v10, %v5701_v61 }
0x268e   :  { %v5711_v59 = vrot.slane %v5710_v11, 2 }
0x268f   :  { %v5704_v12 = vrot.slane %v5703_v6, 2 }
0x2690   :  { %v5712_v14 = vadd.f32 %v5711_v59, %v5710_v11 }
0x2691   :  { %v5705_v15 = vadd.f32 %v5704_v12, %v5703_v6 }
0x2692   :  { %v5713_v58 = vrot.slane %v5712_v14, 1 }
0x2693   :  { %v5706_v16 = vrot.slane %v5705_v15, 1 }
0x2694   :  { %v5714_v18 = vadd.f32 %v5713_v58, %v5712_v14 }
0x2695   :  { %v5707_v13 = vadd.f32 %v5706_v16, %v5705_v15 }
0x2696   :  { %vm5718_vm8 = vcmp.ge.f32.partialorder %v5714_v18, 0.0  ;;  %v5721_v27 = vmul.f32 %v5719_v26, %v5714_v18 }
0x2697   :  { %vm5717_vm9 = vcmp.ge.f32.partialorder %v5707_v13, 0.0  ;;  %v5720_v17 = vmul.f32 %v5719_v26, %v5707_v13 }
0x2698   :  { %v5723_v47 = vsel %vm5718_vm8, %v5714_v18, %v5721_v27 }
0x2699   :  { %v5722_v4 = vsel %vm5717_vm9, %v5707_v13, %v5720_v17 }
0x269a   :  { %v5732_v56 = vsel %vm5731_vm10, %v5723_v47, %v5722_v4 }
0x269b   :  { %6918 = vmatmul.mubr.msk.f32.vlgmr.msra.gmra.mrb[76].mxu1 %vm178_vm2, %v5732_v56 }
0x276e   :  { %v5801_v5 = vpop.f32.mrb[76].mxu1 }
0x276f   :  { %v5802_v19 = vadd.f32 %v5801_v5, %v5728_v49  ;;  %v6919_v20 = vpop.f32.mrb[77].mxu1 }
0x2771   :  { %v6092_v21 = vmul.f32 -1.442695, %v5802_v19 }
0x2773   :  { %7320 = vpow2.f32 %v6092_v21 }
0x277d   :  { %v7321_v22 = vpop.eup %7320 }
0x277e   :  { %v5808_v23 = vadd.f32 1.0, %v7321_v22 }
0x2780   :  { %7322 = vrcp.f32 %v5808_v23 }
0x278a   :  { %v7323_v24 = vpop.eup %7322 }
0x278b   :  { %5812 = vst.msk [vmem:[%s8405_s13] sm:$0x3] %vm5811_vm11, %v7323_v24 }
0x278c   :  { %5817 = vsyncpa [#allocation3], 1 }

</bundles_post_ra>
